<compile_context>
chip_gen: v5e
topology: v5e:2x2
jax: 0.10.0
libtpu: 0.0.40
codegen_flags: <defaults>
</compile_context>

<pallas_src>
import math

import numpy as np
import jax
import jax.numpy as jnp
from jax import lax
from jax.experimental import pallas as pl
from jax.experimental.pallas import tpu as pltpu

# ----------------------------- small config ---------------------------------
IMG = 16            # img_size
PATCH = 8           # patch_size
IN_CHANS = 3
NUM_CLASSES = 16    # also the decoder key/value sequence length (species_kv)
EMBED_DIM = 32
DEPTH = 2           # encoder transformer blocks
NUM_HEADS = 4
MLP_RATIO = 4.0
DEC_MLP_DIM = 64    # decoder Mlp hidden dim (3072 in the original, scaled down)
BATCH = 2

NUM_PATCHES = (IMG // PATCH) ** 2          # 4
SEQ = 1 + NUM_PATCHES                      # cls token + patches = 5
MLP_HIDDEN = int(EMBED_DIM * MLP_RATIO)    # 128
HEAD_DIM = EMBED_DIM // NUM_HEADS          # 8
PATCH_FEATS = IN_CHANS * PATCH * PATCH     # 192
LN_EPS = 1e-6
ATTN_SCALE = 1.0 / math.sqrt(HEAD_DIM)
# dropout_rate = attention_dropout_rate = 0.0  -> all Dropouts are identities.

SLAB_W = 128        # weight-slab lane width
ROW_ALIGN = 8       # each packed tensor starts on an 8-row (sublane-tile) boundary


# --------------------------- in-kernel helpers --------------------------------
def _erf_f32(x):
    # Abramowitz & Stegun 7.1.26 rational approximation (|err| < 1.5e-7, i.e.
    # float32-accurate vs PyTorch's exact-erf GELU); exp goes to the EUP slot.
    p = 0.3275911
    a1, a2, a3, a4, a5 = 0.254829592, -0.284496736, 1.421413741, -1.453152027, 1.061405429
    sgn = jnp.where(x >= 0.0, 1.0, -1.0)
    ax = jnp.abs(x)
    t = 1.0 / (1.0 + p * ax)
    poly = ((((a5 * t + a4) * t + a3) * t + a2) * t + a1) * t
    return sgn * (1.0 - poly * jnp.exp(-ax * ax))


def _gelu(x):
    return 0.5 * x * (1.0 + _erf_f32(x * (1.0 / math.sqrt(2.0))))


def _ln(x, g, b):
    mu = jnp.mean(x, axis=-1, keepdims=True)
    var = jnp.mean(jnp.square(x - mu), axis=-1, keepdims=True)
    return (x - mu) * lax.rsqrt(var + LN_EPS) * g + b


def _mm(a, b):
    return jnp.dot(a, b, preferred_element_type=jnp.float32)


def _softmax_rows(s):
    s = s - jnp.max(s, axis=-1, keepdims=True)
    e = jnp.exp(s)
    return e / jnp.sum(e, axis=-1, keepdims=True)


# --------------------------- weight-slab packing -------------------------------
def _pack_slab(entries):
    """Pack named 2D tensors (cols <= 128) into one (R,128) f32 slab.

    Returns (slab, layout) where layout[name] = (row0, nrows, ncols) with
    row0 a static Python int aligned to ROW_ALIGN.
    """
    layout = {}
    chunks = []
    r = 0
    for name, arr in entries:
        arr = jnp.asarray(arr, jnp.float32)
        nr, nc = arr.shape
        assert nc <= SLAB_W, (name, arr.shape)
        pad_r = (-nr) % ROW_ALIGN
        chunks.append(jnp.pad(arr, ((0, pad_r), (0, SLAB_W - nc))))
        layout[name] = (r, nr, nc)
        r += nr + pad_r
    return jnp.concatenate(chunks, axis=0), layout


def _build_weight_slab(params, batch):
    """Weight-only precompute + packing (runs once in the wrapper, not per token)."""
    d = EMBED_DIM
    bs = batch * SEQ

    # patch bias + cls token + (batch-tiled) pos embed folded into ONE additive tensor:
    #   x = patches @ patch_w + embed_add   (cls rows of `patches` are zero-padded)
    cls_rows = np.zeros((bs, 1), np.float32)
    cls_rows[0::SEQ, 0] = 1.0
    pos_tiled = jnp.tile(params["pos_embed"], (batch, 1))                      # (bs, d)
    embed_add = (params["patch_b"] + pos_tiled
                 + jnp.asarray(cls_rows) * (params["cls_token"] - params["patch_b"]))

    # additive block mask: rows/cols of different images get -1e30 before softmax
    img_id = np.repeat(np.arange(batch), SEQ)
    attn_bias = np.where(img_id[:, None] == img_id[None, :], 0.0, -1e30).astype(np.float32)

    # decoder K/V depend only on weights -> precompute once, shared by both passes.
    #  k_bd   : (d, H*C) block-diagonal  -> scores for all heads in ONE matmul
    #  vproj  : (H*C, d) out-proj folded -> context+projection in ONE matmul
    dec = params["decoder"]
    kv_tok = params["species_kv"] + params["pos_embed_kv"]                     # (C, d)
    kvp = kv_tok @ dec["kv_w"] + dec["kv_b"]                                   # (C, 2d)
    k_bd = jnp.zeros((d, NUM_HEADS * NUM_CLASSES), jnp.float32)
    vproj_rows = []
    for h in range(NUM_HEADS):
        lo = h * HEAD_DIM
        k_bd = k_bd.at[lo:lo + HEAD_DIM,
                       h * NUM_CLASSES:(h + 1) * NUM_CLASSES].set(kvp[:, lo:lo + HEAD_DIM].T)
        vproj_rows.append(kvp[:, d + lo:d + lo + HEAD_DIM] @ dec["out_w"][lo:lo + HEAD_DIM, :])
    vproj = jnp.concatenate(vproj_rows, axis=0)                                # (H*C, d)
    # block-ones matrix: e @ seg_sum broadcasts each head's softmax denominator
    seg_sum = np.kron(np.eye(NUM_HEADS), np.ones((NUM_CLASSES, NUM_CLASSES))).astype(np.float32)

    # cls-token selection matrices: one stacked head matmul, one output store
    sel_g = np.zeros((2 * batch, bs), np.float32)
    sel_s = np.zeros((2 * batch, bs), np.float32)
    for b in range(batch):
        sel_g[b, b * SEQ] = 1.0
        sel_s[batch + b, b * SEQ] = 1.0

    entries = [("patch_w", params["patch_w"]),
               ("embed_add", embed_add),
               ("attn_bias", attn_bias)]
    for i, blk in enumerate(params["blocks"]):
        # fold 1/sqrt(head_dim) into the query part of the fused qkv projection
        qkv_w = blk["qkv_w"].at[:, :d].multiply(ATTN_SCALE)
        qkv_b = blk["qkv_b"].at[:, :d].multiply(ATTN_SCALE)
        entries += [
            (f"b{i}_norm1_g", blk["norm1_g"]), (f"b{i}_norm1_b", blk["norm1_b"]),
            (f"b{i}_qkv_w", qkv_w), (f"b{i}_qkv_b", qkv_b),
            (f"b{i}_proj_w", blk["proj_w"]), (f"b{i}_proj_b", blk["proj_b"]),
            (f"b{i}_norm2_g", blk["norm2_g"]), (f"b{i}_norm2_b", blk["norm2_b"]),
            (f"b{i}_mlp_w1", blk["mlp_w1"]), (f"b{i}_mlp_b1", blk["mlp_b1"]),
            (f"b{i}_mlp_w2", blk["mlp_w2"]), (f"b{i}_mlp_b2", blk["mlp_b2"]),
        ]
    entries += [
        ("norm_g", params["norm_g"]), ("norm_b", params["norm_b"]),
        ("head_w", params["head_w"]), ("head_b", params["head_b"]),
        ("head_sel_g", sel_g), ("head_sel_s", sel_s),
        ("dec_ca_ln_g", dec["ca_ln_g"]), ("dec_ca_ln_b", dec["ca_ln_b"]),
        ("dec_q_w", dec["q_w"] * ATTN_SCALE), ("dec_q_b", dec["q_b"] * ATTN_SCALE),
        ("dec_k_bd", k_bd), ("dec_vproj", vproj), ("dec_seg_sum", seg_sum),
        ("dec_out_b", dec["out_b"]),
        ("dec_ffn_ln_g", dec["ffn_ln_g"]), ("dec_ffn_ln_b", dec["ffn_ln_b"]),
        ("dec_ffn_w1", dec["ffn_w1"]), ("dec_ffn_b1", dec["ffn_b1"]),
        ("dec_ffn_w2", dec["ffn_w2"]), ("dec_ffn_b2", dec["ffn_b2"]),
    ]
    return _pack_slab(entries)


# ------------------------------ fused kernel ----------------------------------
def _make_kernel(layout, batch):
    bs = batch * SEQ
    d = EMBED_DIM

    def kernel(patches_ref, slab_ref, out_ref):
        def W(name):  # static (free) view into the resident weight slab
            r0, nr, nc = layout[name]
            return slab_ref[r0:r0 + nr, 0:nc]

        # ---- patch embedding + cls token + positional embedding (all folded) --
        x = _mm(patches_ref[...], W("patch_w")) + W("embed_add")      # (bs, d)
        attn_bias = W("attn_bias")                                    # (bs, bs)

        # ---- encoder transformer blocks (timm style, pre-LN) ------------------
        for i in range(DEPTH):
            g = lambda n, i=i: W(f"b{i}_{n}")
            h = _ln(x, g("norm1_g"), g("norm1_b"))
            qkv = _mm(h, g("qkv_w")) + g("qkv_b")                     # (bs, 3d); q pre-scaled
            q_all, k_all, v_all = qkv[:, :d], qkv[:, d:2 * d], qkv[:, 2 * d:3 * d]
            proj_w = g("proj_w")
            att = jnp.zeros((bs, d), jnp.float32)
            for hd in range(NUM_HEADS):
                lo = hd * HEAD_DIM
                s = lax.dot_general(q_all[:, lo:lo + HEAD_DIM], k_all[:, lo:lo + HEAD_DIM],
                                    (((1,), (1,)), ((), ())),
                                    preferred_element_type=jnp.float32) + attn_bias
                p = _softmax_rows(s)
                ctx = _mm(p, v_all[:, lo:lo + HEAD_DIM])              # (bs, Dh)
                att = att + _mm(ctx, proj_w[lo:lo + HEAD_DIM, :])     # out-proj folded per head
            x = x + att + g("proj_b")
            h2 = _ln(x, g("norm2_g"), g("norm2_b"))
            x = x + _mm(_gelu(_mm(h2, g("mlp_w1")) + g("mlp_b1")), g("mlp_w2")) + g("mlp_b2")

        enc = _ln(x, W("norm_g"), W("norm_b"))                        # encoder.forward_features

        # ---- decoder (one DecoderBlock); weights loaded once, used twice ------
        ca_ln_g, ca_ln_b = W("dec_ca_ln_g"), W("dec_ca_ln_b")
        q_w, q_b = W("dec_q_w"), W("dec_q_b")
        k_bd, vproj, seg_sum = W("dec_k_bd"), W("dec_vproj"), W("dec_seg_sum")
        out_b = W("dec_out_b")
        ffn_ln_g, ffn_ln_b = W("dec_ffn_ln_g"), W("dec_ffn_ln_b")
        ffn_w1, ffn_b1 = W("dec_ffn_w1"), W("dec_ffn_b1")
        ffn_w2, ffn_b2 = W("dec_ffn_w2"), W("dec_ffn_b2")

        def decoder_block(xt):
            h = _ln(xt, ca_ln_g, ca_ln_b)
            q = _mm(h, q_w) + q_b                                     # (bs, d), pre-scaled
            s_all = _mm(q, k_bd)                                      # (bs, H*C), heads side-by-side
            # Per-head softmax without lane slicing: subtract the shared row max
            # (softmax is invariant to any per-row shift) and normalize each
            # 16-lane head segment with one matmul against a block-ones matrix.
            e = jnp.exp(s_all - jnp.max(s_all, axis=-1, keepdims=True))
            denom = _mm(e, seg_sum)                                   # segment sums, broadcast
            att = _mm(e / denom, vproj)                               # (bs, d), out-proj folded
            xt = xt + att + out_b
            h2 = _ln(xt, ffn_ln_g, ffn_ln_b)
            hmid = _gelu(_mm(h2, ffn_w1) + ffn_b1)
            return xt + _mm(hmid, ffn_w2) + ffn_b2

        vis_g = decoder_block(enc)
        vis_s = decoder_block(vis_g)

        # ---- both classification heads in one stacked matmul + one store ------
        cls_tok = _mm(W("head_sel_g"), vis_g) + _mm(W("head_sel_s"), vis_s)   # (2B, d)
        out_ref[...] = _mm(cls_tok, W("head_w")) + W("head_b")                # (2B, C)

    return kernel


# ------------------------------ forward wrapper --------------------------------
def vit_seq_rec_forward(params, x):
    """ViTSEQREC.forward (inference path; targets / SupConLoss not used)."""
    b, c, hh, ww = x.shape
    hp, wp = hh // PATCH, ww // PATCH
    # im2col unfold of the NCHW image (inner order (c, ph, pw) matches Conv2d
    # weight flattening) + a zero row at each image's cls slot, then stack the
    # whole batch along sublanes -> one dense (B*SEQ, C*P*P) slab.
    patches = (x.reshape(b, c, hp, PATCH, wp, PATCH)
                .transpose(0, 2, 4, 1, 3, 5)
                .reshape(b, hp * wp, c * PATCH * PATCH))
    patches = jnp.pad(patches, ((0, 0), (1, 0), (0, 0))).reshape(b * SEQ, PATCH_FEATS)

    slab, layout = _build_weight_slab(params, b)
    bs = b * SEQ

    out = pl.pallas_call(
        _make_kernel(layout, b),
        grid=(1,),                                       # single step; batch is stacked
        in_specs=[pl.BlockSpec((bs, PATCH_FEATS), lambda i: (0, 0)),
                  pl.BlockSpec(slab.shape, lambda i: (0, 0))],
        out_specs=pl.BlockSpec((2 * b, NUM_CLASSES), lambda i: (0, 0)),
        out_shape=jax.ShapeDtypeStruct((2 * b, NUM_CLASSES), jnp.float32),
        compiler_params=pltpu.CompilerParams(dimension_semantics=("arbitrary",)),
    )(patches, slab)

    # rows are [g_img0..g_imgB-1, s_img0..s_imgB-1] -> (B, 2, num_classes)
    return out.reshape(2, b, NUM_CLASSES).transpose(1, 0, 2)


# ------------------------------ parameters -------------------------------------
def init_params(key):
    """Parameters shaped like the PyTorch module's (biases kept as (1,n) rows)."""
    d = EMBED_DIM
    keys = iter(jax.random.split(key, 64))

    def nrm(shape, std=0.02):
        return std * jax.random.normal(next(keys), shape, dtype=jnp.float32)

    def zeros(*shape):
        return jnp.zeros(shape, jnp.float32)

    def ones(*shape):
        return jnp.ones(shape, jnp.float32)

    params = {
        "patch_w": nrm((PATCH_FEATS, d)),
        "patch_b": zeros(1, d),
        "cls_token": nrm((1, d)),
        "pos_embed": nrm((SEQ, d)),
        "blocks": [],
        "norm_g": ones(1, d), "norm_b": zeros(1, d),
        "head_w": nrm((d, NUM_CLASSES)), "head_b": zeros(1, NUM_CLASSES),
        "species_kv": jax.random.normal(next(keys), (NUM_CLASSES, d), jnp.float32),
        "pos_embed_kv": 0.02 * jax.random.normal(next(keys), (NUM_CLASSES, d), jnp.float32),
    }
    for _ in range(DEPTH):
        params["blocks"].append({
            "norm1_g": ones(1, d), "norm1_b": zeros(1, d),
            "qkv_w": nrm((d, 3 * d)), "qkv_b": zeros(1, 3 * d),
            "proj_w": nrm((d, d)), "proj_b": zeros(1, d),
            "norm2_g": ones(1, d), "norm2_b": zeros(1, d),
            "mlp_w1": nrm((d, MLP_HIDDEN)), "mlp_b1": zeros(1, MLP_HIDDEN),
            "mlp_w2": nrm((MLP_HIDDEN, d)), "mlp_b2": zeros(1, d),
        })
    params["decoder"] = {
        "ca_ln_g": ones(1, d), "ca_ln_b": zeros(1, d),
        "q_w": nrm((d, d)), "q_b": zeros(1, d),
        # key/value projections fused into one lane-dense (D, 2D) weight
        "kv_w": nrm((d, 2 * d)), "kv_b": zeros(1, 2 * d),
        "out_w": nrm((d, d)), "out_b": zeros(1, d),
        "ffn_ln_g": ones(1, d), "ffn_ln_b": zeros(1, d),
        "ffn_w1": nrm((d, DEC_MLP_DIM)), "ffn_b1": zeros(1, DEC_MLP_DIM),
        "ffn_w2": nrm((DEC_MLP_DIM, d)), "ffn_b2": zeros(1, d),
    }
    return params


# --------------------------------- main -----------------------------------------
if __name__ == "__main__":
    root = jax.random.PRNGKey(0)
    pkey, xkey = jax.random.split(root)
    params = init_params(pkey)
    x = jax.random.normal(xkey, (BATCH, IN_CHANS, IMG, IMG), dtype=jnp.float32)  # NCHW

    scores = jax.jit(vit_seq_rec_forward)(params, x)
    scores = jax.block_until_ready(scores)

    assert scores.shape == (BATCH, 2, NUM_CLASSES), scores.shape
    assert bool(jnp.all(jnp.isfinite(scores)))
    print("KERNEL_OK")
</pallas_src>

<mosaic_0001>
module attributes {stable_mosaic.version = 11 : i64} {
  func.func @kernel(%arg0: i32, %arg1: memref<10x192xf32, #tpu.memory_space<vmem>>, %arg2: memref<1224x128xf32, #tpu.memory_space<vmem>>, %arg3: memref<4x16xf32, #tpu.memory_space<vmem>>) attributes {dimension_semantics = [#tpu.dimension_semantics<arbitrary>], iteration_bounds = array<i64: 1>, scalar_prefetch = 0 : i64, scratch_operands = 0 : i64, tpu.core_type = #tpu.core_type<tc>, window_params = [{pipeline_mode = #tpu.pipeline_mode<synchronous>, transform_indices = @transform_0, window_bounds = array<i64: 10, 192>}, {pipeline_mode = #tpu.pipeline_mode<synchronous>, transform_indices = @transform_1, window_bounds = array<i64: 1224, 128>}, {pipeline_mode = #tpu.pipeline_mode<synchronous>, transform_indices = @transform_2, window_bounds = array<i64: 4, 16>}]} {
    %c0 = arith.constant 0 : index
    %c0_0 = arith.constant 0 : index
    %0 = vector.load %arg1[%c0, %c0_0] : memref<10x192xf32, #tpu.memory_space<vmem>>, vector<10x192xf32>
    %c0_1 = arith.constant 0 : index
    %c0_2 = arith.constant 0 : index
    %1 = vector.load %arg2[%c0_1, %c0_2] : memref<1224x128xf32, #tpu.memory_space<vmem>>, vector<192x32xf32>
    %cst = arith.constant dense<0.000000e+00> : vector<10x32xf32>
    %2 = tpu.matmul %0, %1, %cst {dimension_numbers = #tpu.dot_dimension_numbers<[1], [0], [0], [1], [0, 0, 1, 1], [], []>} : vector<10x192xf32>, vector<192x32xf32>, vector<10x32xf32> -> vector<10x32xf32>
    %c192 = arith.constant 192 : index
    %c0_3 = arith.constant 0 : index
    %3 = vector.load %arg2[%c192, %c0_3] : memref<1224x128xf32, #tpu.memory_space<vmem>>, vector<10x32xf32>
    %4 = arith.addf %2, %3 : vector<10x32xf32>
    %c208 = arith.constant 208 : index
    %c0_4 = arith.constant 0 : index
    %5 = vector.load %arg2[%c208, %c0_4] : memref<1224x128xf32, #tpu.memory_space<vmem>>, vector<10x10xf32>
    %c224 = arith.constant 224 : index
    %c0_5 = arith.constant 0 : index
    %6 = vector.load %arg2[%c224, %c0_5] : memref<1224x128xf32, #tpu.memory_space<vmem>>, vector<1x32xf32>
    %c232 = arith.constant 232 : index
    %c0_6 = arith.constant 0 : index
    %7 = vector.load %arg2[%c232, %c0_6] : memref<1224x128xf32, #tpu.memory_space<vmem>>, vector<1x32xf32>
    %cst_7 = arith.constant dense<0.000000e+00> : vector<10xf32>
    %8 = vector.multi_reduction <add>, %4, %cst_7 [1] : vector<10x32xf32> to vector<10xf32>
    %9 = vector.shape_cast %8 : vector<10xf32> to vector<10x1xf32>
    %cst_8 = arith.constant 3.200000e+01 : f32
    %10 = vector.broadcast %cst_8 : f32 to vector<10x1xf32>
    %11 = arith.divf %9, %10 : vector<10x1xf32>
    %12 = vector.broadcast %11 : vector<10x1xf32> to vector<10x32xf32>
    %13 = arith.subf %4, %12 : vector<10x32xf32>
    %14 = arith.mulf %13, %13 : vector<10x32xf32>
    %cst_9 = arith.constant dense<0.000000e+00> : vector<10xf32>
    %15 = vector.multi_reduction <add>, %14, %cst_9 [1] : vector<10x32xf32> to vector<10xf32>
    %16 = vector.shape_cast %15 : vector<10xf32> to vector<10x1xf32>
    %cst_10 = arith.constant 3.200000e+01 : f32
    %17 = vector.broadcast %cst_10 : f32 to vector<10x1xf32>
    %18 = arith.divf %16, %17 : vector<10x1xf32>
    %19 = vector.broadcast %11 : vector<10x1xf32> to vector<10x32xf32>
    %20 = arith.subf %4, %19 : vector<10x32xf32>
    %cst_11 = arith.constant 9.99999997E-7 : f32
    %21 = vector.broadcast %cst_11 : f32 to vector<10x1xf32>
    %22 = arith.addf %18, %21 : vector<10x1xf32>
    %23 = math.rsqrt %22 : vector<10x1xf32>
    %24 = vector.broadcast %23 : vector<10x1xf32> to vector<10x32xf32>
    %25 = arith.mulf %20, %24 : vector<10x32xf32>
    %26 = vector.broadcast %6 : vector<1x32xf32> to vector<10x32xf32>
    %27 = arith.mulf %25, %26 : vector<10x32xf32>
    %28 = vector.broadcast %7 : vector<1x32xf32> to vector<10x32xf32>
    %29 = arith.addf %27, %28 : vector<10x32xf32>
    %c240 = arith.constant 240 : index
    %c0_12 = arith.constant 0 : index
    %30 = vector.load %arg2[%c240, %c0_12] : memref<1224x128xf32, #tpu.memory_space<vmem>>, vector<32x96xf32>
    %cst_13 = arith.constant dense<0.000000e+00> : vector<10x96xf32>
    %31 = tpu.matmul %29, %30, %cst_13 {dimension_numbers = #tpu.dot_dimension_numbers<[1], [0], [0], [1], [0, 0, 1, 1], [], []>} : vector<10x32xf32>, vector<32x96xf32>, vector<10x96xf32> -> vector<10x96xf32>
    %c272 = arith.constant 272 : index
    %c0_14 = arith.constant 0 : index
    %32 = vector.load %arg2[%c272, %c0_14] : memref<1224x128xf32, #tpu.memory_space<vmem>>, vector<1x96xf32>
    %33 = vector.broadcast %32 : vector<1x96xf32> to vector<10x96xf32>
    %34 = arith.addf %31, %33 : vector<10x96xf32>
    %35 = vector.extract_strided_slice %34 {offsets = [0, 0], sizes = [10, 32], strides = [1, 1]} : vector<10x96xf32> to vector<10x32xf32>
    %36 = vector.extract_strided_slice %34 {offsets = [0, 32], sizes = [10, 32], strides = [1, 1]} : vector<10x96xf32> to vector<10x32xf32>
    %37 = vector.extract_strided_slice %34 {offsets = [0, 64], sizes = [10, 32], strides = [1, 1]} : vector<10x96xf32> to vector<10x32xf32>
    %c280 = arith.constant 280 : index
    %c0_15 = arith.constant 0 : index
    %38 = vector.load %arg2[%c280, %c0_15] : memref<1224x128xf32, #tpu.memory_space<vmem>>, vector<32x32xf32>
    %cst_16 = arith.constant 0.000000e+00 : f32
    %39 = vector.broadcast %cst_16 : f32 to vector<10x32xf32>
    %40 = vector.extract_strided_slice %35 {offsets = [0, 0], sizes = [10, 8], strides = [1, 1]} : vector<10x32xf32> to vector<10x8xf32>
    %41 = vector.extract_strided_slice %36 {offsets = [0, 0], sizes = [10, 8], strides = [1, 1]} : vector<10x32xf32> to vector<10x8xf32>
    %cst_17 = arith.constant dense<0.000000e+00> : vector<10x10xf32>
    %42 = tpu.matmul %40, %41, %cst_17 {dimension_numbers = #tpu.dot_dimension_numbers<[1], [1], [0], [0], [0, 0, 1, 0], [], []>} : vector<10x8xf32>, vector<10x8xf32>, vector<10x10xf32> -> vector<10x10xf32>
    %43 = arith.addf %42, %5 : vector<10x10xf32>
    %cst_18 = arith.constant dense<0xFF800000> : vector<10xf32>
    %44 = vector.multi_reduction <maximumf>, %43, %cst_18 [1] : vector<10x10xf32> to vector<10xf32>
    %45 = vector.shape_cast %44 : vector<10xf32> to vector<10x1xf32>
    %46 = vector.broadcast %45 : vector<10x1xf32> to vector<10x10xf32>
    %47 = arith.subf %43, %46 : vector<10x10xf32>
    %48 = math.exp %47 : vector<10x10xf32>
    %cst_19 = arith.constant dense<0.000000e+00> : vector<10xf32>
    %49 = vector.multi_reduction <add>, %48, %cst_19 [1] : vector<10x10xf32> to vector<10xf32>
    %50 = vector.shape_cast %49 : vector<10xf32> to vector<10x1xf32>
    %51 = vector.broadcast %50 : vector<10x1xf32> to vector<10x10xf32>
    %52 = arith.divf %48, %51 : vector<10x10xf32>
    %53 = vector.extract_strided_slice %37 {offsets = [0, 0], sizes = [10, 8], strides = [1, 1]} : vector<10x32xf32> to vector<10x8xf32>
    %cst_20 = arith.constant dense<0.000000e+00> : vector<10x8xf32>
    %54 = tpu.matmul %52, %53, %cst_20 {dimension_numbers = #tpu.dot_dimension_numbers<[1], [0], [0], [1], [0, 0, 1, 1], [], []>} : vector<10x10xf32>, vector<10x8xf32>, vector<10x8xf32> -> vector<10x8xf32>
    %55 = vector.extract_strided_slice %38 {offsets = [0, 0], sizes = [8, 32], strides = [1, 1]} : vector<32x32xf32> to vector<8x32xf32>
    %cst_21 = arith.constant dense<0.000000e+00> : vector<10x32xf32>
    %56 = tpu.matmul %54, %55, %cst_21 {dimension_numbers = #tpu.dot_dimension_numbers<[1], [0], [0], [1], [0, 0, 1, 1], [], []>} : vector<10x8xf32>, vector<8x32xf32>, vector<10x32xf32> -> vector<10x32xf32>
    %57 = arith.addf %39, %56 : vector<10x32xf32>
    %58 = vector.extract_strided_slice %35 {offsets = [0, 8], sizes = [10, 8], strides = [1, 1]} : vector<10x32xf32> to vector<10x8xf32>
    %59 = vector.extract_strided_slice %36 {offsets = [0, 8], sizes = [10, 8], strides = [1, 1]} : vector<10x32xf32> to vector<10x8xf32>
    %cst_22 = arith.constant dense<0.000000e+00> : vector<10x10xf32>
    %60 = tpu.matmul %58, %59, %cst_22 {dimension_numbers = #tpu.dot_dimension_numbers<[1], [1], [0], [0], [0, 0, 1, 0], [], []>} : vector<10x8xf32>, vector<10x8xf32>, vector<10x10xf32> -> vector<10x10xf32>
    %61 = arith.addf %60, %5 : vector<10x10xf32>
    %cst_23 = arith.constant dense<0xFF800000> : vector<10xf32>
    %62 = vector.multi_reduction <maximumf>, %61, %cst_23 [1] : vector<10x10xf32> to vector<10xf32>
    %63 = vector.shape_cast %62 : vector<10xf32> to vector<10x1xf32>
    %64 = vector.broadcast %63 : vector<10x1xf32> to vector<10x10xf32>
    %65 = arith.subf %61, %64 : vector<10x10xf32>
    %66 = math.exp %65 : vector<10x10xf32>
    %cst_24 = arith.constant dense<0.000000e+00> : vector<10xf32>
    %67 = vector.multi_reduction <add>, %66, %cst_24 [1] : vector<10x10xf32> to vector<10xf32>
    %68 = vector.shape_cast %67 : vector<10xf32> to vector<10x1xf32>
    %69 = vector.broadcast %68 : vector<10x1xf32> to vector<10x10xf32>
    %70 = arith.divf %66, %69 : vector<10x10xf32>
    %71 = vector.extract_strided_slice %37 {offsets = [0, 8], sizes = [10, 8], strides = [1, 1]} : vector<10x32xf32> to vector<10x8xf32>
    %cst_25 = arith.constant dense<0.000000e+00> : vector<10x8xf32>
    %72 = tpu.matmul %70, %71, %cst_25 {dimension_numbers = #tpu.dot_dimension_numbers<[1], [0], [0], [1], [0, 0, 1, 1], [], []>} : vector<10x10xf32>, vector<10x8xf32>, vector<10x8xf32> -> vector<10x8xf32>
    %73 = vector.extract_strided_slice %38 {offsets = [8, 0], sizes = [8, 32], strides = [1, 1]} : vector<32x32xf32> to vector<8x32xf32>
    %cst_26 = arith.constant dense<0.000000e+00> : vector<10x32xf32>
    %74 = tpu.matmul %72, %73, %cst_26 {dimension_numbers = #tpu.dot_dimension_numbers<[1], [0], [0], [1], [0, 0, 1, 1], [], []>} : vector<10x8xf32>, vector<8x32xf32>, vector<10x32xf32> -> vector<10x32xf32>
    %75 = arith.addf %57, %74 : vector<10x32xf32>
    %76 = vector.extract_strided_slice %35 {offsets = [0, 16], sizes = [10, 8], strides = [1, 1]} : vector<10x32xf32> to vector<10x8xf32>
    %77 = vector.extract_strided_slice %36 {offsets = [0, 16], sizes = [10, 8], strides = [1, 1]} : vector<10x32xf32> to vector<10x8xf32>
    %cst_27 = arith.constant dense<0.000000e+00> : vector<10x10xf32>
    %78 = tpu.matmul %76, %77, %cst_27 {dimension_numbers = #tpu.dot_dimension_numbers<[1], [1], [0], [0], [0, 0, 1, 0], [], []>} : vector<10x8xf32>, vector<10x8xf32>, vector<10x10xf32> -> vector<10x10xf32>
    %79 = arith.addf %78, %5 : vector<10x10xf32>
    %cst_28 = arith.constant dense<0xFF800000> : vector<10xf32>
    %80 = vector.multi_reduction <maximumf>, %79, %cst_28 [1] : vector<10x10xf32> to vector<10xf32>
    %81 = vector.shape_cast %80 : vector<10xf32> to vector<10x1xf32>
    %82 = vector.broadcast %81 : vector<10x1xf32> to vector<10x10xf32>
    %83 = arith.subf %79, %82 : vector<10x10xf32>
    %84 = math.exp %83 : vector<10x10xf32>
    %cst_29 = arith.constant dense<0.000000e+00> : vector<10xf32>
    %85 = vector.multi_reduction <add>, %84, %cst_29 [1] : vector<10x10xf32> to vector<10xf32>
    %86 = vector.shape_cast %85 : vector<10xf32> to vector<10x1xf32>
    %87 = vector.broadcast %86 : vector<10x1xf32> to vector<10x10xf32>
    %88 = arith.divf %84, %87 : vector<10x10xf32>
    %89 = vector.extract_strided_slice %37 {offsets = [0, 16], sizes = [10, 8], strides = [1, 1]} : vector<10x32xf32> to vector<10x8xf32>
    %cst_30 = arith.constant dense<0.000000e+00> : vector<10x8xf32>
    %90 = tpu.matmul %88, %89, %cst_30 {dimension_numbers = #tpu.dot_dimension_numbers<[1], [0], [0], [1], [0, 0, 1, 1], [], []>} : vector<10x10xf32>, vector<10x8xf32>, vector<10x8xf32> -> vector<10x8xf32>
    %91 = vector.extract_strided_slice %38 {offsets = [16, 0], sizes = [8, 32], strides = [1, 1]} : vector<32x32xf32> to vector<8x32xf32>
    %cst_31 = arith.constant dense<0.000000e+00> : vector<10x32xf32>
    %92 = tpu.matmul %90, %91, %cst_31 {dimension_numbers = #tpu.dot_dimension_numbers<[1], [0], [0], [1], [0, 0, 1, 1], [], []>} : vector<10x8xf32>, vector<8x32xf32>, vector<10x32xf32> -> vector<10x32xf32>
    %93 = arith.addf %75, %92 : vector<10x32xf32>
    %94 = vector.extract_strided_slice %35 {offsets = [0, 24], sizes = [10, 8], strides = [1, 1]} : vector<10x32xf32> to vector<10x8xf32>
    %95 = vector.extract_strided_slice %36 {offsets = [0, 24], sizes = [10, 8], strides = [1, 1]} : vector<10x32xf32> to vector<10x8xf32>
    %cst_32 = arith.constant dense<0.000000e+00> : vector<10x10xf32>
    %96 = tpu.matmul %94, %95, %cst_32 {dimension_numbers = #tpu.dot_dimension_numbers<[1], [1], [0], [0], [0, 0, 1, 0], [], []>} : vector<10x8xf32>, vector<10x8xf32>, vector<10x10xf32> -> vector<10x10xf32>
    %97 = arith.addf %96, %5 : vector<10x10xf32>
    %cst_33 = arith.constant dense<0xFF800000> : vector<10xf32>
    %98 = vector.multi_reduction <maximumf>, %97, %cst_33 [1] : vector<10x10xf32> to vector<10xf32>
    %99 = vector.shape_cast %98 : vector<10xf32> to vector<10x1xf32>
    %100 = vector.broadcast %99 : vector<10x1xf32> to vector<10x10xf32>
    %101 = arith.subf %97, %100 : vector<10x10xf32>
    %102 = math.exp %101 : vector<10x10xf32>
    %cst_34 = arith.constant dense<0.000000e+00> : vector<10xf32>
    %103 = vector.multi_reduction <add>, %102, %cst_34 [1] : vector<10x10xf32> to vector<10xf32>
    %104 = vector.shape_cast %103 : vector<10xf32> to vector<10x1xf32>
    %105 = vector.broadcast %104 : vector<10x1xf32> to vector<10x10xf32>
    %106 = arith.divf %102, %105 : vector<10x10xf32>
    %107 = vector.extract_strided_slice %37 {offsets = [0, 24], sizes = [10, 8], strides = [1, 1]} : vector<10x32xf32> to vector<10x8xf32>
    %cst_35 = arith.constant dense<0.000000e+00> : vector<10x8xf32>
    %108 = tpu.matmul %106, %107, %cst_35 {dimension_numbers = #tpu.dot_dimension_numbers<[1], [0], [0], [1], [0, 0, 1, 1], [], []>} : vector<10x10xf32>, vector<10x8xf32>, vector<10x8xf32> -> vector<10x8xf32>
    %109 = vector.extract_strided_slice %38 {offsets = [24, 0], sizes = [8, 32], strides = [1, 1]} : vector<32x32xf32> to vector<8x32xf32>
    %cst_36 = arith.constant dense<0.000000e+00> : vector<10x32xf32>
    %110 = tpu.matmul %108, %109, %cst_36 {dimension_numbers = #tpu.dot_dimension_numbers<[1], [0], [0], [1], [0, 0, 1, 1], [], []>} : vector<10x8xf32>, vector<8x32xf32>, vector<10x32xf32> -> vector<10x32xf32>
    %111 = arith.addf %93, %110 : vector<10x32xf32>
    %112 = arith.addf %4, %111 : vector<10x32xf32>
    %c312 = arith.constant 312 : index
    %c0_37 = arith.constant 0 : index
    %113 = vector.load %arg2[%c312, %c0_37] : memref<1224x128xf32, #tpu.memory_space<vmem>>, vector<1x32xf32>
    %114 = vector.broadcast %113 : vector<1x32xf32> to vector<10x32xf32>
    %115 = arith.addf %112, %114 : vector<10x32xf32>
    %c320 = arith.constant 320 : index
    %c0_38 = arith.constant 0 : index
    %116 = vector.load %arg2[%c320, %c0_38] : memref<1224x128xf32, #tpu.memory_space<vmem>>, vector<1x32xf32>
    %c328 = arith.constant 328 : index
    %c0_39 = arith.constant 0 : index
    %117 = vector.load %arg2[%c328, %c0_39] : memref<1224x128xf32, #tpu.memory_space<vmem>>, vector<1x32xf32>
    %cst_40 = arith.constant dense<0.000000e+00> : vector<10xf32>
    %118 = vector.multi_reduction <add>, %115, %cst_40 [1] : vector<10x32xf32> to vector<10xf32>
    %119 = vector.shape_cast %118 : vector<10xf32> to vector<10x1xf32>
    %cst_41 = arith.constant 3.200000e+01 : f32
    %120 = vector.broadcast %cst_41 : f32 to vector<10x1xf32>
    %121 = arith.divf %119, %120 : vector<10x1xf32>
    %122 = vector.broadcast %121 : vector<10x1xf32> to vector<10x32xf32>
    %123 = arith.subf %115, %122 : vector<10x32xf32>
    %124 = arith.mulf %123, %123 : vector<10x32xf32>
    %cst_42 = arith.constant dense<0.000000e+00> : vector<10xf32>
    %125 = vector.multi_reduction <add>, %124, %cst_42 [1] : vector<10x32xf32> to vector<10xf32>
    %126 = vector.shape_cast %125 : vector<10xf32> to vector<10x1xf32>
    %cst_43 = arith.constant 3.200000e+01 : f32
    %127 = vector.broadcast %cst_43 : f32 to vector<10x1xf32>
    %128 = arith.divf %126, %127 : vector<10x1xf32>
    %129 = vector.broadcast %121 : vector<10x1xf32> to vector<10x32xf32>
    %130 = arith.subf %115, %129 : vector<10x32xf32>
    %cst_44 = arith.constant 9.99999997E-7 : f32
    %131 = vector.broadcast %cst_44 : f32 to vector<10x1xf32>
    %132 = arith.addf %128, %131 : vector<10x1xf32>
    %133 = math.rsqrt %132 : vector<10x1xf32>
    %134 = vector.broadcast %133 : vector<10x1xf32> to vector<10x32xf32>
    %135 = arith.mulf %130, %134 : vector<10x32xf32>
    %136 = vector.broadcast %116 : vector<1x32xf32> to vector<10x32xf32>
    %137 = arith.mulf %135, %136 : vector<10x32xf32>
    %138 = vector.broadcast %117 : vector<1x32xf32> to vector<10x32xf32>
    %139 = arith.addf %137, %138 : vector<10x32xf32>
    %c336 = arith.constant 336 : index
    %c0_45 = arith.constant 0 : index
    %140 = vector.load %arg2[%c336, %c0_45] : memref<1224x128xf32, #tpu.memory_space<vmem>>, vector<32x128xf32>
    %cst_46 = arith.constant dense<0.000000e+00> : vector<10x128xf32>
    %141 = tpu.matmul %139, %140, %cst_46 {dimension_numbers = #tpu.dot_dimension_numbers<[1], [0], [0], [1], [0, 0, 1, 1], [], []>} : vector<10x32xf32>, vector<32x128xf32>, vector<10x128xf32> -> vector<10x128xf32>
    %c368 = arith.constant 368 : index
    %c0_47 = arith.constant 0 : index
    %142 = vector.load %arg2[%c368, %c0_47] : memref<1224x128xf32, #tpu.memory_space<vmem>>, vector<1x128xf32>
    %143 = vector.broadcast %142 : vector<1x128xf32> to vector<10x128xf32>
    %144 = arith.addf %141, %143 : vector<10x128xf32>
    %cst_48 = arith.constant 5.000000e-01 : f32
    %145 = vector.broadcast %cst_48 : f32 to vector<10x128xf32>
    %146 = arith.mulf %145, %144 : vector<10x128xf32>
    %cst_49 = arith.constant 0.707106769 : f32
    %147 = vector.broadcast %cst_49 : f32 to vector<10x128xf32>
    %148 = arith.mulf %144, %147 : vector<10x128xf32>
    %cst_50 = arith.constant 0.000000e+00 : f32
    %149 = vector.broadcast %cst_50 : f32 to vector<10x128xf32>
    %150 = arith.cmpf oge, %148, %149 : vector<10x128xf32>
    %cst_51 = arith.constant 1.000000e+00 : f32
    %cst_52 = arith.constant -1.000000e+00 : f32
    %151 = vector.broadcast %cst_51 : f32 to vector<10x128xf32>
    %152 = vector.broadcast %cst_52 : f32 to vector<10x128xf32>
    %153 = arith.select %150, %151, %152 : vector<10x128xi1>, vector<10x128xf32>
    %154 = math.absf %148 : vector<10x128xf32>
    %cst_53 = arith.constant 0.327591091 : f32
    %155 = vector.broadcast %cst_53 : f32 to vector<10x128xf32>
    %156 = arith.mulf %155, %154 : vector<10x128xf32>
    %cst_54 = arith.constant 1.000000e+00 : f32
    %157 = vector.broadcast %cst_54 : f32 to vector<10x128xf32>
    %158 = arith.addf %157, %156 : vector<10x128xf32>
    %cst_55 = arith.constant 1.000000e+00 : f32
    %159 = vector.broadcast %cst_55 : f32 to vector<10x128xf32>
    %160 = arith.divf %159, %158 : vector<10x128xf32>
    %cst_56 = arith.constant 1.06140542 : f32
    %161 = vector.broadcast %cst_56 : f32 to vector<10x128xf32>
    %162 = arith.mulf %161, %160 : vector<10x128xf32>
    %cst_57 = arith.constant -1.45315206 : f32
    %163 = vector.broadcast %cst_57 : f32 to vector<10x128xf32>
    %164 = arith.addf %162, %163 : vector<10x128xf32>
    %165 = arith.mulf %164, %160 : vector<10x128xf32>
    %cst_58 = arith.constant 1.42141378 : f32
    %166 = vector.broadcast %cst_58 : f32 to vector<10x128xf32>
    %167 = arith.addf %165, %166 : vector<10x128xf32>
    %168 = arith.mulf %167, %160 : vector<10x128xf32>
    %cst_59 = arith.constant -0.284496725 : f32
    %169 = vector.broadcast %cst_59 : f32 to vector<10x128xf32>
    %170 = arith.addf %168, %169 : vector<10x128xf32>
    %171 = arith.mulf %170, %160 : vector<10x128xf32>
    %cst_60 = arith.constant 0.254829586 : f32
    %172 = vector.broadcast %cst_60 : f32 to vector<10x128xf32>
    %173 = arith.addf %171, %172 : vector<10x128xf32>
    %174 = arith.mulf %173, %160 : vector<10x128xf32>
    %cst_61 = arith.constant 0.000000e+00 : f32
    %175 = vector.broadcast %cst_61 : f32 to vector<10x128xf32>
    %176 = arith.subf %175, %154 : vector<10x128xf32>
    %177 = arith.mulf %176, %154 : vector<10x128xf32>
    %178 = math.exp %177 : vector<10x128xf32>
    %179 = arith.mulf %174, %178 : vector<10x128xf32>
    %cst_62 = arith.constant 1.000000e+00 : f32
    %180 = vector.broadcast %cst_62 : f32 to vector<10x128xf32>
    %181 = arith.subf %180, %179 : vector<10x128xf32>
    %182 = arith.mulf %153, %181 : vector<10x128xf32>
    %cst_63 = arith.constant 1.000000e+00 : f32
    %183 = vector.broadcast %cst_63 : f32 to vector<10x128xf32>
    %184 = arith.addf %183, %182 : vector<10x128xf32>
    %185 = arith.mulf %146, %184 : vector<10x128xf32>
    %c376 = arith.constant 376 : index
    %c0_64 = arith.constant 0 : index
    %186 = vector.load %arg2[%c376, %c0_64] : memref<1224x128xf32, #tpu.memory_space<vmem>>, vector<128x32xf32>
    %cst_65 = arith.constant dense<0.000000e+00> : vector<10x32xf32>
    %187 = tpu.matmul %185, %186, %cst_65 {dimension_numbers = #tpu.dot_dimension_numbers<[1], [0], [0], [1], [0, 0, 1, 1], [], []>} : vector<10x128xf32>, vector<128x32xf32>, vector<10x32xf32> -> vector<10x32xf32>
    %188 = arith.addf %115, %187 : vector<10x32xf32>
    %c504 = arith.constant 504 : index
    %c0_66 = arith.constant 0 : index
    %189 = vector.load %arg2[%c504, %c0_66] : memref<1224x128xf32, #tpu.memory_space<vmem>>, vector<1x32xf32>
    %190 = vector.broadcast %189 : vector<1x32xf32> to vector<10x32xf32>
    %191 = arith.addf %188, %190 : vector<10x32xf32>
    %c512 = arith.constant 512 : index
    %c0_67 = arith.constant 0 : index
    %192 = vector.load %arg2[%c512, %c0_67] : memref<1224x128xf32, #tpu.memory_space<vmem>>, vector<1x32xf32>
    %c520 = arith.constant 520 : index
    %c0_68 = arith.constant 0 : index
    %193 = vector.load %arg2[%c520, %c0_68] : memref<1224x128xf32, #tpu.memory_space<vmem>>, vector<1x32xf32>
    %cst_69 = arith.constant dense<0.000000e+00> : vector<10xf32>
    %194 = vector.multi_reduction <add>, %191, %cst_69 [1] : vector<10x32xf32> to vector<10xf32>
    %195 = vector.shape_cast %194 : vector<10xf32> to vector<10x1xf32>
    %cst_70 = arith.constant 3.200000e+01 : f32
    %196 = vector.broadcast %cst_70 : f32 to vector<10x1xf32>
    %197 = arith.divf %195, %196 : vector<10x1xf32>
    %198 = vector.broadcast %197 : vector<10x1xf32> to vector<10x32xf32>
    %199 = arith.subf %191, %198 : vector<10x32xf32>
    %200 = arith.mulf %199, %199 : vector<10x32xf32>
    %cst_71 = arith.constant dense<0.000000e+00> : vector<10xf32>
    %201 = vector.multi_reduction <add>, %200, %cst_71 [1] : vector<10x32xf32> to vector<10xf32>
    %202 = vector.shape_cast %201 : vector<10xf32> to vector<10x1xf32>
    %cst_72 = arith.constant 3.200000e+01 : f32
    %203 = vector.broadcast %cst_72 : f32 to vector<10x1xf32>
    %204 = arith.divf %202, %203 : vector<10x1xf32>
    %205 = vector.broadcast %197 : vector<10x1xf32> to vector<10x32xf32>
    %206 = arith.subf %191, %205 : vector<10x32xf32>
    %cst_73 = arith.constant 9.99999997E-7 : f32
    %207 = vector.broadcast %cst_73 : f32 to vector<10x1xf32>
    %208 = arith.addf %204, %207 : vector<10x1xf32>
    %209 = math.rsqrt %208 : vector<10x1xf32>
    %210 = vector.broadcast %209 : vector<10x1xf32> to vector<10x32xf32>
    %211 = arith.mulf %206, %210 : vector<10x32xf32>
    %212 = vector.broadcast %192 : vector<1x32xf32> to vector<10x32xf32>
    %213 = arith.mulf %211, %212 : vector<10x32xf32>
    %214 = vector.broadcast %193 : vector<1x32xf32> to vector<10x32xf32>
    %215 = arith.addf %213, %214 : vector<10x32xf32>
    %c528 = arith.constant 528 : index
    %c0_74 = arith.constant 0 : index
    %216 = vector.load %arg2[%c528, %c0_74] : memref<1224x128xf32, #tpu.memory_space<vmem>>, vector<32x96xf32>
    %cst_75 = arith.constant dense<0.000000e+00> : vector<10x96xf32>
    %217 = tpu.matmul %215, %216, %cst_75 {dimension_numbers = #tpu.dot_dimension_numbers<[1], [0], [0], [1], [0, 0, 1, 1], [], []>} : vector<10x32xf32>, vector<32x96xf32>, vector<10x96xf32> -> vector<10x96xf32>
    %c560 = arith.constant 560 : index
    %c0_76 = arith.constant 0 : index
    %218 = vector.load %arg2[%c560, %c0_76] : memref<1224x128xf32, #tpu.memory_space<vmem>>, vector<1x96xf32>
    %219 = vector.broadcast %218 : vector<1x96xf32> to vector<10x96xf32>
    %220 = arith.addf %217, %219 : vector<10x96xf32>
    %221 = vector.extract_strided_slice %220 {offsets = [0, 0], sizes = [10, 32], strides = [1, 1]} : vector<10x96xf32> to vector<10x32xf32>
    %222 = vector.extract_strided_slice %220 {offsets = [0, 32], sizes = [10, 32], strides = [1, 1]} : vector<10x96xf32> to vector<10x32xf32>
    %223 = vector.extract_strided_slice %220 {offsets = [0, 64], sizes = [10, 32], strides = [1, 1]} : vector<10x96xf32> to vector<10x32xf32>
    %c568 = arith.constant 568 : index
    %c0_77 = arith.constant 0 : index
    %224 = vector.load %arg2[%c568, %c0_77] : memref<1224x128xf32, #tpu.memory_space<vmem>>, vector<32x32xf32>
    %cst_78 = arith.constant 0.000000e+00 : f32
    %225 = vector.broadcast %cst_78 : f32 to vector<10x32xf32>
    %226 = vector.extract_strided_slice %221 {offsets = [0, 0], sizes = [10, 8], strides = [1, 1]} : vector<10x32xf32> to vector<10x8xf32>
    %227 = vector.extract_strided_slice %222 {offsets = [0, 0], sizes = [10, 8], strides = [1, 1]} : vector<10x32xf32> to vector<10x8xf32>
    %cst_79 = arith.constant dense<0.000000e+00> : vector<10x10xf32>
    %228 = tpu.matmul %226, %227, %cst_79 {dimension_numbers = #tpu.dot_dimension_numbers<[1], [1], [0], [0], [0, 0, 1, 0], [], []>} : vector<10x8xf32>, vector<10x8xf32>, vector<10x10xf32> -> vector<10x10xf32>
    %229 = arith.addf %228, %5 : vector<10x10xf32>
    %cst_80 = arith.constant dense<0xFF800000> : vector<10xf32>
    %230 = vector.multi_reduction <maximumf>, %229, %cst_80 [1] : vector<10x10xf32> to vector<10xf32>
    %231 = vector.shape_cast %230 : vector<10xf32> to vector<10x1xf32>
    %232 = vector.broadcast %231 : vector<10x1xf32> to vector<10x10xf32>
    %233 = arith.subf %229, %232 : vector<10x10xf32>
    %234 = math.exp %233 : vector<10x10xf32>
    %cst_81 = arith.constant dense<0.000000e+00> : vector<10xf32>
    %235 = vector.multi_reduction <add>, %234, %cst_81 [1] : vector<10x10xf32> to vector<10xf32>
    %236 = vector.shape_cast %235 : vector<10xf32> to vector<10x1xf32>
    %237 = vector.broadcast %236 : vector<10x1xf32> to vector<10x10xf32>
    %238 = arith.divf %234, %237 : vector<10x10xf32>
    %239 = vector.extract_strided_slice %223 {offsets = [0, 0], sizes = [10, 8], strides = [1, 1]} : vector<10x32xf32> to vector<10x8xf32>
    %cst_82 = arith.constant dense<0.000000e+00> : vector<10x8xf32>
    %240 = tpu.matmul %238, %239, %cst_82 {dimension_numbers = #tpu.dot_dimension_numbers<[1], [0], [0], [1], [0, 0, 1, 1], [], []>} : vector<10x10xf32>, vector<10x8xf32>, vector<10x8xf32> -> vector<10x8xf32>
    %241 = vector.extract_strided_slice %224 {offsets = [0, 0], sizes = [8, 32], strides = [1, 1]} : vector<32x32xf32> to vector<8x32xf32>
    %cst_83 = arith.constant dense<0.000000e+00> : vector<10x32xf32>
    %242 = tpu.matmul %240, %241, %cst_83 {dimension_numbers = #tpu.dot_dimension_numbers<[1], [0], [0], [1], [0, 0, 1, 1], [], []>} : vector<10x8xf32>, vector<8x32xf32>, vector<10x32xf32> -> vector<10x32xf32>
    %243 = arith.addf %225, %242 : vector<10x32xf32>
    %244 = vector.extract_strided_slice %221 {offsets = [0, 8], sizes = [10, 8], strides = [1, 1]} : vector<10x32xf32> to vector<10x8xf32>
    %245 = vector.extract_strided_slice %222 {offsets = [0, 8], sizes = [10, 8], strides = [1, 1]} : vector<10x32xf32> to vector<10x8xf32>
    %cst_84 = arith.constant dense<0.000000e+00> : vector<10x10xf32>
    %246 = tpu.matmul %244, %245, %cst_84 {dimension_numbers = #tpu.dot_dimension_numbers<[1], [1], [0], [0], [0, 0, 1, 0], [], []>} : vector<10x8xf32>, vector<10x8xf32>, vector<10x10xf32> -> vector<10x10xf32>
    %247 = arith.addf %246, %5 : vector<10x10xf32>
    %cst_85 = arith.constant dense<0xFF800000> : vector<10xf32>
    %248 = vector.multi_reduction <maximumf>, %247, %cst_85 [1] : vector<10x10xf32> to vector<10xf32>
    %249 = vector.shape_cast %248 : vector<10xf32> to vector<10x1xf32>
    %250 = vector.broadcast %249 : vector<10x1xf32> to vector<10x10xf32>
    %251 = arith.subf %247, %250 : vector<10x10xf32>
    %252 = math.exp %251 : vector<10x10xf32>
    %cst_86 = arith.constant dense<0.000000e+00> : vector<10xf32>
    %253 = vector.multi_reduction <add>, %252, %cst_86 [1] : vector<10x10xf32> to vector<10xf32>
    %254 = vector.shape_cast %253 : vector<10xf32> to vector<10x1xf32>
    %255 = vector.broadcast %254 : vector<10x1xf32> to vector<10x10xf32>
    %256 = arith.divf %252, %255 : vector<10x10xf32>
    %257 = vector.extract_strided_slice %223 {offsets = [0, 8], sizes = [10, 8], strides = [1, 1]} : vector<10x32xf32> to vector<10x8xf32>
    %cst_87 = arith.constant dense<0.000000e+00> : vector<10x8xf32>
    %258 = tpu.matmul %256, %257, %cst_87 {dimension_numbers = #tpu.dot_dimension_numbers<[1], [0], [0], [1], [0, 0, 1, 1], [], []>} : vector<10x10xf32>, vector<10x8xf32>, vector<10x8xf32> -> vector<10x8xf32>
    %259 = vector.extract_strided_slice %224 {offsets = [8, 0], sizes = [8, 32], strides = [1, 1]} : vector<32x32xf32> to vector<8x32xf32>
    %cst_88 = arith.constant dense<0.000000e+00> : vector<10x32xf32>
    %260 = tpu.matmul %258, %259, %cst_88 {dimension_numbers = #tpu.dot_dimension_numbers<[1], [0], [0], [1], [0, 0, 1, 1], [], []>} : vector<10x8xf32>, vector<8x32xf32>, vector<10x32xf32> -> vector<10x32xf32>
    %261 = arith.addf %243, %260 : vector<10x32xf32>
    %262 = vector.extract_strided_slice %221 {offsets = [0, 16], sizes = [10, 8], strides = [1, 1]} : vector<10x32xf32> to vector<10x8xf32>
    %263 = vector.extract_strided_slice %222 {offsets = [0, 16], sizes = [10, 8], strides = [1, 1]} : vector<10x32xf32> to vector<10x8xf32>
    %cst_89 = arith.constant dense<0.000000e+00> : vector<10x10xf32>
    %264 = tpu.matmul %262, %263, %cst_89 {dimension_numbers = #tpu.dot_dimension_numbers<[1], [1], [0], [0], [0, 0, 1, 0], [], []>} : vector<10x8xf32>, vector<10x8xf32>, vector<10x10xf32> -> vector<10x10xf32>
    %265 = arith.addf %264, %5 : vector<10x10xf32>
    %cst_90 = arith.constant dense<0xFF800000> : vector<10xf32>
    %266 = vector.multi_reduction <maximumf>, %265, %cst_90 [1] : vector<10x10xf32> to vector<10xf32>
    %267 = vector.shape_cast %266 : vector<10xf32> to vector<10x1xf32>
    %268 = vector.broadcast %267 : vector<10x1xf32> to vector<10x10xf32>
    %269 = arith.subf %265, %268 : vector<10x10xf32>
    %270 = math.exp %269 : vector<10x10xf32>
    %cst_91 = arith.constant dense<0.000000e+00> : vector<10xf32>
    %271 = vector.multi_reduction <add>, %270, %cst_91 [1] : vector<10x10xf32> to vector<10xf32>
    %272 = vector.shape_cast %271 : vector<10xf32> to vector<10x1xf32>
    %273 = vector.broadcast %272 : vector<10x1xf32> to vector<10x10xf32>
    %274 = arith.divf %270, %273 : vector<10x10xf32>
    %275 = vector.extract_strided_slice %223 {offsets = [0, 16], sizes = [10, 8], strides = [1, 1]} : vector<10x32xf32> to vector<10x8xf32>
    %cst_92 = arith.constant dense<0.000000e+00> : vector<10x8xf32>
    %276 = tpu.matmul %274, %275, %cst_92 {dimension_numbers = #tpu.dot_dimension_numbers<[1], [0], [0], [1], [0, 0, 1, 1], [], []>} : vector<10x10xf32>, vector<10x8xf32>, vector<10x8xf32> -> vector<10x8xf32>
    %277 = vector.extract_strided_slice %224 {offsets = [16, 0], sizes = [8, 32], strides = [1, 1]} : vector<32x32xf32> to vector<8x32xf32>
    %cst_93 = arith.constant dense<0.000000e+00> : vector<10x32xf32>
    %278 = tpu.matmul %276, %277, %cst_93 {dimension_numbers = #tpu.dot_dimension_numbers<[1], [0], [0], [1], [0, 0, 1, 1], [], []>} : vector<10x8xf32>, vector<8x32xf32>, vector<10x32xf32> -> vector<10x32xf32>
    %279 = arith.addf %261, %278 : vector<10x32xf32>
    %280 = vector.extract_strided_slice %221 {offsets = [0, 24], sizes = [10, 8], strides = [1, 1]} : vector<10x32xf32> to vector<10x8xf32>
    %281 = vector.extract_strided_slice %222 {offsets = [0, 24], sizes = [10, 8], strides = [1, 1]} : vector<10x32xf32> to vector<10x8xf32>
    %cst_94 = arith.constant dense<0.000000e+00> : vector<10x10xf32>
    %282 = tpu.matmul %280, %281, %cst_94 {dimension_numbers = #tpu.dot_dimension_numbers<[1], [1], [0], [0], [0, 0, 1, 0], [], []>} : vector<10x8xf32>, vector<10x8xf32>, vector<10x10xf32> -> vector<10x10xf32>
    %283 = arith.addf %282, %5 : vector<10x10xf32>
    %cst_95 = arith.constant dense<0xFF800000> : vector<10xf32>
    %284 = vector.multi_reduction <maximumf>, %283, %cst_95 [1] : vector<10x10xf32> to vector<10xf32>
    %285 = vector.shape_cast %284 : vector<10xf32> to vector<10x1xf32>
    %286 = vector.broadcast %285 : vector<10x1xf32> to vector<10x10xf32>
    %287 = arith.subf %283, %286 : vector<10x10xf32>
    %288 = math.exp %287 : vector<10x10xf32>
    %cst_96 = arith.constant dense<0.000000e+00> : vector<10xf32>
    %289 = vector.multi_reduction <add>, %288, %cst_96 [1] : vector<10x10xf32> to vector<10xf32>
    %290 = vector.shape_cast %289 : vector<10xf32> to vector<10x1xf32>
    %291 = vector.broadcast %290 : vector<10x1xf32> to vector<10x10xf32>
    %292 = arith.divf %288, %291 : vector<10x10xf32>
    %293 = vector.extract_strided_slice %223 {offsets = [0, 24], sizes = [10, 8], strides = [1, 1]} : vector<10x32xf32> to vector<10x8xf32>
    %cst_97 = arith.constant dense<0.000000e+00> : vector<10x8xf32>
    %294 = tpu.matmul %292, %293, %cst_97 {dimension_numbers = #tpu.dot_dimension_numbers<[1], [0], [0], [1], [0, 0, 1, 1], [], []>} : vector<10x10xf32>, vector<10x8xf32>, vector<10x8xf32> -> vector<10x8xf32>
    %295 = vector.extract_strided_slice %224 {offsets = [24, 0], sizes = [8, 32], strides = [1, 1]} : vector<32x32xf32> to vector<8x32xf32>
    %cst_98 = arith.constant dense<0.000000e+00> : vector<10x32xf32>
    %296 = tpu.matmul %294, %295, %cst_98 {dimension_numbers = #tpu.dot_dimension_numbers<[1], [0], [0], [1], [0, 0, 1, 1], [], []>} : vector<10x8xf32>, vector<8x32xf32>, vector<10x32xf32> -> vector<10x32xf32>
    %297 = arith.addf %279, %296 : vector<10x32xf32>
    %298 = arith.addf %191, %297 : vector<10x32xf32>
    %c600 = arith.constant 600 : index
    %c0_99 = arith.constant 0 : index
    %299 = vector.load %arg2[%c600, %c0_99] : memref<1224x128xf32, #tpu.memory_space<vmem>>, vector<1x32xf32>
    %300 = vector.broadcast %299 : vector<1x32xf32> to vector<10x32xf32>
    %301 = arith.addf %298, %300 : vector<10x32xf32>
    %c608 = arith.constant 608 : index
    %c0_100 = arith.constant 0 : index
    %302 = vector.load %arg2[%c608, %c0_100] : memref<1224x128xf32, #tpu.memory_space<vmem>>, vector<1x32xf32>
    %c616 = arith.constant 616 : index
    %c0_101 = arith.constant 0 : index
    %303 = vector.load %arg2[%c616, %c0_101] : memref<1224x128xf32, #tpu.memory_space<vmem>>, vector<1x32xf32>
    %cst_102 = arith.constant dense<0.000000e+00> : vector<10xf32>
    %304 = vector.multi_reduction <add>, %301, %cst_102 [1] : vector<10x32xf32> to vector<10xf32>
    %305 = vector.shape_cast %304 : vector<10xf32> to vector<10x1xf32>
    %cst_103 = arith.constant 3.200000e+01 : f32
    %306 = vector.broadcast %cst_103 : f32 to vector<10x1xf32>
    %307 = arith.divf %305, %306 : vector<10x1xf32>
    %308 = vector.broadcast %307 : vector<10x1xf32> to vector<10x32xf32>
    %309 = arith.subf %301, %308 : vector<10x32xf32>
    %310 = arith.mulf %309, %309 : vector<10x32xf32>
    %cst_104 = arith.constant dense<0.000000e+00> : vector<10xf32>
    %311 = vector.multi_reduction <add>, %310, %cst_104 [1] : vector<10x32xf32> to vector<10xf32>
    %312 = vector.shape_cast %311 : vector<10xf32> to vector<10x1xf32>
    %cst_105 = arith.constant 3.200000e+01 : f32
    %313 = vector.broadcast %cst_105 : f32 to vector<10x1xf32>
    %314 = arith.divf %312, %313 : vector<10x1xf32>
    %315 = vector.broadcast %307 : vector<10x1xf32> to vector<10x32xf32>
    %316 = arith.subf %301, %315 : vector<10x32xf32>
    %cst_106 = arith.constant 9.99999997E-7 : f32
    %317 = vector.broadcast %cst_106 : f32 to vector<10x1xf32>
    %318 = arith.addf %314, %317 : vector<10x1xf32>
    %319 = math.rsqrt %318 : vector<10x1xf32>
    %320 = vector.broadcast %319 : vector<10x1xf32> to vector<10x32xf32>
    %321 = arith.mulf %316, %320 : vector<10x32xf32>
    %322 = vector.broadcast %302 : vector<1x32xf32> to vector<10x32xf32>
    %323 = arith.mulf %321, %322 : vector<10x32xf32>
    %324 = vector.broadcast %303 : vector<1x32xf32> to vector<10x32xf32>
    %325 = arith.addf %323, %324 : vector<10x32xf32>
    %c624 = arith.constant 624 : index
    %c0_107 = arith.constant 0 : index
    %326 = vector.load %arg2[%c624, %c0_107] : memref<1224x128xf32, #tpu.memory_space<vmem>>, vector<32x128xf32>
    %cst_108 = arith.constant dense<0.000000e+00> : vector<10x128xf32>
    %327 = tpu.matmul %325, %326, %cst_108 {dimension_numbers = #tpu.dot_dimension_numbers<[1], [0], [0], [1], [0, 0, 1, 1], [], []>} : vector<10x32xf32>, vector<32x128xf32>, vector<10x128xf32> -> vector<10x128xf32>
    %c656 = arith.constant 656 : index
    %c0_109 = arith.constant 0 : index
    %328 = vector.load %arg2[%c656, %c0_109] : memref<1224x128xf32, #tpu.memory_space<vmem>>, vector<1x128xf32>
    %329 = vector.broadcast %328 : vector<1x128xf32> to vector<10x128xf32>
    %330 = arith.addf %327, %329 : vector<10x128xf32>
    %cst_110 = arith.constant 5.000000e-01 : f32
    %331 = vector.broadcast %cst_110 : f32 to vector<10x128xf32>
    %332 = arith.mulf %331, %330 : vector<10x128xf32>
    %cst_111 = arith.constant 0.707106769 : f32
    %333 = vector.broadcast %cst_111 : f32 to vector<10x128xf32>
    %334 = arith.mulf %330, %333 : vector<10x128xf32>
    %cst_112 = arith.constant 0.000000e+00 : f32
    %335 = vector.broadcast %cst_112 : f32 to vector<10x128xf32>
    %336 = arith.cmpf oge, %334, %335 : vector<10x128xf32>
    %cst_113 = arith.constant 1.000000e+00 : f32
    %cst_114 = arith.constant -1.000000e+00 : f32
    %337 = vector.broadcast %cst_113 : f32 to vector<10x128xf32>
    %338 = vector.broadcast %cst_114 : f32 to vector<10x128xf32>
    %339 = arith.select %336, %337, %338 : vector<10x128xi1>, vector<10x128xf32>
    %340 = math.absf %334 : vector<10x128xf32>
    %cst_115 = arith.constant 0.327591091 : f32
    %341 = vector.broadcast %cst_115 : f32 to vector<10x128xf32>
    %342 = arith.mulf %341, %340 : vector<10x128xf32>
    %cst_116 = arith.constant 1.000000e+00 : f32
    %343 = vector.broadcast %cst_116 : f32 to vector<10x128xf32>
    %344 = arith.addf %343, %342 : vector<10x128xf32>
    %cst_117 = arith.constant 1.000000e+00 : f32
    %345 = vector.broadcast %cst_117 : f32 to vector<10x128xf32>
    %346 = arith.divf %345, %344 : vector<10x128xf32>
    %cst_118 = arith.constant 1.06140542 : f32
    %347 = vector.broadcast %cst_118 : f32 to vector<10x128xf32>
    %348 = arith.mulf %347, %346 : vector<10x128xf32>
    %cst_119 = arith.constant -1.45315206 : f32
    %349 = vector.broadcast %cst_119 : f32 to vector<10x128xf32>
    %350 = arith.addf %348, %349 : vector<10x128xf32>
    %351 = arith.mulf %350, %346 : vector<10x128xf32>
    %cst_120 = arith.constant 1.42141378 : f32
    %352 = vector.broadcast %cst_120 : f32 to vector<10x128xf32>
    %353 = arith.addf %351, %352 : vector<10x128xf32>
    %354 = arith.mulf %353, %346 : vector<10x128xf32>
    %cst_121 = arith.constant -0.284496725 : f32
    %355 = vector.broadcast %cst_121 : f32 to vector<10x128xf32>
    %356 = arith.addf %354, %355 : vector<10x128xf32>
    %357 = arith.mulf %356, %346 : vector<10x128xf32>
    %cst_122 = arith.constant 0.254829586 : f32
    %358 = vector.broadcast %cst_122 : f32 to vector<10x128xf32>
    %359 = arith.addf %357, %358 : vector<10x128xf32>
    %360 = arith.mulf %359, %346 : vector<10x128xf32>
    %cst_123 = arith.constant 0.000000e+00 : f32
    %361 = vector.broadcast %cst_123 : f32 to vector<10x128xf32>
    %362 = arith.subf %361, %340 : vector<10x128xf32>
    %363 = arith.mulf %362, %340 : vector<10x128xf32>
    %364 = math.exp %363 : vector<10x128xf32>
    %365 = arith.mulf %360, %364 : vector<10x128xf32>
    %cst_124 = arith.constant 1.000000e+00 : f32
    %366 = vector.broadcast %cst_124 : f32 to vector<10x128xf32>
    %367 = arith.subf %366, %365 : vector<10x128xf32>
    %368 = arith.mulf %339, %367 : vector<10x128xf32>
    %cst_125 = arith.constant 1.000000e+00 : f32
    %369 = vector.broadcast %cst_125 : f32 to vector<10x128xf32>
    %370 = arith.addf %369, %368 : vector<10x128xf32>
    %371 = arith.mulf %332, %370 : vector<10x128xf32>
    %c664 = arith.constant 664 : index
    %c0_126 = arith.constant 0 : index
    %372 = vector.load %arg2[%c664, %c0_126] : memref<1224x128xf32, #tpu.memory_space<vmem>>, vector<128x32xf32>
    %cst_127 = arith.constant dense<0.000000e+00> : vector<10x32xf32>
    %373 = tpu.matmul %371, %372, %cst_127 {dimension_numbers = #tpu.dot_dimension_numbers<[1], [0], [0], [1], [0, 0, 1, 1], [], []>} : vector<10x128xf32>, vector<128x32xf32>, vector<10x32xf32> -> vector<10x32xf32>
    %374 = arith.addf %301, %373 : vector<10x32xf32>
    %c792 = arith.constant 792 : index
    %c0_128 = arith.constant 0 : index
    %375 = vector.load %arg2[%c792, %c0_128] : memref<1224x128xf32, #tpu.memory_space<vmem>>, vector<1x32xf32>
    %376 = vector.broadcast %375 : vector<1x32xf32> to vector<10x32xf32>
    %377 = arith.addf %374, %376 : vector<10x32xf32>
    %c800 = arith.constant 800 : index
    %c0_129 = arith.constant 0 : index
    %378 = vector.load %arg2[%c800, %c0_129] : memref<1224x128xf32, #tpu.memory_space<vmem>>, vector<1x32xf32>
    %c808 = arith.constant 808 : index
    %c0_130 = arith.constant 0 : index
    %379 = vector.load %arg2[%c808, %c0_130] : memref<1224x128xf32, #tpu.memory_space<vmem>>, vector<1x32xf32>
    %cst_131 = arith.constant dense<0.000000e+00> : vector<10xf32>
    %380 = vector.multi_reduction <add>, %377, %cst_131 [1] : vector<10x32xf32> to vector<10xf32>
    %381 = vector.shape_cast %380 : vector<10xf32> to vector<10x1xf32>
    %cst_132 = arith.constant 3.200000e+01 : f32
    %382 = vector.broadcast %cst_132 : f32 to vector<10x1xf32>
    %383 = arith.divf %381, %382 : vector<10x1xf32>
    %384 = vector.broadcast %383 : vector<10x1xf32> to vector<10x32xf32>
    %385 = arith.subf %377, %384 : vector<10x32xf32>
    %386 = arith.mulf %385, %385 : vector<10x32xf32>
    %cst_133 = arith.constant dense<0.000000e+00> : vector<10xf32>
    %387 = vector.multi_reduction <add>, %386, %cst_133 [1] : vector<10x32xf32> to vector<10xf32>
    %388 = vector.shape_cast %387 : vector<10xf32> to vector<10x1xf32>
    %cst_134 = arith.constant 3.200000e+01 : f32
    %389 = vector.broadcast %cst_134 : f32 to vector<10x1xf32>
    %390 = arith.divf %388, %389 : vector<10x1xf32>
    %391 = vector.broadcast %383 : vector<10x1xf32> to vector<10x32xf32>
    %392 = arith.subf %377, %391 : vector<10x32xf32>
    %cst_135 = arith.constant 9.99999997E-7 : f32
    %393 = vector.broadcast %cst_135 : f32 to vector<10x1xf32>
    %394 = arith.addf %390, %393 : vector<10x1xf32>
    %395 = math.rsqrt %394 : vector<10x1xf32>
    %396 = vector.broadcast %395 : vector<10x1xf32> to vector<10x32xf32>
    %397 = arith.mulf %392, %396 : vector<10x32xf32>
    %398 = vector.broadcast %378 : vector<1x32xf32> to vector<10x32xf32>
    %399 = arith.mulf %397, %398 : vector<10x32xf32>
    %400 = vector.broadcast %379 : vector<1x32xf32> to vector<10x32xf32>
    %401 = arith.addf %399, %400 : vector<10x32xf32>
    %c872 = arith.constant 872 : index
    %c0_136 = arith.constant 0 : index
    %402 = vector.load %arg2[%c872, %c0_136] : memref<1224x128xf32, #tpu.memory_space<vmem>>, vector<1x32xf32>
    %c880 = arith.constant 880 : index
    %c0_137 = arith.constant 0 : index
    %403 = vector.load %arg2[%c880, %c0_137] : memref<1224x128xf32, #tpu.memory_space<vmem>>, vector<1x32xf32>
    %c888 = arith.constant 888 : index
    %c0_138 = arith.constant 0 : index
    %404 = vector.load %arg2[%c888, %c0_138] : memref<1224x128xf32, #tpu.memory_space<vmem>>, vector<32x32xf32>
    %c920 = arith.constant 920 : index
    %c0_139 = arith.constant 0 : index
    %405 = vector.load %arg2[%c920, %c0_139] : memref<1224x128xf32, #tpu.memory_space<vmem>>, vector<1x32xf32>
    %c928 = arith.constant 928 : index
    %c0_140 = arith.constant 0 : index
    %406 = vector.load %arg2[%c928, %c0_140] : memref<1224x128xf32, #tpu.memory_space<vmem>>, vector<32x64xf32>
    %c960 = arith.constant 960 : index
    %c0_141 = arith.constant 0 : index
    %407 = vector.load %arg2[%c960, %c0_141] : memref<1224x128xf32, #tpu.memory_space<vmem>>, vector<64x32xf32>
    %c1024 = arith.constant 1024 : index
    %c0_142 = arith.constant 0 : index
    %408 = vector.load %arg2[%c1024, %c0_142] : memref<1224x128xf32, #tpu.memory_space<vmem>>, vector<64x64xf32>
    %c1088 = arith.constant 1088 : index
    %c0_143 = arith.constant 0 : index
    %409 = vector.load %arg2[%c1088, %c0_143] : memref<1224x128xf32, #tpu.memory_space<vmem>>, vector<1x32xf32>
    %c1096 = arith.constant 1096 : index
    %c0_144 = arith.constant 0 : index
    %410 = vector.load %arg2[%c1096, %c0_144] : memref<1224x128xf32, #tpu.memory_space<vmem>>, vector<1x32xf32>
    %c1104 = arith.constant 1104 : index
    %c0_145 = arith.constant 0 : index
    %411 = vector.load %arg2[%c1104, %c0_145] : memref<1224x128xf32, #tpu.memory_space<vmem>>, vector<1x32xf32>
    %c1112 = arith.constant 1112 : index
    %c0_146 = arith.constant 0 : index
    %412 = vector.load %arg2[%c1112, %c0_146] : memref<1224x128xf32, #tpu.memory_space<vmem>>, vector<32x64xf32>
    %c1144 = arith.constant 1144 : index
    %c0_147 = arith.constant 0 : index
    %413 = vector.load %arg2[%c1144, %c0_147] : memref<1224x128xf32, #tpu.memory_space<vmem>>, vector<1x64xf32>
    %c1152 = arith.constant 1152 : index
    %c0_148 = arith.constant 0 : index
    %414 = vector.load %arg2[%c1152, %c0_148] : memref<1224x128xf32, #tpu.memory_space<vmem>>, vector<64x32xf32>
    %c1216 = arith.constant 1216 : index
    %c0_149 = arith.constant 0 : index
    %415 = vector.load %arg2[%c1216, %c0_149] : memref<1224x128xf32, #tpu.memory_space<vmem>>, vector<1x32xf32>
    %cst_150 = arith.constant dense<0.000000e+00> : vector<10xf32>
    %416 = vector.multi_reduction <add>, %401, %cst_150 [1] : vector<10x32xf32> to vector<10xf32>
    %417 = vector.shape_cast %416 : vector<10xf32> to vector<10x1xf32>
    %cst_151 = arith.constant 3.200000e+01 : f32
    %418 = vector.broadcast %cst_151 : f32 to vector<10x1xf32>
    %419 = arith.divf %417, %418 : vector<10x1xf32>
    %420 = vector.broadcast %419 : vector<10x1xf32> to vector<10x32xf32>
    %421 = arith.subf %401, %420 : vector<10x32xf32>
    %422 = arith.mulf %421, %421 : vector<10x32xf32>
    %cst_152 = arith.constant dense<0.000000e+00> : vector<10xf32>
    %423 = vector.multi_reduction <add>, %422, %cst_152 [1] : vector<10x32xf32> to vector<10xf32>
    %424 = vector.shape_cast %423 : vector<10xf32> to vector<10x1xf32>
    %cst_153 = arith.constant 3.200000e+01 : f32
    %425 = vector.broadcast %cst_153 : f32 to vector<10x1xf32>
    %426 = arith.divf %424, %425 : vector<10x1xf32>
    %427 = vector.broadcast %419 : vector<10x1xf32> to vector<10x32xf32>
    %428 = arith.subf %401, %427 : vector<10x32xf32>
    %cst_154 = arith.constant 9.99999997E-7 : f32
    %429 = vector.broadcast %cst_154 : f32 to vector<10x1xf32>
    %430 = arith.addf %426, %429 : vector<10x1xf32>
    %431 = math.rsqrt %430 : vector<10x1xf32>
    %432 = vector.broadcast %431 : vector<10x1xf32> to vector<10x32xf32>
    %433 = arith.mulf %428, %432 : vector<10x32xf32>
    %434 = vector.broadcast %402 : vector<1x32xf32> to vector<10x32xf32>
    %435 = arith.mulf %433, %434 : vector<10x32xf32>
    %436 = vector.broadcast %403 : vector<1x32xf32> to vector<10x32xf32>
    %437 = arith.addf %435, %436 : vector<10x32xf32>
    %cst_155 = arith.constant dense<0.000000e+00> : vector<10x32xf32>
    %438 = tpu.matmul %437, %404, %cst_155 {dimension_numbers = #tpu.dot_dimension_numbers<[1], [0], [0], [1], [0, 0, 1, 1], [], []>} : vector<10x32xf32>, vector<32x32xf32>, vector<10x32xf32> -> vector<10x32xf32>
    %439 = vector.broadcast %405 : vector<1x32xf32> to vector<10x32xf32>
    %440 = arith.addf %438, %439 : vector<10x32xf32>
    %cst_156 = arith.constant dense<0.000000e+00> : vector<10x64xf32>
    %441 = tpu.matmul %440, %406, %cst_156 {dimension_numbers = #tpu.dot_dimension_numbers<[1], [0], [0], [1], [0, 0, 1, 1], [], []>} : vector<10x32xf32>, vector<32x64xf32>, vector<10x64xf32> -> vector<10x64xf32>
    %cst_157 = arith.constant dense<0xFF800000> : vector<10xf32>
    %442 = vector.multi_reduction <maximumf>, %441, %cst_157 [1] : vector<10x64xf32> to vector<10xf32>
    %443 = vector.shape_cast %442 : vector<10xf32> to vector<10x1xf32>
    %444 = vector.broadcast %443 : vector<10x1xf32> to vector<10x64xf32>
    %445 = arith.subf %441, %444 : vector<10x64xf32>
    %446 = math.exp %445 : vector<10x64xf32>
    %cst_158 = arith.constant dense<0.000000e+00> : vector<10x64xf32>
    %447 = tpu.matmul %446, %408, %cst_158 {dimension_numbers = #tpu.dot_dimension_numbers<[1], [0], [0], [1], [0, 0, 1, 1], [], []>} : vector<10x64xf32>, vector<64x64xf32>, vector<10x64xf32> -> vector<10x64xf32>
    %448 = arith.divf %446, %447 : vector<10x64xf32>
    %cst_159 = arith.constant dense<0.000000e+00> : vector<10x32xf32>
    %449 = tpu.matmul %448, %407, %cst_159 {dimension_numbers = #tpu.dot_dimension_numbers<[1], [0], [0], [1], [0, 0, 1, 1], [], []>} : vector<10x64xf32>, vector<64x32xf32>, vector<10x32xf32> -> vector<10x32xf32>
    %450 = arith.addf %401, %449 : vector<10x32xf32>
    %451 = vector.broadcast %409 : vector<1x32xf32> to vector<10x32xf32>
    %452 = arith.addf %450, %451 : vector<10x32xf32>
    %cst_160 = arith.constant dense<0.000000e+00> : vector<10xf32>
    %453 = vector.multi_reduction <add>, %452, %cst_160 [1] : vector<10x32xf32> to vector<10xf32>
    %454 = vector.shape_cast %453 : vector<10xf32> to vector<10x1xf32>
    %cst_161 = arith.constant 3.200000e+01 : f32
    %455 = vector.broadcast %cst_161 : f32 to vector<10x1xf32>
    %456 = arith.divf %454, %455 : vector<10x1xf32>
    %457 = vector.broadcast %456 : vector<10x1xf32> to vector<10x32xf32>
    %458 = arith.subf %452, %457 : vector<10x32xf32>
    %459 = arith.mulf %458, %458 : vector<10x32xf32>
    %cst_162 = arith.constant dense<0.000000e+00> : vector<10xf32>
    %460 = vector.multi_reduction <add>, %459, %cst_162 [1] : vector<10x32xf32> to vector<10xf32>
    %461 = vector.shape_cast %460 : vector<10xf32> to vector<10x1xf32>
    %cst_163 = arith.constant 3.200000e+01 : f32
    %462 = vector.broadcast %cst_163 : f32 to vector<10x1xf32>
    %463 = arith.divf %461, %462 : vector<10x1xf32>
    %464 = vector.broadcast %456 : vector<10x1xf32> to vector<10x32xf32>
    %465 = arith.subf %452, %464 : vector<10x32xf32>
    %cst_164 = arith.constant 9.99999997E-7 : f32
    %466 = vector.broadcast %cst_164 : f32 to vector<10x1xf32>
    %467 = arith.addf %463, %466 : vector<10x1xf32>
    %468 = math.rsqrt %467 : vector<10x1xf32>
    %469 = vector.broadcast %468 : vector<10x1xf32> to vector<10x32xf32>
    %470 = arith.mulf %465, %469 : vector<10x32xf32>
    %471 = vector.broadcast %410 : vector<1x32xf32> to vector<10x32xf32>
    %472 = arith.mulf %470, %471 : vector<10x32xf32>
    %473 = vector.broadcast %411 : vector<1x32xf32> to vector<10x32xf32>
    %474 = arith.addf %472, %473 : vector<10x32xf32>
    %cst_165 = arith.constant dense<0.000000e+00> : vector<10x64xf32>
    %475 = tpu.matmul %474, %412, %cst_165 {dimension_numbers = #tpu.dot_dimension_numbers<[1], [0], [0], [1], [0, 0, 1, 1], [], []>} : vector<10x32xf32>, vector<32x64xf32>, vector<10x64xf32> -> vector<10x64xf32>
    %476 = vector.broadcast %413 : vector<1x64xf32> to vector<10x64xf32>
    %477 = arith.addf %475, %476 : vector<10x64xf32>
    %cst_166 = arith.constant 5.000000e-01 : f32
    %478 = vector.broadcast %cst_166 : f32 to vector<10x64xf32>
    %479 = arith.mulf %478, %477 : vector<10x64xf32>
    %cst_167 = arith.constant 0.707106769 : f32
    %480 = vector.broadcast %cst_167 : f32 to vector<10x64xf32>
    %481 = arith.mulf %477, %480 : vector<10x64xf32>
    %cst_168 = arith.constant 0.000000e+00 : f32
    %482 = vector.broadcast %cst_168 : f32 to vector<10x64xf32>
    %483 = arith.cmpf oge, %481, %482 : vector<10x64xf32>
    %cst_169 = arith.constant 1.000000e+00 : f32
    %cst_170 = arith.constant -1.000000e+00 : f32
    %484 = vector.broadcast %cst_169 : f32 to vector<10x64xf32>
    %485 = vector.broadcast %cst_170 : f32 to vector<10x64xf32>
    %486 = arith.select %483, %484, %485 : vector<10x64xi1>, vector<10x64xf32>
    %487 = math.absf %481 : vector<10x64xf32>
    %cst_171 = arith.constant 0.327591091 : f32
    %488 = vector.broadcast %cst_171 : f32 to vector<10x64xf32>
    %489 = arith.mulf %488, %487 : vector<10x64xf32>
    %cst_172 = arith.constant 1.000000e+00 : f32
    %490 = vector.broadcast %cst_172 : f32 to vector<10x64xf32>
    %491 = arith.addf %490, %489 : vector<10x64xf32>
    %cst_173 = arith.constant 1.000000e+00 : f32
    %492 = vector.broadcast %cst_173 : f32 to vector<10x64xf32>
    %493 = arith.divf %492, %491 : vector<10x64xf32>
    %cst_174 = arith.constant 1.06140542 : f32
    %494 = vector.broadcast %cst_174 : f32 to vector<10x64xf32>
    %495 = arith.mulf %494, %493 : vector<10x64xf32>
    %cst_175 = arith.constant -1.45315206 : f32
    %496 = vector.broadcast %cst_175 : f32 to vector<10x64xf32>
    %497 = arith.addf %495, %496 : vector<10x64xf32>
    %498 = arith.mulf %497, %493 : vector<10x64xf32>
    %cst_176 = arith.constant 1.42141378 : f32
    %499 = vector.broadcast %cst_176 : f32 to vector<10x64xf32>
    %500 = arith.addf %498, %499 : vector<10x64xf32>
    %501 = arith.mulf %500, %493 : vector<10x64xf32>
    %cst_177 = arith.constant -0.284496725 : f32
    %502 = vector.broadcast %cst_177 : f32 to vector<10x64xf32>
    %503 = arith.addf %501, %502 : vector<10x64xf32>
    %504 = arith.mulf %503, %493 : vector<10x64xf32>
    %cst_178 = arith.constant 0.254829586 : f32
    %505 = vector.broadcast %cst_178 : f32 to vector<10x64xf32>
    %506 = arith.addf %504, %505 : vector<10x64xf32>
    %507 = arith.mulf %506, %493 : vector<10x64xf32>
    %cst_179 = arith.constant 0.000000e+00 : f32
    %508 = vector.broadcast %cst_179 : f32 to vector<10x64xf32>
    %509 = arith.subf %508, %487 : vector<10x64xf32>
    %510 = arith.mulf %509, %487 : vector<10x64xf32>
    %511 = math.exp %510 : vector<10x64xf32>
    %512 = arith.mulf %507, %511 : vector<10x64xf32>
    %cst_180 = arith.constant 1.000000e+00 : f32
    %513 = vector.broadcast %cst_180 : f32 to vector<10x64xf32>
    %514 = arith.subf %513, %512 : vector<10x64xf32>
    %515 = arith.mulf %486, %514 : vector<10x64xf32>
    %cst_181 = arith.constant 1.000000e+00 : f32
    %516 = vector.broadcast %cst_181 : f32 to vector<10x64xf32>
    %517 = arith.addf %516, %515 : vector<10x64xf32>
    %518 = arith.mulf %479, %517 : vector<10x64xf32>
    %cst_182 = arith.constant dense<0.000000e+00> : vector<10x32xf32>
    %519 = tpu.matmul %518, %414, %cst_182 {dimension_numbers = #tpu.dot_dimension_numbers<[1], [0], [0], [1], [0, 0, 1, 1], [], []>} : vector<10x64xf32>, vector<64x32xf32>, vector<10x32xf32> -> vector<10x32xf32>
    %520 = arith.addf %452, %519 : vector<10x32xf32>
    %521 = vector.broadcast %415 : vector<1x32xf32> to vector<10x32xf32>
    %522 = arith.addf %520, %521 : vector<10x32xf32>
    %cst_183 = arith.constant dense<0.000000e+00> : vector<10xf32>
    %523 = vector.multi_reduction <add>, %522, %cst_183 [1] : vector<10x32xf32> to vector<10xf32>
    %524 = vector.shape_cast %523 : vector<10xf32> to vector<10x1xf32>
    %cst_184 = arith.constant 3.200000e+01 : f32
    %525 = vector.broadcast %cst_184 : f32 to vector<10x1xf32>
    %526 = arith.divf %524, %525 : vector<10x1xf32>
    %527 = vector.broadcast %526 : vector<10x1xf32> to vector<10x32xf32>
    %528 = arith.subf %522, %527 : vector<10x32xf32>
    %529 = arith.mulf %528, %528 : vector<10x32xf32>
    %cst_185 = arith.constant dense<0.000000e+00> : vector<10xf32>
    %530 = vector.multi_reduction <add>, %529, %cst_185 [1] : vector<10x32xf32> to vector<10xf32>
    %531 = vector.shape_cast %530 : vector<10xf32> to vector<10x1xf32>
    %cst_186 = arith.constant 3.200000e+01 : f32
    %532 = vector.broadcast %cst_186 : f32 to vector<10x1xf32>
    %533 = arith.divf %531, %532 : vector<10x1xf32>
    %534 = vector.broadcast %526 : vector<10x1xf32> to vector<10x32xf32>
    %535 = arith.subf %522, %534 : vector<10x32xf32>
    %cst_187 = arith.constant 9.99999997E-7 : f32
    %536 = vector.broadcast %cst_187 : f32 to vector<10x1xf32>
    %537 = arith.addf %533, %536 : vector<10x1xf32>
    %538 = math.rsqrt %537 : vector<10x1xf32>
    %539 = vector.broadcast %538 : vector<10x1xf32> to vector<10x32xf32>
    %540 = arith.mulf %535, %539 : vector<10x32xf32>
    %541 = vector.broadcast %402 : vector<1x32xf32> to vector<10x32xf32>
    %542 = arith.mulf %540, %541 : vector<10x32xf32>
    %543 = vector.broadcast %403 : vector<1x32xf32> to vector<10x32xf32>
    %544 = arith.addf %542, %543 : vector<10x32xf32>
    %cst_188 = arith.constant dense<0.000000e+00> : vector<10x32xf32>
    %545 = tpu.matmul %544, %404, %cst_188 {dimension_numbers = #tpu.dot_dimension_numbers<[1], [0], [0], [1], [0, 0, 1, 1], [], []>} : vector<10x32xf32>, vector<32x32xf32>, vector<10x32xf32> -> vector<10x32xf32>
    %546 = vector.broadcast %405 : vector<1x32xf32> to vector<10x32xf32>
    %547 = arith.addf %545, %546 : vector<10x32xf32>
    %cst_189 = arith.constant dense<0.000000e+00> : vector<10x64xf32>
    %548 = tpu.matmul %547, %406, %cst_189 {dimension_numbers = #tpu.dot_dimension_numbers<[1], [0], [0], [1], [0, 0, 1, 1], [], []>} : vector<10x32xf32>, vector<32x64xf32>, vector<10x64xf32> -> vector<10x64xf32>
    %cst_190 = arith.constant dense<0xFF800000> : vector<10xf32>
    %549 = vector.multi_reduction <maximumf>, %548, %cst_190 [1] : vector<10x64xf32> to vector<10xf32>
    %550 = vector.shape_cast %549 : vector<10xf32> to vector<10x1xf32>
    %551 = vector.broadcast %550 : vector<10x1xf32> to vector<10x64xf32>
    %552 = arith.subf %548, %551 : vector<10x64xf32>
    %553 = math.exp %552 : vector<10x64xf32>
    %cst_191 = arith.constant dense<0.000000e+00> : vector<10x64xf32>
    %554 = tpu.matmul %553, %408, %cst_191 {dimension_numbers = #tpu.dot_dimension_numbers<[1], [0], [0], [1], [0, 0, 1, 1], [], []>} : vector<10x64xf32>, vector<64x64xf32>, vector<10x64xf32> -> vector<10x64xf32>
    %555 = arith.divf %553, %554 : vector<10x64xf32>
    %cst_192 = arith.constant dense<0.000000e+00> : vector<10x32xf32>
    %556 = tpu.matmul %555, %407, %cst_192 {dimension_numbers = #tpu.dot_dimension_numbers<[1], [0], [0], [1], [0, 0, 1, 1], [], []>} : vector<10x64xf32>, vector<64x32xf32>, vector<10x32xf32> -> vector<10x32xf32>
    %557 = arith.addf %522, %556 : vector<10x32xf32>
    %558 = vector.broadcast %409 : vector<1x32xf32> to vector<10x32xf32>
    %559 = arith.addf %557, %558 : vector<10x32xf32>
    %cst_193 = arith.constant dense<0.000000e+00> : vector<10xf32>
    %560 = vector.multi_reduction <add>, %559, %cst_193 [1] : vector<10x32xf32> to vector<10xf32>
    %561 = vector.shape_cast %560 : vector<10xf32> to vector<10x1xf32>
    %cst_194 = arith.constant 3.200000e+01 : f32
    %562 = vector.broadcast %cst_194 : f32 to vector<10x1xf32>
    %563 = arith.divf %561, %562 : vector<10x1xf32>
    %564 = vector.broadcast %563 : vector<10x1xf32> to vector<10x32xf32>
    %565 = arith.subf %559, %564 : vector<10x32xf32>
    %566 = arith.mulf %565, %565 : vector<10x32xf32>
    %cst_195 = arith.constant dense<0.000000e+00> : vector<10xf32>
    %567 = vector.multi_reduction <add>, %566, %cst_195 [1] : vector<10x32xf32> to vector<10xf32>
    %568 = vector.shape_cast %567 : vector<10xf32> to vector<10x1xf32>
    %cst_196 = arith.constant 3.200000e+01 : f32
    %569 = vector.broadcast %cst_196 : f32 to vector<10x1xf32>
    %570 = arith.divf %568, %569 : vector<10x1xf32>
    %571 = vector.broadcast %563 : vector<10x1xf32> to vector<10x32xf32>
    %572 = arith.subf %559, %571 : vector<10x32xf32>
    %cst_197 = arith.constant 9.99999997E-7 : f32
    %573 = vector.broadcast %cst_197 : f32 to vector<10x1xf32>
    %574 = arith.addf %570, %573 : vector<10x1xf32>
    %575 = math.rsqrt %574 : vector<10x1xf32>
    %576 = vector.broadcast %575 : vector<10x1xf32> to vector<10x32xf32>
    %577 = arith.mulf %572, %576 : vector<10x32xf32>
    %578 = vector.broadcast %410 : vector<1x32xf32> to vector<10x32xf32>
    %579 = arith.mulf %577, %578 : vector<10x32xf32>
    %580 = vector.broadcast %411 : vector<1x32xf32> to vector<10x32xf32>
    %581 = arith.addf %579, %580 : vector<10x32xf32>
    %cst_198 = arith.constant dense<0.000000e+00> : vector<10x64xf32>
    %582 = tpu.matmul %581, %412, %cst_198 {dimension_numbers = #tpu.dot_dimension_numbers<[1], [0], [0], [1], [0, 0, 1, 1], [], []>} : vector<10x32xf32>, vector<32x64xf32>, vector<10x64xf32> -> vector<10x64xf32>
    %583 = vector.broadcast %413 : vector<1x64xf32> to vector<10x64xf32>
    %584 = arith.addf %582, %583 : vector<10x64xf32>
    %cst_199 = arith.constant 5.000000e-01 : f32
    %585 = vector.broadcast %cst_199 : f32 to vector<10x64xf32>
    %586 = arith.mulf %585, %584 : vector<10x64xf32>
    %cst_200 = arith.constant 0.707106769 : f32
    %587 = vector.broadcast %cst_200 : f32 to vector<10x64xf32>
    %588 = arith.mulf %584, %587 : vector<10x64xf32>
    %cst_201 = arith.constant 0.000000e+00 : f32
    %589 = vector.broadcast %cst_201 : f32 to vector<10x64xf32>
    %590 = arith.cmpf oge, %588, %589 : vector<10x64xf32>
    %cst_202 = arith.constant 1.000000e+00 : f32
    %cst_203 = arith.constant -1.000000e+00 : f32
    %591 = vector.broadcast %cst_202 : f32 to vector<10x64xf32>
    %592 = vector.broadcast %cst_203 : f32 to vector<10x64xf32>
    %593 = arith.select %590, %591, %592 : vector<10x64xi1>, vector<10x64xf32>
    %594 = math.absf %588 : vector<10x64xf32>
    %cst_204 = arith.constant 0.327591091 : f32
    %595 = vector.broadcast %cst_204 : f32 to vector<10x64xf32>
    %596 = arith.mulf %595, %594 : vector<10x64xf32>
    %cst_205 = arith.constant 1.000000e+00 : f32
    %597 = vector.broadcast %cst_205 : f32 to vector<10x64xf32>
    %598 = arith.addf %597, %596 : vector<10x64xf32>
    %cst_206 = arith.constant 1.000000e+00 : f32
    %599 = vector.broadcast %cst_206 : f32 to vector<10x64xf32>
    %600 = arith.divf %599, %598 : vector<10x64xf32>
    %cst_207 = arith.constant 1.06140542 : f32
    %601 = vector.broadcast %cst_207 : f32 to vector<10x64xf32>
    %602 = arith.mulf %601, %600 : vector<10x64xf32>
    %cst_208 = arith.constant -1.45315206 : f32
    %603 = vector.broadcast %cst_208 : f32 to vector<10x64xf32>
    %604 = arith.addf %602, %603 : vector<10x64xf32>
    %605 = arith.mulf %604, %600 : vector<10x64xf32>
    %cst_209 = arith.constant 1.42141378 : f32
    %606 = vector.broadcast %cst_209 : f32 to vector<10x64xf32>
    %607 = arith.addf %605, %606 : vector<10x64xf32>
    %608 = arith.mulf %607, %600 : vector<10x64xf32>
    %cst_210 = arith.constant -0.284496725 : f32
    %609 = vector.broadcast %cst_210 : f32 to vector<10x64xf32>
    %610 = arith.addf %608, %609 : vector<10x64xf32>
    %611 = arith.mulf %610, %600 : vector<10x64xf32>
    %cst_211 = arith.constant 0.254829586 : f32
    %612 = vector.broadcast %cst_211 : f32 to vector<10x64xf32>
    %613 = arith.addf %611, %612 : vector<10x64xf32>
    %614 = arith.mulf %613, %600 : vector<10x64xf32>
    %cst_212 = arith.constant 0.000000e+00 : f32
    %615 = vector.broadcast %cst_212 : f32 to vector<10x64xf32>
    %616 = arith.subf %615, %594 : vector<10x64xf32>
    %617 = arith.mulf %616, %594 : vector<10x64xf32>
    %618 = math.exp %617 : vector<10x64xf32>
    %619 = arith.mulf %614, %618 : vector<10x64xf32>
    %cst_213 = arith.constant 1.000000e+00 : f32
    %620 = vector.broadcast %cst_213 : f32 to vector<10x64xf32>
    %621 = arith.subf %620, %619 : vector<10x64xf32>
    %622 = arith.mulf %593, %621 : vector<10x64xf32>
    %cst_214 = arith.constant 1.000000e+00 : f32
    %623 = vector.broadcast %cst_214 : f32 to vector<10x64xf32>
    %624 = arith.addf %623, %622 : vector<10x64xf32>
    %625 = arith.mulf %586, %624 : vector<10x64xf32>
    %cst_215 = arith.constant dense<0.000000e+00> : vector<10x32xf32>
    %626 = tpu.matmul %625, %414, %cst_215 {dimension_numbers = #tpu.dot_dimension_numbers<[1], [0], [0], [1], [0, 0, 1, 1], [], []>} : vector<10x64xf32>, vector<64x32xf32>, vector<10x32xf32> -> vector<10x32xf32>
    %627 = arith.addf %559, %626 : vector<10x32xf32>
    %628 = vector.broadcast %415 : vector<1x32xf32> to vector<10x32xf32>
    %629 = arith.addf %627, %628 : vector<10x32xf32>
    %c856 = arith.constant 856 : index
    %c0_216 = arith.constant 0 : index
    %630 = vector.load %arg2[%c856, %c0_216] : memref<1224x128xf32, #tpu.memory_space<vmem>>, vector<4x10xf32>
    %cst_217 = arith.constant dense<0.000000e+00> : vector<4x32xf32>
    %631 = tpu.matmul %630, %522, %cst_217 {dimension_numbers = #tpu.dot_dimension_numbers<[1], [0], [0], [1], [0, 0, 1, 1], [], []>} : vector<4x10xf32>, vector<10x32xf32>, vector<4x32xf32> -> vector<4x32xf32>
    %c864 = arith.constant 864 : index
    %c0_218 = arith.constant 0 : index
    %632 = vector.load %arg2[%c864, %c0_218] : memref<1224x128xf32, #tpu.memory_space<vmem>>, vector<4x10xf32>
    %cst_219 = arith.constant dense<0.000000e+00> : vector<4x32xf32>
    %633 = tpu.matmul %632, %629, %cst_219 {dimension_numbers = #tpu.dot_dimension_numbers<[1], [0], [0], [1], [0, 0, 1, 1], [], []>} : vector<4x10xf32>, vector<10x32xf32>, vector<4x32xf32> -> vector<4x32xf32>
    %634 = arith.addf %631, %633 : vector<4x32xf32>
    %c816 = arith.constant 816 : index
    %c0_220 = arith.constant 0 : index
    %635 = vector.load %arg2[%c816, %c0_220] : memref<1224x128xf32, #tpu.memory_space<vmem>>, vector<32x16xf32>
    %cst_221 = arith.constant dense<0.000000e+00> : vector<4x16xf32>
    %636 = tpu.matmul %634, %635, %cst_221 {dimension_numbers = #tpu.dot_dimension_numbers<[1], [0], [0], [1], [0, 0, 1, 1], [], []>} : vector<4x32xf32>, vector<32x16xf32>, vector<4x16xf32> -> vector<4x16xf32>
    %c848 = arith.constant 848 : index
    %c0_222 = arith.constant 0 : index
    %637 = vector.load %arg2[%c848, %c0_222] : memref<1224x128xf32, #tpu.memory_space<vmem>>, vector<1x16xf32>
    %638 = vector.broadcast %637 : vector<1x16xf32> to vector<4x16xf32>
    %639 = arith.addf %636, %638 : vector<4x16xf32>
    %c0_223 = arith.constant 0 : index
    %c0_224 = arith.constant 0 : index
    %640 = vector.load %arg3[%c0_223, %c0_224] : memref<4x16xf32, #tpu.memory_space<vmem>>, vector<4x16xf32>
    tpu.vector_store %arg3[%c0_223, %c0_224], %639 {strides = array<i32>} : memref<4x16xf32, #tpu.memory_space<vmem>>, vector<4x16xf32>,
    return
  }
  func.func @transform_0(%arg0: i32) -> (i32, i32) {
    %c0_i32 = arith.constant 0 : i32
    %c0_i32_0 = arith.constant 0 : i32
    %c0_i32_1 = arith.constant 0 : i32
    return %c0_i32, %c0_i32_0 : i32, i32
  }
  func.func @transform_1(%arg0: i32) -> (i32, i32) {
    %c0_i32 = arith.constant 0 : i32
    %c0_i32_0 = arith.constant 0 : i32
    %c0_i32_1 = arith.constant 0 : i32
    return %c0_i32, %c0_i32_0 : i32, i32
  }
  func.func @transform_2(%arg0: i32) -> (i32, i32) {
    %c0_i32 = arith.constant 0 : i32
    %c0_i32_0 = arith.constant 0 : i32
    %c0_i32_1 = arith.constant 0 : i32
    return %c0_i32, %c0_i32_0 : i32, i32
  }
}

</mosaic_0001>

<bundles_post_ra>
// kernel: tile.9
= control target key start
LH: loop header
LB: loop body
LE: loop exit
PB: predicated region body
PF: predicated region fallthrough
CT: control target
= control target key end

     0   :  { %vm3_vm0 = vcmask 261120   ;;  %s34_s0 = inlined_call_operand.vmem [shape: f32[2,5,32], index: 0, kind: input, shape index: {}]   ;;  %s35_s1 = inlined_call_operand.vmem [shape: f32[10,32], index: 1, kind: output, shape index: {}]  }
   0x1   :  { %v2_v0 = vld [vmem:[%s34_s0] sm:$0x1f]   ;;  %v10_v1 = vld [vmem:[%s34_s0 + $0x8] sm:$0x1f]  }
   0x2   :  { %4 = vst.msk [vmem:[%s35_s1] sm:$0x1f] %vm3_vm0, %v2_v0  }
   0x3   :  { %11 = vst.msk [vmem:[%s35_s1 + $0x5] sm:$0x1f] %vm3_vm0, %v10_v1  }

// kernel: vit_seq_rec_forward.1
= control target key start
LH: loop header
LB: loop body
LE: loop exit
PB: predicated region body
PF: predicated region fallthrough
CT: control target
= control target key end

     0   :  { %vm41_vm0 = vcmask 523264   ;;  %vm98_vm1 = vcmask 261120   ;;  %vm102_vm2 = vcmask 254976   ;;  %v3244_v40 = vmov 32.0   ;;  %s3245_s26 = smov 96   ;;  %s3246_s3 = smov 64   ;;  %s4475_s1 = inlined_call_operand.vmem [shape: f32[1224,128], index: 1, kind: input, shape index: {}]   ;;  %s4476_s0 = inlined_call_operand.vmem [shape: f32[10,192], index: 0, kind: input, shape index: {}]   ;;  %s4477_s2 = inlined_call_operand.vmem [shape: f32[4,16], index: 2, kind: output, shape index: {}]  }
   0x1   :  { %v30_v0 = vld [vmem:[%s4475_s1 + $0x78] sm:$0xff]  ;;  %v29_v1 = vld [vmem:[%s4475_s1 + $0x70] sm:$0xff]  ;;  %v28_v2 = vld [vmem:[%s4475_s1 + $0x68] sm:$0xff]  ;;  %3092 = vrcp.f32 %v3244_v40  ;;  %vm202_vm10 = vcmask 64512   ;;  %vm234_vm11 = vcmask 80896   ;;  %vm238_vm12 = vcmask 74752  }
   0x2   :  { %48 = vmatpush.msra.mxu0 %v30_v0  ;;  %v38_v3 = vld [vmem:[%s4475_s1 + $0xb8] sm:$0xff]  ;;  %v27_v4 = vld [vmem:[%s4475_s1 + $0x60] sm:$0xff]  ;;  %v37_v5 = vld [vmem:[%s4475_s1 + $0xb0] sm:$0xff]  ;;  %s3247_s4 = smov 88   ;;  %s3248_s5 = smov 120   ;;  %vm295_vm13 = vcmask 1041408  }
   0x3   :  { %79 = vmatpush.msra.mxu1 %v38_v3  ;;  %v36_v6 = vld [vmem:[%s4475_s1 + $0xa8] sm:$0xff]  ;;  %v26_v7 = vld [vmem:[%s4475_s1 + $0x58] sm:$0xff]  ;;  %v35_v8 = vld [vmem:[%s4475_s1 + $0xa0] sm:$0xff]  ;;  %s3249_s6 = smov 72   ;;  %s3250_s7 = smov 104  }
   0x4   :  { %49 = vmatpush.msra.mxu0 %v29_v1  ;;  %v25_v9 = vld [vmem:[%s4475_s1 + $0x50] sm:$0xff]  ;;  %v24_v10 = vld [vmem:[%s4475_s1 + $0x48] sm:$0xff]  ;;  %v34_v11 = vld [vmem:[%s4475_s1 + $0x98] sm:$0xff]  ;;  %s3251_s8 = smov 112   ;;  %s3252_s9 = smov 80  }
   0x5   :  { %80 = vmatpush.msra.mxu1 %v37_v5  ;;  %v33_v12 = vld [vmem:[%s4475_s1 + $0x90] sm:$0xff]  ;;  %v23_v13 = vld [vmem:[%s4475_s1 + $0x40] sm:$0xff]  ;;  %v32_v14 = vld [vmem:[%s4475_s1 + $0x88] sm:$0xff]  ;;  %s3253_s12 = smov 56   ;;  %s3255_s13 = smov 40  }
   0x6   :  { %50 = vmatpush.msra.mxu0 %v28_v2  ;;  %v22_v15 = vld [vmem:[%s4475_s1 + $0x38] sm:$0xff]  ;;  %v31_v16 = vld [vmem:[%s4475_s1 + $0x80] sm:$0xff]  ;;  %v21_v17 = vld [vmem:[%s4475_s1 + $0x30] sm:$0xff] }
   0x7   :  { %81 = vmatpush.msra.mxu1 %v36_v6  ;;  %v12_v18 = vld [vmem:[%s4476_s0 + $0x8] sm:$0xff]  ;;  %v19_v20 = vld [vmem:[%s4475_s1 + $0x20] sm:$0xff]  ;;  %v18_v21 = vld [vmem:[%s4475_s1 + $0x18] sm:$0xff]  ;;  %v3093_v41 = vpop.eup %3092 }
   0x8   :  { %51 = vmatpush.msra.mxu0 %v27_v4  ;;  %v20_v19 = vld [vmem:[%s4475_s1 + $0x28] sm:$0xff]  ;;  %v17_v22 = vld [vmem:[%s4475_s1 + $0x10] sm:$0xff]  ;;  %v14_v23 = vld [vmem:[%s4476_s0 + $0x18] sm:$0x3]  ;;  %v107_v42 = vmul.f32 32.0, %v3093_v41  ;;  %vm111_vm3 = vweird.f32 %v3093_v41 }
   0x9   :  { %82 = vmatpush.msra.mxu1 %v35_v8  ;;  %v16_v24 = vld [vmem:[%s4475_s1 + $0x8] sm:$0xff]  ;;  %v15_v25 = vld [vmem:[%s4475_s1] sm:$0xff]  ;;  %v13_v27 = vld [vmem:[%s4476_s0 + $0x10] sm:$0x3] }
   0xa   :  { %52 = vmatpush.msra.mxu0 %v26_v7  ;;  %v11_v26 = vld [vmem:[%s4476_s0] sm:$0xff]  ;;  %v40_v34 = vld [vmem:[%s4475_s1 + $0xc8] sm:$0x3]  ;;  %v108_v43 = vsub.f32 1.0, %v107_v42  ;;  %v158_v59 = vld [vmem:[%s4475_s1 + $0xf8] sm:$0xff]  ;;  %s3254_s0 = smov 48  }
   0xb   :  { %83 = vmatpush.msra.mxu1 %v34_v11  ;;  %v39_v28 = vld [vmem:[%s4475_s1 + $0xc0] sm:$0xff]  ;;  %v160_v57 = vld [vmem:[%s4475_s1 + $0x108] sm:$0xff]  ;;  %v157_v60 = vld [vmem:[%s4475_s1 + $0xf0] sm:$0xff] }
   0xc   :  { %53 = vmatpush.msra.mxu0 %v25_v9  ;;  %v109_v44 = vmul.f32 %v3093_v41, %v108_v43  ;;  %181 = vmatpush.msra.mxu2 %v160_v57  ;;  %v159_v58 = vld [vmem:[%s4475_s1 + $0x100] sm:$0xff] }
   0xd   :  { %84 = vmatpush.msra.mxu1 %v33_v12  ;;  %v3065_v11 = vld [vmem:[%s4475_s1 + $0xe0] ss:$0 sm:$0xff] }
   0xe   :  { %54 = vmatpush.msra.mxu0 %v24_v10  ;;  %v110_v45 = vadd.f32 %v3093_v41, %v109_v44  ;;  %182 = vmatpush.msra.mxu2 %v159_v58 }
   0xf   :  { %85 = vmatpush.msra.mxu1 %v32_v14 }
  0x10   :  { %55 = vmatpush.msra.mxu0 %v23_v13  ;;  %v3372_v46 = vsel %vm111_vm3, %v3093_v41, %v110_v45  ;;  %183 = vmatpush.msra.mxu2 %v158_v59 }
  0x11   :  { %86 = vmatpush.msra.mxu1 %v31_v16 }
  0x12   :  { %56 = vmatpush.msra.mxu0 %v22_v15  ;;  %2941 = vmatmul.msk.f32.vlgmr.msra.gmra.mxu1 %vm41_vm0, %v12_v18  ;;  %v3066_v15 = vld [vmem:[%s4475_s1 + $0xe8] ss:$0 sm:$0xff] }
  0x13   :  { %184 = vmatpush.msra.mxu2 %v157_v60 }
  0x14   :  { %57 = vmatpush.msra.mxu0 %v21_v17 }
  0x16   :  { %58 = vmatpush.msra.mxu0 %v20_v19 }
  0x18   :  { %59 = vmatpush.msra.mxu0 %v19_v20 }
  0x1a   :  { %60 = vmatpush.msra.mxu0 %v18_v21  ;;  %2942 = vmatmul.msk.f32.gmra.mxu1 %vm41_vm0, %v14_v23 }
  0x1c   :  { %61 = vmatpush.msra.mxu0 %v17_v22 }
  0x1e   :  { %62 = vmatpush.msra.mxu0 %v16_v24 }
  0x20   :  { %63 = vmatpush.msra.mxu0 %v15_v25 }
  0x21   :  { %64 = vmatmul.f32.vlgmr.msra.gmra.mxu0 %v11_v26  ;;  %v3067_v26 = vld [vmem:[%s4475_s1 + $0x110] ss:$0 sm:$0xff] }
  0x29   :  { %67 = vmatmul.f32.gmra.mxu0 %v13_v27 }
  0x8f   :  { %v88_v29 = vpop.f32.mrf.mxu1 }
  0x97   :  { %v91_v36 = vpop.f32.mrf.mxu1 }
  0x9e   :  { %v65_v30 = vpop.f32.mrf.mxu0 }
  0x9f   :  { %v66_v31 = vadd.f32 %v65_v30, %v39_v28 }
  0xa1   :  { %v3361_v32 = vadd.f32 %v88_v29, %v66_v31 }
  0xa3   :  { %v99_v33 = vsel %vm98_vm1, %v3361_v32, 0.0 }
  0xa4   :  { %100 = vadd.xlane.f32.xlu0 %v99_v33  ;;  %v3422_v33 = vld [vmem:[%s4475_s1 + $0xd0] sm:$0xff] }
  0xa6   :  { %v68_v35 = vpop.f32.mrf.mxu0 }
  0xa7   :  { %v69_v37 = vadd.f32 %v68_v35, %v40_v34 }
  0xa9   :  { %v3368_v38 = vadd.f32 %v91_v36, %v69_v37  ;;  %v3429_v37 = vld [vmem:[%s4475_s1 + $0xd8] sm:$0x3] }
  0xab   :  { %v103_v39 = vsel %vm102_vm2, %v3368_v38, 0.0 }
  0xac   :  { %104 = vadd.xlane.f32.xlu0 %v103_v39 }
 0x117   :  { %v101_v47 = vpop.xlane.xlu0 %100 }
 0x118   :  { %v113_v48 = vmul.f32 %v3372_v46, %v101_v47 }
 0x11a   :  { %v115_v49 = vsub.f32 %v3361_v32, %v113_v48 }
 0x11c   :  { %v117_v50 = vmul.f32 %v115_v49, %v115_v49 }
 0x11e   :  { %v119_v51 = vsel %vm98_vm1, %v117_v50, 0.0 }
 0x11f   :  { %120 = vadd.xlane.f32.xlu1 %v119_v51  ;;  %v105_v52 = vpop.xlane.xlu0 %104 }
 0x120   :  { %v114_v53 = vmul.f32 %v3372_v46, %v105_v52 }
 0x122   :  { %v116_v54 = vsub.f32 %v3368_v38, %v114_v53 }
 0x124   :  { %v118_v55 = vmul.f32 %v116_v54, %v116_v54 }
 0x126   :  { %v122_v56 = vsel %vm102_vm2, %v118_v55, 0.0 }
 0x127   :  { %123 = vadd.xlane.f32.xlu1 %v122_v56 }
 0x192   :  { %v121_v61 = vpop.xlane.xlu1 %120 }
 0x193   :  { %v125_v62 = vmul.f32 %v121_v61, %v3372_v46 }
 0x195   :  { %v127_v63 = vadd.f32 1e-06, %v125_v62 }
 0x197   :  { %3094 = vrsqrt.f32 %v127_v63  ;;  %vm135_vm5 = vweird.f32 %v127_v63 }
 0x19a   :  { %v124_v0 = vpop.xlane.xlu1 %123 }
 0x19b   :  { %v126_v1 = vmul.f32 %v124_v0, %v3372_v46 }
 0x19d   :  { %v3095_v2 = vpop.eup %3094  ;;  %v128_v3 = vadd.f32 1e-06, %v126_v1 }
 0x19e   :  { %v130_v4 = vmul.f32 %v3095_v2, %v127_v63  ;;  %vm136_vm4 = vweird.f32 %v3095_v2 }
 0x19f   :  { %3096 = vrsqrt.f32 %v128_v3  ;;  %vm137_vm6 = vmor %vm135_vm5, %vm136_vm4  ;;  %vm145_vm8 = vweird.f32 %v128_v3 }
 0x1a0   :  { %v131_v5 = vmul.f32 %v3095_v2, %v130_v4 }
 0x1a2   :  { %v132_v6 = vmul.f32 0.5, %v131_v5 }
 0x1a4   :  { %v133_v7 = vsub.f32 1.5, %v132_v6 }
 0x1a5   :  { %v3097_v8 = vpop.eup %3096 }
 0x1a6   :  { %v134_v9 = vmul.f32 %v3095_v2, %v133_v7  ;;  %v140_v10 = vmul.f32 %v3097_v8, %v128_v3  ;;  %vm146_vm7 = vweird.f32 %v3097_v8 }
 0x1a7   :  { %vm147_vm9 = vmor %vm145_vm8, %vm146_vm7 }
 0x1a8   :  { %v138_v12 = vsel %vm137_vm6, %v3095_v2, %v134_v9  ;;  %v141_v13 = vmul.f32 %v3097_v8, %v140_v10 }
 0x1a9   :  { %v149_v14 = vmul.f32 %v138_v12, %v115_v49 }
 0x1aa   :  { %v142_v16 = vmul.f32 0.5, %v141_v13 }
 0x1ab   :  { %v152_v17 = vmul.f32 %v3065_v11, %v149_v14 }
 0x1ac   :  { %v143_v18 = vsub.f32 1.5, %v142_v16 }
 0x1ad   :  { %v155_v19 = vadd.f32 %v3066_v15, %v152_v17  ;;  %v192_v17 = vld [vmem:[%s4475_s1 + $0x118] sm:$0xff] }
 0x1ae   :  { %v144_v20 = vmul.f32 %v3097_v8, %v143_v18 }
 0x1af   :  { %2943 = vmatmul.msk.f32.vlgmr.msra.gmra.mxu2 %vm98_vm1, %v155_v19 }
 0x1b0   :  { %v148_v21 = vsel %vm147_vm9, %v3097_v8, %v144_v20 }
 0x1b1   :  { %v150_v22 = vmul.f32 %v148_v21, %v116_v54 }
 0x1b3   :  { %v153_v23 = vmul.f32 %v3065_v11, %v150_v22 }
 0x1b5   :  { %v156_v24 = vadd.f32 %v3066_v15, %v153_v23 }
 0x1b7   :  { %2944 = vmatmul.msk.f32.gmra.mxu2 %vm98_vm1, %v156_v24 }
 0x232   :  { %v186_v25 = vpop.f32.mrf.mxu2 }
 0x233   :  { %v3409_v29 = vadd.f32 %v3067_v26, %v186_v25 }
 0x23a   :  { %v189_v27 = vpop.f32.mrf.mxu2 }
 0x23b   :  { %v3405_v28 = vadd.f32 %v3067_v26, %v189_v27 }
 0x23d   :  { %200 = vrot.lane.b32.xlu2 %v3405_v28, %s3245_s26 }
 0x245   :  { %198 = vrot.lane.b32.xlu2 %v3409_v29, %s3245_s26 }
 0x297   :  { %v201_v30 = vpop.permute.xlu2 %200 }
 0x298   :  { %2945 = vmatpush.xpose.msk.msra.mxu3 %vm202_vm10, %v201_v30 }
 0x29f   :  { %v199_v31 = vpop.permute.xlu2 %198 }
 0x2a0   :  { %2946 = vmatpush.xpose.msk.msra.mxu3 %vm202_vm10, %v199_v31 }
 0x2a3   :  { %2947 = vmatmul.msk.f32.vlgmr.msra.gmra.mxu3 %vm202_vm10, %v3409_v29 }
 0x2ab   :  { %2948 = vmatmul.msk.f32.gmra.mxu3 %vm202_vm10, %v3405_v28 }
 0x326   :  { %v228_v34 = vpop.f32.mrf.mxu3 }
 0x327   :  { %v229_v35 = vadd.f32 %v228_v34, %v3422_v33 }
 0x329   :  { %v235_v36 = vsel %vm234_vm11, %v229_v35, -inf }
 0x32a   :  { %236 = vmax.xlane.f32.xlu0 %v235_v36 }
 0x32e   :  { %v231_v39 = vpop.f32.mrf.mxu3 }
 0x32f   :  { %v232_v40 = vadd.f32 %v231_v39, %v3429_v37 }
 0x331   :  { %v239_v41 = vsel %vm238_vm12, %v232_v40, -inf }
 0x332   :  { %240 = vmax.xlane.f32.xlu1 %v239_v41 }
 0x34b   :  { %286 = vrot.lane.b32.xlu1 %v3405_v28, %s3246_s3 }
 0x353   :  { %327 = vrot.lane.b32.xlu1 %v3405_v28, %s3247_s4 }
 0x35b   :  { %321 = vrot.lane.b32.xlu1 %v3409_v29, %s3248_s5 }
 0x363   :  { %662 = vrot.lane.b32.xlu1 %v3405_v28, %s3249_s6 }
 0x36b   :  { %660 = vrot.lane.b32.xlu1 %v3409_v29, %s3249_s6 }
 0x373   :  { %656 = vrot.lane.b32.xlu1 %v3409_v29, %s3250_s7 }
 0x39d   :  { %v237_v42 = vpop.xlane.xlu0 %236 }
 0x39e   :  { %v242_v43 = vsub.f32 %v229_v35, %v237_v42 }
 0x3a0   :  { %v244_v44 = vmul.f32 1.442695, %v242_v43 }
 0x3a2   :  { %3098 = vpow2.f32 %v244_v44 }
 0x3a5   :  { %v241_v45 = vpop.xlane.xlu1 %240 }
 0x3a6   :  { %v243_v47 = vsub.f32 %v232_v40, %v241_v45 }
 0x3a8   :  { %v3099_v48 = vpop.eup %3098  ;;  %v246_v49 = vmul.f32 1.442695, %v243_v47 }
 0x3a9   :  { %v248_v50 = vsel %vm234_vm11, %v3099_v48, 0.0 }
 0x3aa   :  { %3100 = vpow2.f32 %v246_v49  ;;  %249 = vadd.xlane.f32.xlu2 %v248_v50 }
 0x3b0   :  { %v3101_v51 = vpop.eup %3100 }
 0x3b1   :  { %v251_v52 = vsel %vm238_vm12, %v3101_v51, 0.0 }
 0x3b2   :  { %252 = vadd.xlane.f32.xlu0 %v251_v52 }
 0x3bd   :  { %v287_v53 = vpop.permute.xlu1 %286 }
 0x3be   :  { %2949 = vmatpush.msk.msrb.mxu2 %vm295_vm13, %v287_v53 }
 0x3c2   :  { %323 = vrot.lane.b32.xlu2 %v3405_v28, %s3248_s5 }
 0x3c5   :  { %v328_v54 = vpop.permute.xlu1 %327 }
 0x3c6   :  { %2952 = vmatpush.xpose.msk.msrb.mxu3 %vm202_vm10, %v328_v54  ;;  %284 = vrot.lane.b32.xlu0 %v3409_v29, %s3246_s3 }
 0x3ca   :  { %504 = vrot.lane.b32.xlu2 %v3405_v28, %s3251_s8 }
 0x3cd   :  { %v322_v6 = vpop.permute.xlu1 %321 }
 0x3ce   :  { %325 = vrot.lane.b32.xlu0 %v3409_v29, %s3247_s4 }
 0x3d5   :  { %v663_v16 = vpop.permute.xlu1 %662 }
 0x3d6   :  { %508 = vrot.lane.b32.xlu0 %v3405_v28, %s3252_s9 }
 0x3dd   :  { %v661_v20 = vpop.permute.xlu1 %660 }
 0x3de   :  { %506 = vrot.lane.b32.xlu0 %v3409_v29, %s3252_s9 }
 0x3e5   :  { %v657_v35 = vpop.permute.xlu1 %656 }
 0x3e6   :  { %502 = vrot.lane.b32.xlu0 %v3409_v29, %s3251_s8 }
 0x3ee   :  { %658 = vrot.lane.b32.xlu0 %v3405_v28, %s3250_s7 }
 0x41d   :  { %v250_v55 = vpop.xlane.xlu2 %249 }
 0x41e   :  { %3102 = vrcp.f32 %v250_v55  ;;  %v265_v0 = vand.u32 2147483648, %v250_v55  ;;  %vm259_vm15 = vweird.f32 %v250_v55  ;;  %v263_v2 = vand.u32 2147483647, %v250_v55 }
 0x420   :  { %v266_v5 = vor.u32 1.1754944e-38, %v265_v0  ;;  %vm264_vm4 = vcmp.eq.f32.partialorder %v263_v2, 8.507059e+37 }
 0x424   :  { %v3103_v56 = vpop.eup %3102 }
 0x425   :  { %v255_v57 = vmul.f32 %v3103_v56, %v250_v55  ;;  %v253_v58 = vpop.xlane.xlu0 %252  ;;  %vm260_vm14 = vweird.f32 %v3103_v56  ;;  %v324_v22 = vpop.permute.xlu2 %323 }
 0x426   :  { %3104 = vrcp.f32 %v253_v58  ;;  %vm261_vm3 = vmor %vm259_vm15, %vm260_vm14  ;;  %v280_v9 = vand.u32 2147483648, %v253_v58  ;;  %vm274_vm6 = vweird.f32 %v253_v58  ;;  %v278_v12 = vand.u32 2147483647, %v253_v58 }
 0x427   :  { %v256_v59 = vsub.f32 1.0, %v255_v57 }
 0x428   :  { %v281_v14 = vor.u32 1.1754944e-38, %v280_v9  ;;  %vm279_vm8 = vcmp.eq.f32.partialorder %v278_v12, 8.507059e+37 }
 0x429   :  { %v257_v60 = vmul.f32 %v3103_v56, %v256_v59 }
 0x42b   :  { %v258_v63 = vadd.f32 %v3103_v56, %v257_v60 }
 0x42c   :  { %v3105_v61 = vpop.eup %3104 }
 0x42d   :  { %v270_v62 = vmul.f32 %v3105_v61, %v253_v58  ;;  %v262_v4 = vsel %vm261_vm3, %v3103_v56, %v258_v63  ;;  %vm275_vm5 = vweird.f32 %v3105_v61  ;;  %v505_v25 = vpop.permute.xlu2 %504 }
 0x42e   :  { %v267_v7 = vsel %vm264_vm4, %v266_v5, %v262_v4  ;;  %vm276_vm7 = vmor %vm274_vm6, %vm275_vm5 }
 0x42f   :  { %v271_v1 = vsub.f32 1.0, %v270_v62  ;;  %v268_v11 = vmul.f32 %v3099_v48, %v267_v7 }
 0x431   :  { %v272_v3 = vmul.f32 %v3105_v61, %v271_v1 }
 0x433   :  { %v273_v8 = vadd.f32 %v3105_v61, %v272_v3 }
 0x435   :  { %v277_v13 = vsel %vm276_vm7, %v3105_v61, %v273_v8 }
 0x436   :  { %v282_v15 = vsel %vm279_vm8, %v281_v14, %v277_v13 }
 0x437   :  { %v283_v19 = vmul.f32 %v3101_v51, %v282_v15 }
 0x438   :  { %v285_v10 = vpop.permute.xlu0 %284 }
 0x439   :  { %313 = vmatpush.msrb.mxu2 %v285_v10 }
 0x43a   :  { %2950 = vmatmul.msk.f32.vlgmr.msrb.gmra.mxu2 %vm234_vm11, %v268_v11 }
 0x440   :  { %v326_v18 = vpop.permute.xlu0 %325 }
 0x441   :  { %2953 = vmatpush.xpose.msk.msrb.mxu3 %vm202_vm10, %v326_v18 }
 0x442   :  { %2951 = vmatmul.msk.f32.gmra.mxu2 %vm234_vm11, %v283_v19 }
 0x444   :  { %2954 = vmatmul.msk.f32.vlgmr.msrb.gmra.mxu3 %vm202_vm10, %v322_v6 }
 0x445   :  { %494 = vmatpush.msra.mxu3 %v192_v17 }
 0x447   :  { %2972 = vmatpush.xpose.msk.msrb.mxu3 %vm202_vm10, %v663_v16 }
 0x448   :  { %v509_v21 = vpop.permute.xlu0 %508 }
 0x449   :  { %2963 = vmatpush.xpose.msk.msrb.mxu0 %vm202_vm10, %v509_v21 }
 0x44b   :  { %2973 = vmatpush.xpose.msk.msrb.mxu3 %vm202_vm10, %v661_v20 }
 0x44c   :  { %2955 = vmatmul.msk.f32.gmra.mxu3 %vm202_vm10, %v324_v22 }
 0x450   :  { %v507_v23 = vpop.permute.xlu0 %506 }
 0x451   :  { %2964 = vmatpush.xpose.msk.msrb.mxu0 %vm202_vm10, %v507_v23 }
 0x458   :  { %v503_v24 = vpop.permute.xlu0 %502 }
 0x459   :  { %2965 = vmatmul.msk.f32.vlgmr.msrb.gmra.mxu0 %vm202_vm10, %v503_v24 }
 0x460   :  { %v659_v41 = vpop.permute.xlu0 %658 }
 0x461   :  { %2966 = vmatmul.msk.f32.gmra.mxu0 %vm202_vm10, %v505_v25 }
 0x4bd   :  { %v315_v26 = vpop.f32.mrf.mxu2 }
 0x4be   :  { %2961 = vmatmul.msk.f32.vlgmr.msra.gmra.mxu3 %vm202_vm10, %v315_v26 }
 0x4c5   :  { %v318_v27 = vpop.f32.mrf.mxu2 }
 0x4c6   :  { %2962 = vmatmul.msk.f32.gmra.mxu3 %vm202_vm10, %v318_v27 }
 0x4c7   :  { %v354_v30 = vpop.f32.mrf.mxu3 }
 0x4c8   :  { %v355_v31 = vadd.f32 %v354_v30, %v3422_v33 }
 0x4ca   :  { %v360_v34 = vsel %vm234_vm11, %v355_v31, -inf }
 0x4cb   :  { %361 = vmax.xlane.f32.xlu1 %v360_v34 }
 0x4ce   :  { %2974 = vmatmul.msk.f32.vlgmr.msrb.gmra.mxu3 %vm202_vm10, %v657_v35 }
 0x4cf   :  { %v357_v36 = vpop.f32.mrf.mxu3 }
 0x4d0   :  { %v358_v39 = vadd.f32 %v357_v36, %v3429_v37 }
 0x4d2   :  { %v363_v40 = vsel %vm238_vm12, %v358_v39, -inf }
 0x4d3   :  { %364 = vmax.xlane.f32.xlu2 %v363_v40 }
 0x4d6   :  { %v535_v42 = vpop.f32.mrf.mxu0  ;;  %2975 = vmatmul.msk.f32.gmra.mxu3 %vm202_vm10, %v659_v41 }
 0x4d7   :  { %v536_v43 = vadd.f32 %v535_v42, %v3422_v33 }
 0x4d9   :  { %v541_v44 = vsel %vm234_vm11, %v536_v43, -inf }
 0x4da   :  { %542 = vmax.xlane.f32.xlu0 %v541_v44 }
 0x4de   :  { %v538_v45 = vpop.f32.mrf.mxu0 }
 0x4df   :  { %v539_v47 = vadd.f32 %v538_v45, %v3429_v37 }
 0x4e1   :  { %v544_v48 = vsel %vm238_vm12, %v539_v47, -inf }
 0x4e2   :  { %545 = vmax.xlane.f32.xlu2 %v544_v48 }
 0x53e   :  { %v362_v49 = vpop.xlane.xlu1 %361 }
 0x53f   :  { %v366_v50 = vsub.f32 %v355_v31, %v362_v49 }
 0x541   :  { %v368_v51 = vmul.f32 1.442695, %v366_v50  ;;  %v3491_v52 = vpop.f32.mrf.mxu3 }
 0x543   :  { %3106 = vpow2.f32 %v368_v51 }
 0x546   :  { %v365_v53 = vpop.xlane.xlu2 %364 }
 0x547   :  { %v367_v57 = vsub.f32 %v358_v39, %v365_v53 }
 0x549   :  { %v3493_v54 = vpop.eup %3106  ;;  %v3495_v55 = vpop.f32.mrf.mxu3  ;;  %v370_v60 = vmul.f32 1.442695, %v367_v57 }
 0x54a   :  { %v372_v56 = vsel %vm234_vm11, %v3493_v54, 0.0 }
 0x54b   :  { %373 = vadd.xlane.f32.xlu2 %v372_v56 }
 0x54d   :  { %v543_v58 = vpop.xlane.xlu0 %542 }
 0x54e   :  { %v547_v59 = vsub.f32 %v536_v43, %v543_v58 }
 0x550   :  { %v549_v61 = vmul.f32 1.442695, %v547_v59 }
 0x551   :  { %v689_v62 = vpop.f32.mrf.mxu3 }
 0x552   :  { %3108 = vpow2.f32 %v549_v61  ;;  %v690_v63 = vadd.f32 %v689_v62, %v3422_v33 }
 0x553   :  { %3110 = vpow2.f32 %v370_v60 }
 0x554   :  { %v695_v0 = vsel %vm234_vm11, %v690_v63, -inf }
 0x555   :  { %696 = vmax.xlane.f32.xlu1 %v695_v0  ;;  %v546_v1 = vpop.xlane.xlu2 %545 }
 0x556   :  { %v548_v3 = vsub.f32 %v539_v47, %v546_v1 }
 0x558   :  { %v3501_v2 = vpop.eup %3108  ;;  %v551_v7 = vmul.f32 1.442695, %v548_v3 }
 0x559   :  { %v3503_v4 = vpop.eup %3110  ;;  %v553_v5 = vsel %vm234_vm11, %v3501_v2, 0.0  ;;  %v692_v6 = vpop.f32.mrf.mxu3 }
 0x55a   :  { %554 = vadd.xlane.f32.xlu0 %v553_v5  ;;  %v375_v8 = vsel %vm238_vm12, %v3503_v4, 0.0  ;;  %v693_v33 = vadd.f32 %v692_v6, %v3429_v37  ;;  %3112 = vpow2.f32 %v551_v7 }
 0x55c   :  { %v698_v9 = vsel %vm238_vm12, %v693_v33, -inf }
 0x55d   :  { %376 = vadd.xlane.f32.xlu1 %v375_v8 }
 0x560   :  { %v3513_v10 = vpop.eup %3112 }
 0x561   :  { %v556_v11 = vsel %vm238_vm12, %v3513_v10, 0.0 }
 0x562   :  { %699 = vmax.xlane.f32.xlu0 %v698_v9 }
 0x563   :  { %410 = vrot.lane.b32.xlu2 %v3405_v28, %s3253_s12 }
 0x56a   :  { %557 = vadd.xlane.f32.xlu0 %v556_v11 }
 0x56b   :  { %591 = vrot.lane.b32.xlu2 %v3405_v28, %s3254_s0 }
 0x573   :  { %743 = vrot.lane.b32.xlu2 %v3409_v29, %s3255_s13 }
 0x576   :  { %408 = vrot.lane.b32.xlu1 %v3409_v29, %s3253_s12 }
 0x57e   :  { %589 = vrot.lane.b32.xlu1 %v3409_v29, %s3254_s0 }
 0x5be   :  { %v374_v37 = vpop.xlane.xlu2 %373 }
 0x5bf   :  { %3114 = vrcp.f32 %v374_v37  ;;  %v389_v36 = vand.u32 2147483648, %v374_v37  ;;  %vm383_vm14 = vweird.f32 %v374_v37  ;;  %v387_v40 = vand.u32 2147483647, %v374_v37 }
 0x5c1   :  { %v390_v45 = vor.u32 1.1754944e-38, %v389_v36  ;;  %vm388_vm3 = vcmp.eq.f32.partialorder %v387_v40, 8.507059e+37 }
 0x5c5   :  { %v3115_v17 = vpop.eup %3114 }
 0x5c6   :  { %v411_v12 = vpop.permute.xlu2 %410  ;;  %v379_v19 = vmul.f32 %v3115_v17, %v374_v37  ;;  %vm384_vm9 = vweird.f32 %v3115_v17 }
 0x5c7   :  { %2956 = vmatpush.msk.msrb.mxu1 %vm295_vm13, %v411_v12  ;;  %vm385_vm15 = vmor %vm383_vm14, %vm384_vm9 }
 0x5c8   :  { %v697_v13 = vpop.xlane.xlu1 %696  ;;  %v380_v22 = vsub.f32 1.0, %v379_v19 }
 0x5c9   :  { %v701_v14 = vsub.f32 %v690_v63, %v697_v13 }
 0x5ca   :  { %v381_v26 = vmul.f32 %v3115_v17, %v380_v22 }
 0x5cb   :  { %v703_v15 = vmul.f32 1.442695, %v701_v14 }
 0x5cc   :  { %v382_v30 = vadd.f32 %v3115_v17, %v381_v26  ;;  %v195_v26 = vld [vmem:[%s4475_s1 + $0x130] sm:$0xff] }
 0x5cd   :  { %3116 = vpow2.f32 %v703_v15  ;;  %v3526_v16 = vpop.xlane.xlu0 %554 }
 0x5ce   :  { %v386_v44 = vsel %vm385_vm15, %v3115_v17, %v382_v30  ;;  %v592_v59 = vpop.permute.xlu2 %591  ;;  %vm564_vm9 = vweird.f32 %v3526_v16  ;;  %v568_v3 = vand.u32 2147483647, %v3526_v16 }
 0x5cf   :  { %v391_v47 = vsel %vm388_vm3, %v390_v45, %v386_v44 }
 0x5d0   :  { %v377_v18 = vpop.xlane.xlu1 %376  ;;  %v392_v56 = vmul.f32 %v3493_v54, %v391_v47  ;;  %v570_v54 = vand.u32 2147483648, %v3526_v16  ;;  %vm569_vm15 = vcmp.eq.f32.partialorder %v568_v3, 8.507059e+37 }
 0x5d1   :  { %3118 = vrcp.f32 %v377_v18  ;;  %v404_v51 = vand.u32 2147483648, %v377_v18  ;;  %vm398_vm5 = vweird.f32 %v377_v18  ;;  %v402_v57 = vand.u32 2147483647, %v377_v18 }
 0x5d2   :  { %3120 = vrcp.f32 %v3526_v16 }
 0x5d3   :  { %v3528_v20 = vpop.eup %3116  ;;  %v405_v62 = vor.u32 1.1754944e-38, %v404_v51  ;;  %vm403_vm7 = vcmp.eq.f32.partialorder %v402_v57, 8.507059e+37 }
 0x5d4   :  { %v707_v29 = vsel %vm234_vm11, %v3528_v20, 0.0 }
 0x5d5   :  { %708 = vadd.xlane.f32.xlu0 %v707_v29  ;;  %v700_v21 = vpop.xlane.xlu0 %699  ;;  %v194_v29 = vld [vmem:[%s4475_s1 + $0x128] sm:$0xff] }
 0x5d6   :  { %v702_v23 = vsub.f32 %v693_v33, %v700_v21  ;;  %v571_v33 = vor.u32 1.1754944e-38, %v570_v54  ;;  %v744_v44 = vpop.permute.xlu2 %743 }
 0x5d7   :  { %v3119_v24 = vpop.eup %3118 }
 0x5d8   :  { %v705_v25 = vmul.f32 1.442695, %v702_v23  ;;  %v394_v27 = vmul.f32 %v3119_v24, %v377_v18  ;;  %v3121_v35 = vpop.eup %3120  ;;  %vm399_vm4 = vweird.f32 %v3119_v24 }
 0x5d9   :  { %v560_v42 = vmul.f32 %v3121_v35, %v3526_v16  ;;  %vm400_vm6 = vmor %vm398_vm5, %vm399_vm4  ;;  %vm565_vm8 = vweird.f32 %v3121_v35 }
 0x5da   :  { %3122 = vpow2.f32 %v705_v25  ;;  %v395_v31 = vsub.f32 1.0, %v394_v27  ;;  %vm566_vm14 = vmor %vm564_vm9, %vm565_vm8 }
 0x5db   :  { %v561_v48 = vsub.f32 1.0, %v560_v42 }
 0x5dc   :  { %v396_v43 = vmul.f32 %v3119_v24, %v395_v31 }
 0x5dd   :  { %v3533_v34 = vpop.xlane.xlu0 %557  ;;  %v562_v58 = vmul.f32 %v3121_v35, %v561_v48 }
 0x5de   :  { %3124 = vrcp.f32 %v3533_v34  ;;  %v397_v49 = vadd.f32 %v3119_v24, %v396_v43  ;;  %v585_v37 = vand.u32 2147483648, %v3533_v34  ;;  %vm579_vm4 = vweird.f32 %v3533_v34 }
 0x5df   :  { %v563_v0 = vadd.f32 %v3121_v35, %v562_v58  ;;  %v583_v12 = vand.u32 2147483647, %v3533_v34 }
 0x5e0   :  { %v3535_v39 = vpop.eup %3122  ;;  %v401_v61 = vsel %vm400_vm6, %v3119_v24, %v397_v49  ;;  %v586_v14 = vor.u32 1.1754944e-38, %v585_v37 }
 0x5e1   :  { %v710_v41 = vsel %vm238_vm12, %v3535_v39, 0.0  ;;  %v406_v63 = vsel %vm403_vm7, %v405_v62, %v401_v61  ;;  %v567_v7 = vsel %vm566_vm14, %v3121_v35, %v563_v0  ;;  %vm584_vm6 = vcmp.eq.f32.partialorder %v583_v12, 8.507059e+37 }
 0x5e2   :  { %711 = vadd.xlane.f32.xlu0 %v710_v41  ;;  %v407_v6 = vmul.f32 %v3503_v4, %v406_v63  ;;  %v572_v9 = vsel %vm569_vm15, %v571_v33, %v567_v7 }
 0x5e3   :  { %v573_v4 = vmul.f32 %v3501_v2, %v572_v9 }
 0x5e4   :  { %v3125_v50 = vpop.eup %3124 }
 0x5e5   :  { %v575_v60 = vmul.f32 %v3125_v50, %v3533_v34  ;;  %vm580_vm3 = vweird.f32 %v3125_v50 }
 0x5e6   :  { %vm581_vm5 = vmor %vm579_vm4, %vm580_vm3 }
 0x5e7   :  { %v576_v1 = vsub.f32 1.0, %v575_v60 }
 0x5e8   :  { %v409_v53 = vpop.permute.xlu1 %408 }
 0x5e9   :  { %436 = vmatpush.msrb.mxu1 %v409_v53  ;;  %v577_v8 = vmul.f32 %v3125_v50, %v576_v1  ;;  %v3068_v1 = vld [vmem:[%s4475_s1 + $0x138] ss:$0 sm:$0xff] }
 0x5ea   :  { %2957 = vmatmul.msk.f32.vlgmr.msrb.gmra.mxu1 %vm234_vm11, %v392_v56 }
 0x5eb   :  { %2967 = vmatpush.msk.msra.mxu1 %vm295_vm13, %v592_v59  ;;  %v578_v11 = vadd.f32 %v3125_v50, %v577_v8 }
 0x5ed   :  { %v582_v13 = vsel %vm581_vm5, %v3125_v50, %v578_v11 }
 0x5ee   :  { %v587_v15 = vsel %vm584_vm6, %v586_v14, %v582_v13 }
 0x5ef   :  { %v588_v16 = vmul.f32 %v3513_v10, %v587_v15 }
 0x5f0   :  { %v590_v5 = vpop.permute.xlu1 %589 }
 0x5f1   :  { %617 = vmatpush.msra.mxu1 %v590_v5 }
 0x5f2   :  { %2958 = vmatmul.msk.f32.gmra.mxu1 %vm234_vm11, %v407_v6 }
 0x5f3   :  { %800 = vmatpush.msrb.mxu1 %v195_v26 }
 0x5f6   :  { %745 = vrot.lane.b32.xlu0 %v3405_v28, %s3255_s13  ;;  %v193_v28 = vld [vmem:[%s4475_s1 + $0x120] sm:$0xff] }
 0x5f7   :  { %465 = vmatpush.msra.mxu2 %v193_v28 }
 0x5f9   :  { %646 = vmatpush.msrb.mxu2 %v194_v29 }
 0x5fa   :  { %2968 = vmatmul.msk.f32.vlgmr.msra.gmra.mxu1 %vm234_vm11, %v573_v4 }
 0x602   :  { %2969 = vmatmul.msk.f32.gmra.mxu1 %vm234_vm11, %v588_v16 }
 0x648   :  { %v709_v17 = vpop.xlane.xlu0 %708 }
 0x649   :  { %3126 = vrcp.f32 %v709_v17  ;;  %v724_v27 = vand.u32 2147483648, %v709_v17  ;;  %vm718_vm8 = vweird.f32 %v709_v17  ;;  %v722_v30 = vand.u32 2147483647, %v709_v17 }
 0x64b   :  { %v725_v35 = vor.u32 1.1754944e-38, %v724_v27  ;;  %vm723_vm14 = vcmp.eq.f32.partialorder %v722_v30, 8.507059e+37 }
 0x64f   :  { %v3127_v2 = vpop.eup %3126 }
 0x650   :  { %v714_v18 = vmul.f32 %v3127_v2, %v709_v17  ;;  %vm719_vm7 = vweird.f32 %v3127_v2  ;;  %v871_v17 = vld [vmem:[%s4475_s1 + $0x168] sm:$0xff] }
 0x651   :  { %vm720_vm9 = vmor %vm718_vm8, %vm719_vm7 }
 0x652   :  { %v715_v21 = vsub.f32 1.0, %v714_v18  ;;  %v869_v18 = vld [vmem:[%s4475_s1 + $0x158] sm:$0xff] }
 0x654   :  { %v716_v22 = vmul.f32 %v3127_v2, %v715_v21 }
 0x655   :  { %v712_v19 = vpop.xlane.xlu0 %711 }
 0x656   :  { %3128 = vrcp.f32 %v712_v19  ;;  %v717_v24 = vadd.f32 %v3127_v2, %v716_v22  ;;  %v739_v43 = vand.u32 2147483648, %v712_v19  ;;  %vm733_vm3 = vweird.f32 %v712_v19 }
 0x657   :  { %v737_v47 = vand.u32 2147483647, %v712_v19 }
 0x658   :  { %v721_v31 = vsel %vm720_vm9, %v3127_v2, %v717_v24  ;;  %v740_v49 = vor.u32 1.1754944e-38, %v739_v43  ;;  %v870_v2 = vld [vmem:[%s4475_s1 + $0x160] sm:$0xff] }
 0x659   :  { %v726_v36 = vsel %vm723_vm14, %v725_v35, %v721_v31  ;;  %vm738_vm5 = vcmp.eq.f32.partialorder %v737_v47, 8.507059e+37 }
 0x65a   :  { %v727_v45 = vmul.f32 %v3528_v20, %v726_v36 }
 0x65c   :  { %v3129_v10 = vpop.eup %3128 }
 0x65d   :  { %v729_v23 = vmul.f32 %v3129_v10, %v712_v19  ;;  %vm734_vm15 = vweird.f32 %v3129_v10  ;;  %v868_v19 = vld [vmem:[%s4475_s1 + $0x150] sm:$0xff] }
 0x65e   :  { %vm735_vm4 = vmor %vm733_vm3, %vm734_vm15 }
 0x65f   :  { %v730_v25 = vsub.f32 1.0, %v729_v23 }
 0x661   :  { %v731_v34 = vmul.f32 %v3129_v10, %v730_v25 }
 0x663   :  { %v732_v42 = vadd.f32 %v3129_v10, %v731_v34 }
 0x665   :  { %v736_v48 = vsel %vm735_vm4, %v3129_v10, %v732_v42 }
 0x666   :  { %v741_v51 = vsel %vm738_vm5, %v740_v49, %v736_v48 }
 0x667   :  { %v438_v40 = vpop.f32.mrf.mxu1  ;;  %v742_v53 = vmul.f32 %v3535_v39, %v741_v51 }
 0x668   :  { %2959 = vmatmul.msk.f32.vlgmr.msra.gmra.mxu2 %vm202_vm10, %v438_v40  ;;  %v746_v41 = vpop.permute.xlu0 %745  ;;  %v3069_v40 = vld [vmem:[%s4475_s1 + $0x140] ss:$0 sm:$0xff] }
 0x669   :  { %2976 = vmatpush.msk.msra.mxu0 %vm295_vm13, %v746_v41  ;;  %892 = vmatpush.msra.mxu2 %v871_v17 }
 0x66b   :  { %771 = vmatpush.msra.mxu0 %v744_v44  ;;  %893 = vmatpush.msra.mxu2 %v870_v2  ;;  %v3070_v44 = vld [vmem:[%s4475_s1 + $0x148] ss:$0 sm:$0xff] }
 0x66c   :  { %2977 = vmatmul.msk.f32.vlgmr.msra.gmra.mxu0 %vm234_vm11, %v727_v45 }
 0x66d   :  { %894 = vmatpush.msra.mxu2 %v869_v18  ;;  %v984_v18 = vld [vmem:[%s4475_s1 + $0x180] sm:$0xff] }
 0x66f   :  { %v441_v50 = vpop.f32.mrf.mxu1  ;;  %895 = vmatpush.msra.mxu2 %v868_v19 }
 0x670   :  { %2960 = vmatmul.msk.f32.gmra.mxu2 %vm202_vm10, %v441_v50 }
 0x674   :  { %2978 = vmatmul.msk.f32.gmra.mxu0 %vm234_vm11, %v742_v53 }
 0x677   :  { %v619_v56 = vpop.f32.mrf.mxu1 }
 0x678   :  { %2970 = vmatmul.msk.f32.vlgmr.msrb.gmra.mxu2 %vm202_vm10, %v619_v56 }
 0x67f   :  { %v622_v20 = vpop.f32.mrf.mxu1 }
 0x680   :  { %2971 = vmatmul.msk.f32.gmra.mxu2 %vm202_vm10, %v622_v20 }
 0x6e9   :  { %v773_v57 = vpop.f32.mrf.mxu0 }
 0x6ea   :  { %2979 = vmatmul.msk.f32.vlgmr.msrb.gmra.mxu1 %vm202_vm10, %v773_v57  ;;  %v998_v57 = vld [vmem:[%s4475_s1 + $0x1f0] sm:$0xff] }
 0x6eb   :  { %v467_v59 = vpop.f32.mrf.mxu2  ;;  %999 = vmatpush.msra.mxu3 %v998_v57 }
 0x6ec   :  { %v497_v62 = vadd.f32 %v3491_v52, %v467_v59  ;;  %v3071_v59 = vld [vmem:[%s4475_s1 + $0x170] ss:$0 sm:$0xff] }
 0x6f1   :  { %v776_v58 = vpop.f32.mrf.mxu0 }
 0x6f2   :  { %2980 = vmatmul.msk.f32.gmra.mxu1 %vm202_vm10, %v776_v58  ;;  %v997_v58 = vld [vmem:[%s4475_s1 + $0x1e8] sm:$0xff] }
 0x6f3   :  { %v470_v60 = vpop.f32.mrf.mxu2  ;;  %1000 = vmatpush.msra.mxu3 %v997_v58 }
 0x6f4   :  { %v500_v5 = vadd.f32 %v3495_v55, %v470_v60  ;;  %v996_v60 = vld [vmem:[%s4475_s1 + $0x1e0] sm:$0xff] }
 0x6f5   :  { %1001 = vmatpush.msra.mxu3 %v996_v60 }
 0x6fb   :  { %v648_v61 = vpop.f32.mrf.mxu2 }
 0x6fc   :  { %v654_v39 = vadd.f32 %v648_v61, %v497_v62  ;;  %v995_v61 = vld [vmem:[%s4475_s1 + $0x1d8] sm:$0xff] }
 0x6fd   :  { %1002 = vmatpush.msra.mxu3 %v995_v61 }
 0x703   :  { %v651_v3 = vpop.f32.mrf.mxu2 }
 0x704   :  { %v655_v7 = vadd.f32 %v651_v3, %v500_v5  ;;  %v992_v3 = vld [vmem:[%s4475_s1 + $0x1c0] sm:$0xff] }
 0x767   :  { %v802_v63 = vpop.f32.mrf.mxu1 }
 0x768   :  { %v808_v0 = vadd.f32 %v802_v63, %v654_v39  ;;  %v994_v63 = vld [vmem:[%s4475_s1 + $0x1d0] sm:$0xff] }
 0x769   :  { %1003 = vmatpush.msra.mxu3 %v994_v63 }
 0x76a   :  { %v810_v54 = vadd.f32 %v808_v0, %v3361_v32 }
 0x76c   :  { %v3585_v6 = vadd.f32 %v3068_v1, %v810_v54 }
 0x76e   :  { %v818_v8 = vsel %vm98_vm1, %v3585_v6, 0.0 }
 0x76f   :  { %819 = vadd.xlane.f32.xlu1 %v818_v8  ;;  %v805_v52 = vpop.f32.mrf.mxu1 }
 0x770   :  { %v809_v33 = vadd.f32 %v805_v52, %v655_v7  ;;  %v991_v7 = vld [vmem:[%s4475_s1 + $0x1b8] sm:$0xff] }
 0x772   :  { %v811_v9 = vadd.f32 %v809_v33, %v3368_v38 }
 0x774   :  { %v3590_v11 = vadd.f32 %v3068_v1, %v811_v9  ;;  %v993_v1 = vld [vmem:[%s4475_s1 + $0x1c8] sm:$0xff]  ;;  %v990_v9 = vld [vmem:[%s4475_s1 + $0x1b0] sm:$0xff] }
 0x775   :  { %1004 = vmatpush.msra.mxu3 %v993_v1 }
 0x776   :  { %v821_v37 = vsel %vm102_vm2, %v3590_v11, 0.0 }
 0x777   :  { %822 = vadd.xlane.f32.xlu2 %v821_v37  ;;  %1005 = vmatpush.msra.mxu3 %v992_v3  ;;  %v989_v37 = vld [vmem:[%s4475_s1 + $0x1a8] sm:$0xff] }
 0x779   :  { %1006 = vmatpush.msra.mxu3 %v991_v7 }
 0x77b   :  { %1007 = vmatpush.msra.mxu3 %v990_v9 }
 0x77d   :  { %1008 = vmatpush.msra.mxu3 %v989_v37 }
 0x7e2   :  { %v820_v32 = vpop.xlane.xlu1 %819 }
 0x7e3   :  { %v824_v55 = vmul.f32 %v820_v32, %v3372_v46 }
 0x7e5   :  { %v826_v4 = vsub.f32 %v3585_v6, %v824_v55  ;;  %v988_v55 = vld [vmem:[%s4475_s1 + $0x1a0] sm:$0xff] }
 0x7e6   :  { %1009 = vmatpush.msra.mxu3 %v988_v55 }
 0x7e7   :  { %v828_v12 = vmul.f32 %v826_v4, %v826_v4 }
 0x7e9   :  { %v830_v13 = vsel %vm98_vm1, %v828_v12, 0.0  ;;  %v987_v12 = vld [vmem:[%s4475_s1 + $0x198] sm:$0xff] }
 0x7ea   :  { %831 = vadd.xlane.f32.xlu0 %v830_v13  ;;  %v823_v14 = vpop.xlane.xlu2 %822  ;;  %1010 = vmatpush.msra.mxu3 %v987_v12 }
 0x7eb   :  { %v825_v15 = vmul.f32 %v823_v14, %v3372_v46 }
 0x7ed   :  { %v827_v38 = vsub.f32 %v3590_v11, %v825_v15  ;;  %v986_v15 = vld [vmem:[%s4475_s1 + $0x190] sm:$0xff] }
 0x7ee   :  { %1011 = vmatpush.msra.mxu3 %v986_v15 }
 0x7ef   :  { %v829_v16 = vmul.f32 %v827_v38, %v827_v38 }
 0x7f1   :  { %v833_v28 = vsel %vm102_vm2, %v829_v16, 0.0 }
 0x7f2   :  { %834 = vadd.xlane.f32.xlu1 %v833_v28  ;;  %v985_v28 = vld [vmem:[%s4475_s1 + $0x188] sm:$0xff] }
 0x7f3   :  { %1012 = vmatpush.msra.mxu3 %v985_v28 }
 0x7f5   :  { %1013 = vmatpush.msra.mxu3 %v984_v18 }
 0x85d   :  { %v832_v29 = vpop.xlane.xlu0 %831 }
 0x85e   :  { %v836_v21 = vmul.f32 %v832_v29, %v3372_v46 }
 0x860   :  { %v838_v10 = vadd.f32 1e-06, %v836_v21  ;;  %v983_v21 = vld [vmem:[%s4475_s1 + $0x178] sm:$0xff] }
 0x861   :  { %1014 = vmatpush.msra.mxu3 %v983_v21 }
 0x862   :  { %3130 = vrsqrt.f32 %v838_v10  ;;  %vm846_vm7 = vweird.f32 %v838_v10 }
 0x865   :  { %v835_v22 = vpop.xlane.xlu1 %834 }
 0x866   :  { %v837_v23 = vmul.f32 %v835_v22, %v3372_v46 }
 0x868   :  { %v3131_v24 = vpop.eup %3130  ;;  %v839_v25 = vadd.f32 1e-06, %v837_v23 }
 0x869   :  { %v841_v26 = vmul.f32 %v3131_v24, %v838_v10  ;;  %vm847_vm6 = vweird.f32 %v3131_v24 }
 0x86a   :  { %3132 = vrsqrt.f32 %v839_v25  ;;  %vm848_vm8 = vmor %vm846_vm7, %vm847_vm6  ;;  %vm856_vm14 = vweird.f32 %v839_v25 }
 0x86b   :  { %v842_v27 = vmul.f32 %v3131_v24, %v841_v26 }
 0x86d   :  { %v843_v30 = vmul.f32 0.5, %v842_v27 }
 0x86f   :  { %v844_v31 = vsub.f32 1.5, %v843_v30 }
 0x870   :  { %v3133_v34 = vpop.eup %3132 }
 0x871   :  { %v845_v35 = vmul.f32 %v3131_v24, %v844_v31  ;;  %v851_v36 = vmul.f32 %v3133_v34, %v839_v25  ;;  %vm857_vm9 = vweird.f32 %v3133_v34 }
 0x872   :  { %vm858_vm15 = vmor %vm856_vm14, %vm857_vm9 }
 0x873   :  { %v849_v41 = vsel %vm848_vm8, %v3131_v24, %v845_v35  ;;  %v852_v42 = vmul.f32 %v3133_v34, %v851_v36 }
 0x874   :  { %v860_v43 = vmul.f32 %v849_v41, %v826_v4 }
 0x875   :  { %v853_v45 = vmul.f32 0.5, %v852_v42 }
 0x876   :  { %v863_v47 = vmul.f32 %v3069_v40, %v860_v43 }
 0x877   :  { %v854_v48 = vsub.f32 1.5, %v853_v45 }
 0x878   :  { %v866_v49 = vadd.f32 %v3070_v44, %v863_v47 }
 0x879   :  { %v855_v50 = vmul.f32 %v3133_v34, %v854_v48 }
 0x87a   :  { %2981 = vmatmul.msk.f32.vlgmr.msra.gmra.mxu2 %vm98_vm1, %v866_v49 }
 0x87b   :  { %v859_v51 = vsel %vm858_vm15, %v3133_v34, %v855_v50 }
 0x87c   :  { %v861_v53 = vmul.f32 %v859_v51, %v827_v38 }
 0x87e   :  { %v864_v56 = vmul.f32 %v3069_v40, %v861_v53 }
 0x880   :  { %v867_v20 = vadd.f32 %v3070_v44, %v864_v56 }
 0x882   :  { %2982 = vmatmul.msk.f32.gmra.mxu2 %vm98_vm1, %v867_v20 }
 0x8fd   :  { %v897_v62 = vpop.f32.mrf.mxu2 }
 0x8fe   :  { %v3637_v39 = vadd.f32 %v3071_v59, %v897_v62 }
 0x900   :  { %v3643_v0 = vmul.f32 0.70710677, %v3637_v39 }
 0x902   :  { %v911_v54 = vand.u32 2147483647, %v3643_v0  ;;  %vm907_vm15 = vcmp.ge.f32.partialorder %v3643_v0, 0.0 }
 0x904   :  { %v913_v5 = vmul.f32 0.3275911, %v911_v54  ;;  %v965_v26 = vsub.f32 0.0, %v911_v54 }
 0x905   :  { %v900_v8 = vpop.f32.mrf.mxu2 }
 0x906   :  { %v915_v52 = vadd.f32 1.0, %v913_v5  ;;  %v3655_v33 = vadd.f32 %v3071_v59, %v900_v8  ;;  %v967_v36 = vmul.f32 %v965_v26, %v911_v54  ;;  %v3256_v8 = vmov -1.0  }
 0x908   :  { %3134 = vrcp.f32 %v915_v52  ;;  %v3664_v32 = vmul.f32 0.70710677, %v3655_v33  ;;  %v928_v2 = vand.u32 2147483648, %v915_v52  ;;  %v926_v29 = vand.u32 2147483647, %v915_v52 }
 0x909   :  { %vm922_vm4 = vweird.f32 %v915_v52  ;;  %v969_v47 = vmul.f32 1.442695, %v967_v36  ;;  %v1083_v36 = vld [vmem:[%s4475_s1 + $0x228] sm:$0xff] }
 0x90a   :  { %v912_v4 = vand.u32 2147483647, %v3664_v32  ;;  %v929_v22 = vor.u32 1.1754944e-38, %v928_v2  ;;  %vm927_vm6 = vcmp.eq.f32.partialorder %v926_v29, 8.507059e+37  ;;  %1104 = vmatpush.msrb.mxu0 %v1083_v36 }
 0x90c   :  { %v914_v13 = vmul.f32 0.3275911, %v912_v4  ;;  %v966_v50 = vsub.f32 0.0, %v912_v4 }
 0x90e   :  { %v3135_v14 = vpop.eup %3134  ;;  %v916_v16 = vadd.f32 1.0, %v914_v13  ;;  %v968_v58 = vmul.f32 %v966_v50, %v912_v4  ;;  %v903_v4 = vmul.f32 0.5, %v3637_v39  ;;  %v3072_v39 = vld [vmem:[%s4475_s1 + $0x1f8] ss:$0 sm:$0xff] }
 0x90f   :  { %v918_v38 = vmul.f32 %v3135_v14, %v915_v52  ;;  %vm923_vm3 = vweird.f32 %v3135_v14  ;;  %v909_v52 = vsel %vm907_vm15, 1.0, %v3256_v8 }
 0x910   :  { %3136 = vrcp.f32 %v916_v16  ;;  %vm924_vm5 = vmor %vm922_vm4, %vm923_vm3  ;;  %v943_v35 = vand.u32 2147483648, %v916_v16  ;;  %v941_v41 = vand.u32 2147483647, %v916_v16  ;;  %vm937_vm8 = vweird.f32 %v916_v16 }
 0x911   :  { %v919_v17 = vsub.f32 1.0, %v918_v38  ;;  %3138 = vpow2.f32 %v969_v47  ;;  %v971_v63 = vmul.f32 1.442695, %v968_v58  ;;  %vm908_vm3 = vcmp.ge.f32.partialorder %v3664_v32, 0.0 }
 0x912   :  { %v944_v45 = vor.u32 1.1754944e-38, %v943_v35  ;;  %vm942_vm14 = vcmp.eq.f32.partialorder %v941_v41, 8.507059e+37  ;;  %v1081_v41 = vld [vmem:[%s4475_s1 + $0x218] sm:$0xff] }
 0x913   :  { %v920_v19 = vmul.f32 %v3135_v14, %v919_v17  ;;  %3140 = vpow2.f32 %v971_v63  ;;  %v904_v17 = vmul.f32 0.5, %v3655_v33 }
 0x915   :  { %v921_v10 = vadd.f32 %v3135_v14, %v920_v19 }
 0x916   :  { %v3137_v23 = vpop.eup %3136 }
 0x917   :  { %v925_v24 = vsel %vm924_vm5, %v3135_v14, %v921_v10  ;;  %v933_v27 = vmul.f32 %v3137_v23, %v916_v16  ;;  %vm938_vm7 = vweird.f32 %v3137_v23  ;;  %v3139_v1 = vpop.eup %3138  ;;  %v910_v16 = vsel %vm908_vm3, 1.0, %v3256_v8 }
 0x918   :  { %v930_v25 = vsel %vm927_vm6, %v929_v22, %v925_v24  ;;  %vm939_vm9 = vmor %vm937_vm8, %vm938_vm7 }
 0x919   :  { %v947_v30 = vmul.f32 1.0614054, %v930_v25  ;;  %v934_v31 = vsub.f32 1.0, %v933_v27  ;;  %v3141_v14 = vpop.eup %3140 }
 0x91b   :  { %v949_v34 = vadd.f32 -1.4531521, %v947_v30  ;;  %v935_v40 = vmul.f32 %v3137_v23, %v934_v31 }
 0x91d   :  { %v951_v42 = vmul.f32 %v949_v34, %v930_v25  ;;  %v936_v43 = vadd.f32 %v3137_v23, %v935_v40  ;;  %v1082_v40 = vld [vmem:[%s4475_s1 + $0x220] sm:$0xff] }
 0x91e   :  { %1105 = vmatpush.msrb.mxu0 %v1082_v40 }
 0x91f   :  { %v953_v44 = vadd.f32 1.4214138, %v951_v42  ;;  %v940_v48 = vsel %vm939_vm9, %v3137_v23, %v936_v43  ;;  %v1080_v42 = vld [vmem:[%s4475_s1 + $0x210] sm:$0xff] }
 0x920   :  { %v945_v51 = vsel %vm942_vm14, %v944_v45, %v940_v48  ;;  %1106 = vmatpush.msrb.mxu0 %v1081_v41 }
 0x921   :  { %v955_v49 = vmul.f32 %v953_v44, %v930_v25  ;;  %v948_v53 = vmul.f32 1.0614054, %v945_v51 }
 0x922   :  { %1107 = vmatpush.msrb.mxu0 %v1080_v42 }
 0x923   :  { %v957_v56 = vadd.f32 -0.28449672, %v955_v49  ;;  %v950_v20 = vadd.f32 -1.4531521, %v948_v53 }
 0x925   :  { %v959_v57 = vmul.f32 %v957_v56, %v930_v25  ;;  %v952_v59 = vmul.f32 %v950_v20, %v945_v51 }
 0x927   :  { %v961_v60 = vadd.f32 0.2548296, %v959_v57  ;;  %v954_v61 = vadd.f32 1.4214138, %v952_v59  ;;  %v3073_v59 = vld [vmem:[%s4475_s1 + $0x200] ss:$0 sm:$0xff] }
 0x929   :  { %v963_v62 = vmul.f32 %v961_v60, %v930_v25  ;;  %v956_v54 = vmul.f32 %v954_v61, %v945_v51 }
 0x92b   :  { %v973_v3 = vmul.f32 %v3139_v1, %v963_v62  ;;  %v958_v5 = vadd.f32 -0.28449672, %v956_v54  ;;  %v3074_v1 = vld [vmem:[%s4475_s1 + $0x208] ss:$0 sm:$0xff] }
 0x92d   :  { %v975_v7 = vsub.f32 1.0, %v973_v3  ;;  %v960_v9 = vmul.f32 %v958_v5, %v945_v51 }
 0x92f   :  { %v977_v37 = vmul.f32 %v975_v7, %v909_v52  ;;  %v962_v55 = vadd.f32 0.2548296, %v960_v9 }
 0x931   :  { %v979_v12 = vadd.f32 1.0, %v977_v37  ;;  %v964_v13 = vmul.f32 %v962_v55, %v945_v51 }
 0x933   :  { %v981_v15 = vmul.f32 %v979_v12, %v903_v4  ;;  %v974_v38 = vmul.f32 %v3141_v14, %v964_v13  ;;  %v3075_v12 = vld [vmem:[%s4475_s1 + $0x230] ss:$0 sm:$0xff] }
 0x935   :  { %1015 = vmatmul.f32.vlgmr.msra.gmra.mxu3 %v981_v15  ;;  %v976_v0 = vsub.f32 1.0, %v974_v38 }
 0x937   :  { %v978_v28 = vmul.f32 %v976_v0, %v910_v16 }
 0x939   :  { %v980_v2 = vadd.f32 1.0, %v978_v28  ;;  %v1115_v28 = vld [vmem:[%s4475_s1 + $0x238] sm:$0xff] }
 0x93a   :  { %1413 = vmatpush.msrb.mxu3 %v1115_v28 }
 0x93b   :  { %v982_v18 = vmul.f32 %v980_v2, %v904_v17 }
 0x93d   :  { %1018 = vmatmul.f32.gmra.mxu3 %v982_v18 }
 0x9b8   :  { %v1016_v19 = vpop.f32.mrf.mxu3 }
 0x9b9   :  { %v1022_v29 = vadd.f32 %v1016_v19, %v3585_v6 }
 0x9bb   :  { %v3695_v21 = vadd.f32 %v3072_v39, %v1022_v29 }
 0x9bd   :  { %v1030_v32 = vsel %vm98_vm1, %v3695_v21, 0.0 }
 0x9be   :  { %1031 = vadd.xlane.f32.xlu2 %v1030_v32  ;;  %v3775_v32 = vld [vmem:[%s4475_s1 + $0xd0] sm:$0xff] }
 0x9c0   :  { %v1019_v10 = vpop.f32.mrf.mxu3 }
 0x9c1   :  { %v1023_v22 = vadd.f32 %v1019_v10, %v3590_v11 }
 0x9c3   :  { %v3700_v33 = vadd.f32 %v3072_v39, %v1023_v22 }
 0x9c5   :  { %v1033_v23 = vsel %vm102_vm2, %v3700_v33, 0.0 }
 0x9c6   :  { %1034 = vadd.xlane.f32.xlu1 %v1033_v23 }
 0xa31   :  { %v1032_v24 = vpop.xlane.xlu2 %1031 }
 0xa32   :  { %v1036_v25 = vmul.f32 %v1032_v24, %v3372_v46  ;;  %v3782_v24 = vld [vmem:[%s4475_s1 + $0xd8] sm:$0x3] }
 0xa34   :  { %v1038_v6 = vsub.f32 %v3695_v21, %v1036_v25 }
 0xa36   :  { %v1040_v26 = vmul.f32 %v1038_v6, %v1038_v6 }
 0xa38   :  { %v1042_v27 = vsel %vm98_vm1, %v1040_v26, 0.0 }
 0xa39   :  { %1043 = vadd.xlane.f32.xlu2 %v1042_v27  ;;  %v1035_v30 = vpop.xlane.xlu1 %1034 }
 0xa3a   :  { %v1037_v31 = vmul.f32 %v1035_v30, %v3372_v46 }
 0xa3c   :  { %v1039_v11 = vsub.f32 %v3700_v33, %v1037_v31 }
 0xa3e   :  { %v1041_v34 = vmul.f32 %v1039_v11, %v1039_v11 }
 0xa40   :  { %v1045_v35 = vsel %vm102_vm2, %v1041_v34, 0.0 }
 0xa41   :  { %1046 = vadd.xlane.f32.xlu0 %v1045_v35 }
 0xaac   :  { %v1044_v43 = vpop.xlane.xlu2 %1043 }
 0xaad   :  { %v1048_v44 = vmul.f32 %v1044_v43, %v3372_v46 }
 0xaaf   :  { %v1050_v45 = vadd.f32 1e-06, %v1048_v44 }
 0xab1   :  { %3142 = vrsqrt.f32 %v1050_v45  ;;  %vm1058_vm5 = vweird.f32 %v1050_v45 }
 0xab4   :  { %v1047_v47 = vpop.xlane.xlu0 %1046 }
 0xab5   :  { %v1049_v48 = vmul.f32 %v1047_v47, %v3372_v46 }
 0xab7   :  { %v3143_v49 = vpop.eup %3142  ;;  %v1051_v51 = vadd.f32 1e-06, %v1049_v48 }
 0xab8   :  { %v1053_v50 = vmul.f32 %v3143_v49, %v1050_v45  ;;  %vm1059_vm4 = vweird.f32 %v3143_v49 }
 0xab9   :  { %3144 = vrsqrt.f32 %v1051_v51  ;;  %vm1060_vm6 = vmor %vm1058_vm5, %vm1059_vm4  ;;  %vm1068_vm8 = vweird.f32 %v1051_v51 }
 0xaba   :  { %v1054_v53 = vmul.f32 %v3143_v49, %v1053_v50 }
 0xabc   :  { %v1055_v56 = vmul.f32 0.5, %v1054_v53 }
 0xabe   :  { %v1056_v20 = vsub.f32 1.5, %v1055_v56 }
 0xabf   :  { %v3145_v57 = vpop.eup %3144 }
 0xac0   :  { %v1057_v58 = vmul.f32 %v3143_v49, %v1056_v20  ;;  %v1063_v60 = vmul.f32 %v3145_v57, %v1051_v51  ;;  %vm1069_vm7 = vweird.f32 %v3145_v57 }
 0xac1   :  { %vm1070_vm9 = vmor %vm1068_vm8, %vm1069_vm7 }
 0xac2   :  { %v1061_v61 = vsel %vm1060_vm6, %v3143_v49, %v1057_v58  ;;  %v1064_v63 = vmul.f32 %v3145_v57, %v1063_v60 }
 0xac3   :  { %v1072_v62 = vmul.f32 %v1061_v61, %v1038_v6 }
 0xac4   :  { %v1065_v3 = vmul.f32 0.5, %v1064_v63 }
 0xac5   :  { %v1075_v54 = vmul.f32 %v3073_v59, %v1072_v62 }
 0xac6   :  { %v1066_v5 = vsub.f32 1.5, %v1065_v3 }
 0xac7   :  { %v1078_v7 = vadd.f32 %v3074_v1, %v1075_v54 }
 0xac8   :  { %v1067_v52 = vmul.f32 %v3145_v57, %v1066_v5 }
 0xac9   :  { %2983 = vmatmul.msk.f32.vlgmr.msrb.gmra.mxu0 %vm98_vm1, %v1078_v7 }
 0xaca   :  { %v1071_v9 = vsel %vm1070_vm9, %v3145_v57, %v1067_v52 }
 0xacb   :  { %v1073_v37 = vmul.f32 %v1071_v9, %v1039_v11 }
 0xacd   :  { %v1076_v55 = vmul.f32 %v3073_v59, %v1073_v37 }
 0xacf   :  { %v1079_v4 = vadd.f32 %v3074_v1, %v1076_v55 }
 0xad1   :  { %2984 = vmatmul.msk.f32.gmra.mxu0 %vm98_vm1, %v1079_v4 }
 0xb46   :  { %v1109_v13 = vpop.f32.mrf.mxu0 }
 0xb47   :  { %v3735_v14 = vadd.f32 %v3075_v12, %v1109_v13 }
 0xb49   :  { %1121 = vrot.lane.b32.xlu2 %v3735_v14, %s3245_s26 }
 0xb4e   :  { %v1112_v15 = vpop.f32.mrf.mxu0 }
 0xb4f   :  { %v3739_v38 = vadd.f32 %v3075_v12, %v1112_v15 }
 0xb51   :  { %1123 = vrot.lane.b32.xlu1 %v3739_v38, %s3245_s26  ;;  %1206 = vrot.lane.b32.xlu2 %v3739_v38, %s3246_s3 }
 0xb59   :  { %1246 = vrot.lane.b32.xlu2 %v3739_v38, %s3247_s4 }
 0xb61   :  { %1244 = vrot.lane.b32.xlu2 %v3735_v14, %s3247_s4 }
 0xb69   :  { %1242 = vrot.lane.b32.xlu2 %v3739_v38, %s3248_s5 }
 0xb71   :  { %1581 = vrot.lane.b32.xlu2 %v3739_v38, %s3249_s6 }
 0xb79   :  { %1421 = vrot.lane.b32.xlu2 %v3735_v14, %s3251_s8 }
 0xb81   :  { %1423 = vrot.lane.b32.xlu2 %v3739_v38, %s3251_s8 }
 0xba3   :  { %v1122_v0 = vpop.permute.xlu2 %1121 }
 0xbab   :  { %v1207_v16 = vpop.permute.xlu2 %1206 }
 0xbac   :  { %2989 = vmatpush.msk.msrb.mxu2 %vm295_vm13, %v1207_v16 }
 0xbb3   :  { %v1247_v17 = vpop.permute.xlu2 %1246 }
 0xbb4   :  { %2992 = vmatpush.xpose.msk.msra.mxu0 %vm202_vm10, %v1247_v17 }
 0xbbb   :  { %v1245_v2 = vpop.permute.xlu2 %1244 }
 0xbbc   :  { %2993 = vmatpush.xpose.msk.msra.mxu0 %vm202_vm10, %v1245_v2 }
 0xbc3   :  { %v1124_v18 = vpop.permute.xlu1 %1123  ;;  %v3763_v39 = vpop.permute.xlu2 %1242 }
 0xbc4   :  { %2985 = vmatpush.xpose.msk.msra.mxu1 %vm202_vm10, %v1124_v18 }
 0xbc8   :  { %2986 = vmatpush.xpose.msk.msra.mxu1 %vm202_vm10, %v1122_v0 }
 0xbcb   :  { %2987 = vmatmul.msk.f32.vlgmr.msra.gmra.mxu1 %vm202_vm10, %v3735_v14  ;;  %v1582_v19 = vpop.permute.xlu2 %1581 }
 0xbcc   :  { %3012 = vmatpush.xpose.msk.msra.mxu3 %vm202_vm10, %v1582_v19 }
 0xbd3   :  { %2988 = vmatmul.msk.f32.gmra.mxu1 %vm202_vm10, %v3739_v38  ;;  %v1422_v12 = vpop.permute.xlu2 %1421 }
 0xbdb   :  { %v1424_v13 = vpop.permute.xlu2 %1423 }
 0xc48   :  { %v1150_v29 = vpop.f32.mrf.mxu1 }
 0xc49   :  { %v1151_v10 = vadd.f32 %v3775_v32, %v1150_v29 }
 0xc4b   :  { %v1156_v22 = vsel %vm234_vm11, %v1151_v10, -inf }
 0xc4c   :  { %1157 = vmax.xlane.f32.xlu0 %v1156_v22 }
 0xc50   :  { %v1153_v23 = vpop.f32.mrf.mxu1 }
 0xc51   :  { %v1154_v25 = vadd.f32 %v3782_v24, %v1153_v23 }
 0xc53   :  { %v1159_v6 = vsel %vm238_vm12, %v1154_v25, -inf }
 0xc54   :  { %1160 = vmax.xlane.f32.xlu0 %v1159_v6 }
 0xcbf   :  { %v1158_v26 = vpop.xlane.xlu0 %1157 }
 0xcc0   :  { %v1162_v27 = vsub.f32 %v1151_v10, %v1158_v26 }
 0xcc2   :  { %v1164_v30 = vmul.f32 1.442695, %v1162_v27 }
 0xcc4   :  { %3146 = vpow2.f32 %v1164_v30 }
 0xcc7   :  { %v1161_v31 = vpop.xlane.xlu0 %1160 }
 0xcc8   :  { %v1163_v11 = vsub.f32 %v1154_v25, %v1161_v31 }
 0xcca   :  { %v3147_v34 = vpop.eup %3146  ;;  %v1166_v35 = vmul.f32 1.442695, %v1163_v11 }
 0xccb   :  { %v1168_v36 = vsel %vm234_vm11, %v3147_v34, 0.0 }
 0xccc   :  { %3148 = vpow2.f32 %v1166_v35  ;;  %1169 = vadd.xlane.f32.xlu0 %v1168_v36 }
 0xcd2   :  { %v3149_v40 = vpop.eup %3148 }
 0xcd3   :  { %v1171_v41 = vsel %vm238_vm12, %v3149_v40, 0.0 }
 0xcd4   :  { %1172 = vadd.xlane.f32.xlu1 %v1171_v41 }
 0xce0   :  { %1204 = vrot.lane.b32.xlu0 %v3735_v14, %s3246_s3 }
 0xce8   :  { %1240 = vrot.lane.b32.xlu0 %v3735_v14, %s3248_s5 }
 0xced   :  { %1579 = vrot.lane.b32.xlu1 %v3735_v14, %s3249_s6 }
 0xcf0   :  { %1427 = vrot.lane.b32.xlu0 %v3739_v38, %s3252_s9 }
 0xcf8   :  { %1425 = vrot.lane.b32.xlu0 %v3735_v14, %s3252_s9 }
 0xd00   :  { %1575 = vrot.lane.b32.xlu0 %v3735_v14, %s3250_s7 }
 0xd08   :  { %1577 = vrot.lane.b32.xlu0 %v3739_v38, %s3250_s7 }
 0xd3f   :  { %v1170_v42 = vpop.xlane.xlu0 %1169 }
 0xd40   :  { %3150 = vrcp.f32 %v1170_v42  ;;  %v1185_v48 = vand.u32 2147483648, %v1170_v42  ;;  %v1183_v50 = vand.u32 2147483647, %v1170_v42  ;;  %vm1179_vm15 = vweird.f32 %v1170_v42 }
 0xd42   :  { %v1186_v56 = vor.u32 1.1754944e-38, %v1185_v48  ;;  %vm1184_vm4 = vcmp.eq.f32.partialorder %v1183_v50, 8.507059e+37 }
 0xd46   :  { %v3151_v43 = vpop.eup %3150 }
 0xd47   :  { %v1175_v44 = vmul.f32 %v3151_v43, %v1170_v42  ;;  %v1173_v45 = vpop.xlane.xlu1 %1172  ;;  %vm1180_vm14 = vweird.f32 %v3151_v43 }
 0xd48   :  { %3152 = vrcp.f32 %v1173_v45  ;;  %vm1181_vm3 = vmor %vm1179_vm15, %vm1180_vm14  ;;  %v1200_v61 = vand.u32 2147483648, %v1173_v45  ;;  %v1198_v1 = vand.u32 2147483647, %v1173_v45  ;;  %vm1194_vm6 = vweird.f32 %v1173_v45 }
 0xd49   :  { %v1176_v47 = vsub.f32 1.0, %v1175_v44 }
 0xd4a   :  { %v1201_v3 = vor.u32 1.1754944e-38, %v1200_v61  ;;  %vm1199_vm8 = vcmp.eq.f32.partialorder %v1198_v1, 8.507059e+37 }
 0xd4b   :  { %v1177_v49 = vmul.f32 %v3151_v43, %v1176_v47 }
 0xd4d   :  { %v1178_v51 = vadd.f32 %v3151_v43, %v1177_v49 }
 0xd4e   :  { %v3153_v53 = vpop.eup %3152 }
 0xd4f   :  { %v1182_v20 = vsel %vm1181_vm3, %v3151_v43, %v1178_v51  ;;  %v1190_v57 = vmul.f32 %v3153_v53, %v1173_v45  ;;  %vm1195_vm5 = vweird.f32 %v3153_v53 }
 0xd50   :  { %v1187_v58 = vsel %vm1184_vm4, %v1186_v56, %v1182_v20  ;;  %vm1196_vm7 = vmor %vm1194_vm6, %vm1195_vm5 }
 0xd51   :  { %v1191_v59 = vsub.f32 1.0, %v1190_v57  ;;  %v1188_v60 = vmul.f32 %v3147_v34, %v1187_v58 }
 0xd52   :  { %v1205_v62 = vpop.permute.xlu0 %1204 }
 0xd53   :  { %v1192_v63 = vmul.f32 %v3153_v53, %v1191_v59  ;;  %1232 = vmatpush.msrb.mxu2 %v1205_v62 }
 0xd54   :  { %2990 = vmatmul.msk.f32.vlgmr.msrb.gmra.mxu2 %vm234_vm11, %v1188_v60 }
 0xd55   :  { %v1193_v54 = vadd.f32 %v3153_v53, %v1192_v63 }
 0xd57   :  { %v1197_v5 = vsel %vm1196_vm7, %v3153_v53, %v1193_v54 }
 0xd58   :  { %v1202_v7 = vsel %vm1199_vm8, %v1201_v3, %v1197_v5 }
 0xd59   :  { %v1203_v52 = vmul.f32 %v3149_v40, %v1202_v7 }
 0xd5a   :  { %v1241_v9 = vpop.permute.xlu0 %1240 }
 0xd5b   :  { %2994 = vmatmul.msk.f32.vlgmr.msra.gmra.mxu0 %vm202_vm10, %v1241_v9 }
 0xd5c   :  { %2991 = vmatmul.msk.f32.gmra.mxu2 %vm234_vm11, %v1203_v52 }
 0xd5f   :  { %v1580_v37 = vpop.permute.xlu1 %1579 }
 0xd60   :  { %3013 = vmatpush.xpose.msk.msra.mxu3 %vm202_vm10, %v1580_v37 }
 0xd62   :  { %v1428_v55 = vpop.permute.xlu0 %1427 }
 0xd63   :  { %2995 = vmatmul.msk.f32.gmra.mxu0 %vm202_vm10, %v3763_v39 }
 0xd64   :  { %3003 = vmatpush.xpose.msk.msrb.mxu0 %vm202_vm10, %v1428_v55 }
 0xd6a   :  { %v1426_v4 = vpop.permute.xlu0 %1425 }
 0xd6b   :  { %3004 = vmatpush.xpose.msk.msrb.mxu0 %vm202_vm10, %v1426_v4 }
 0xd6e   :  { %3005 = vmatmul.msk.f32.vlgmr.msrb.gmra.mxu0 %vm202_vm10, %v1422_v12 }
 0xd72   :  { %v1576_v19 = vpop.permute.xlu0 %1575 }
 0xd76   :  { %3006 = vmatmul.msk.f32.gmra.mxu0 %vm202_vm10, %v1424_v13 }
 0xd7a   :  { %v1578_v23 = vpop.permute.xlu0 %1577 }
 0xdd7   :  { %v1234_v15 = vpop.f32.mrf.mxu2 }
 0xdd8   :  { %v1273_v0 = vpop.f32.mrf.mxu0  ;;  %3001 = vmatmul.msk.f32.vlgmr.msrb.gmra.mxu3 %vm202_vm10, %v1234_v15 }
 0xdd9   :  { %v1274_v16 = vadd.f32 %v3775_v32, %v1273_v0 }
 0xddb   :  { %v1279_v28 = vsel %vm234_vm11, %v1274_v16, -inf }
 0xddc   :  { %1280 = vmax.xlane.f32.xlu2 %v1279_v28 }
 0xddf   :  { %v1237_v17 = vpop.f32.mrf.mxu2 }
 0xde0   :  { %v1276_v2 = vpop.f32.mrf.mxu0  ;;  %3002 = vmatmul.msk.f32.gmra.mxu3 %vm202_vm10, %v1237_v17 }
 0xde1   :  { %v1277_v18 = vadd.f32 %v3782_v24, %v1276_v2 }
 0xde3   :  { %v1282_v39 = vsel %vm238_vm12, %v1277_v18, -inf }
 0xde4   :  { %1283 = vmax.xlane.f32.xlu0 %v1282_v39 }
 0xde8   :  { %3014 = vmatmul.msk.f32.vlgmr.msra.gmra.mxu3 %vm202_vm10, %v1576_v19 }
 0xdeb   :  { %v1454_v29 = vpop.f32.mrf.mxu0 }
 0xdec   :  { %v1455_v10 = vadd.f32 %v3775_v32, %v1454_v29 }
 0xdee   :  { %v1460_v22 = vsel %vm234_vm11, %v1455_v10, -inf }
 0xdef   :  { %1461 = vmax.xlane.f32.xlu1 %v1460_v22 }
 0xdf0   :  { %3015 = vmatmul.msk.f32.gmra.mxu3 %vm202_vm10, %v1578_v23 }
 0xdf3   :  { %v1457_v25 = vpop.f32.mrf.mxu0 }
 0xdf4   :  { %v1458_v6 = vadd.f32 %v3782_v24, %v1457_v25 }
 0xdf6   :  { %v1463_v26 = vsel %vm238_vm12, %v1458_v6, -inf }
 0xdf7   :  { %1464 = vmax.xlane.f32.xlu2 %v1463_v26 }
 0xe4f   :  { %v1281_v27 = vpop.xlane.xlu2 %1280 }
 0xe50   :  { %v1285_v30 = vsub.f32 %v1274_v16, %v1281_v27 }
 0xe52   :  { %v1287_v31 = vmul.f32 1.442695, %v1285_v30 }
 0xe54   :  { %3154 = vpow2.f32 %v1287_v31 }
 0xe57   :  { %v1284_v36 = vpop.xlane.xlu0 %1283 }
 0xe58   :  { %v1286_v43 = vsub.f32 %v1277_v18, %v1284_v36 }
 0xe5a   :  { %v3824_v11 = vpop.eup %3154  ;;  %v1289_v45 = vmul.f32 1.442695, %v1286_v43 }
 0xe5b   :  { %v3826_v34 = vpop.f32.mrf.mxu3  ;;  %v1291_v35 = vsel %vm234_vm11, %v3824_v11, 0.0 }
 0xe5c   :  { %1292 = vadd.xlane.f32.xlu2 %v1291_v35 }
 0xe62   :  { %v1462_v40 = vpop.xlane.xlu1 %1461 }
 0xe63   :  { %v1466_v41 = vsub.f32 %v1455_v10, %v1462_v40  ;;  %v3830_v42 = vpop.f32.mrf.mxu3 }
 0xe65   :  { %v1468_v44 = vmul.f32 1.442695, %v1466_v41 }
 0xe67   :  { %3156 = vpow2.f32 %v1468_v44 }
 0xe68   :  { %3158 = vpow2.f32 %v1289_v45 }
 0xe6a   :  { %v1465_v47 = vpop.xlane.xlu2 %1464 }
 0xe6b   :  { %v1608_v48 = vpop.f32.mrf.mxu3  ;;  %v1467_v51 = vsub.f32 %v1458_v6, %v1465_v47 }
 0xe6c   :  { %v1609_v49 = vadd.f32 %v3775_v32, %v1608_v48 }
 0xe6d   :  { %v3833_v50 = vpop.eup %3156  ;;  %v1470_v20 = vmul.f32 1.442695, %v1467_v51 }
 0xe6e   :  { %v1614_v53 = vsel %vm234_vm11, %v1609_v49, -inf  ;;  %v1472_v56 = vsel %vm234_vm11, %v3833_v50, 0.0  ;;  %v3838_v57 = vpop.eup %3158 }
 0xe6f   :  { %1615 = vmax.xlane.f32.xlu0 %v1614_v53  ;;  %1473 = vadd.xlane.f32.xlu1 %v1472_v56  ;;  %3160 = vpow2.f32 %v1470_v20  ;;  %v1294_v32 = vsel %vm238_vm12, %v3838_v57, 0.0 }
 0xe73   :  { %v1611_v58 = vpop.f32.mrf.mxu3 }
 0xe74   :  { %v1612_v59 = vadd.f32 %v3782_v24, %v1611_v58  ;;  %1329 = vrot.lane.b32.xlu2 %v3739_v38, %s3253_s12 }
 0xe75   :  { %v3846_v61 = vpop.eup %3160 }
 0xe76   :  { %v1617_v60 = vsel %vm238_vm12, %v1612_v59, -inf  ;;  %v1475_v62 = vsel %vm238_vm12, %v3846_v61, 0.0 }
 0xe77   :  { %1295 = vadd.xlane.f32.xlu0 %v1294_v32  ;;  %1618 = vmax.xlane.f32.xlu1 %v1617_v60 }
 0xe7c   :  { %1510 = vrot.lane.b32.xlu2 %v3739_v38, %s3254_s0 }
 0xe7f   :  { %1476 = vadd.xlane.f32.xlu1 %v1475_v62 }
 0xe84   :  { %1662 = vrot.lane.b32.xlu2 %v3735_v14, %s3255_s13 }
 0xe8b   :  { %1327 = vrot.lane.b32.xlu0 %v3735_v14, %s3253_s12 }
 0xe93   :  { %1508 = vrot.lane.b32.xlu0 %v3735_v14, %s3254_s0 }
 0xecf   :  { %v1293_v24 = vpop.xlane.xlu2 %1292 }
 0xed0   :  { %3162 = vrcp.f32 %v1293_v24  ;;  %v1308_v18 = vand.u32 2147483648, %v1293_v24  ;;  %vm1302_vm14 = vweird.f32 %v1293_v24  ;;  %v1306_v29 = vand.u32 2147483647, %v1293_v24 }
 0xed2   :  { %v1309_v6 = vor.u32 1.1754944e-38, %v1308_v18  ;;  %vm1307_vm3 = vcmp.eq.f32.partialorder %v1306_v29, 8.507059e+37 }
 0xed6   :  { %v3163_v5 = vpop.eup %3162 }
 0xed7   :  { %v1330_v63 = vpop.permute.xlu2 %1329  ;;  %v1298_v52 = vmul.f32 %v3163_v5, %v1293_v24  ;;  %vm1303_vm9 = vweird.f32 %v3163_v5 }
 0xed8   :  { %2996 = vmatpush.msk.msrb.mxu1 %vm295_vm13, %v1330_v63  ;;  %vm1304_vm15 = vmor %vm1302_vm14, %vm1303_vm9 }
 0xed9   :  { %v1299_v55 = vsub.f32 1.0, %v1298_v52 }
 0xedb   :  { %v1300_v15 = vmul.f32 %v3163_v5, %v1299_v55  ;;  %v1117_v55 = vld [vmem:[%s4475_s1 + $0x248] sm:$0xff] }
 0xedd   :  { %v1301_v28 = vadd.f32 %v3163_v5, %v1300_v15 }
 0xedf   :  { %v1305_v22 = vsel %vm1304_vm15, %v3163_v5, %v1301_v28  ;;  %v1511_v43 = vpop.permute.xlu2 %1510 }
 0xee0   :  { %v1310_v26 = vsel %vm1307_vm3, %v1309_v6, %v1305_v22 }
 0xee1   :  { %v1311_v40 = vmul.f32 %v3824_v11, %v1310_v26 }
 0xee2   :  { %v1616_v1 = vpop.xlane.xlu0 %1615  ;;  %v3859_v54 = vpop.xlane.xlu1 %1473 }
 0xee3   :  { %v1620_v3 = vsub.f32 %v1609_v49, %v1616_v1  ;;  %v1489_v11 = vand.u32 2147483648, %v3859_v54  ;;  %vm1483_vm8 = vweird.f32 %v3859_v54  ;;  %v1487_v56 = vand.u32 2147483647, %v3859_v54 }
 0xee5   :  { %v1622_v7 = vmul.f32 1.442695, %v1620_v3  ;;  %v1490_v60 = vor.u32 1.1754944e-38, %v1489_v11  ;;  %vm1488_vm14 = vcmp.eq.f32.partialorder %v1487_v56, 8.507059e+37  ;;  %v3076_v11 = vld [vmem:[%s4475_s1 + $0x258] ss:$0 sm:$0xff] }
 0xee7   :  { %3164 = vpow2.f32 %v1622_v7 }
 0xeea   :  { %v1296_v9 = vpop.xlane.xlu0 %1295  ;;  %v1619_v37 = vpop.xlane.xlu1 %1618 }
 0xeeb   :  { %3166 = vrcp.f32 %v1296_v9  ;;  %v1621_v4 = vsub.f32 %v1612_v59, %v1619_v37  ;;  %v1323_v35 = vand.u32 2147483648, %v1296_v9  ;;  %vm1317_vm5 = vweird.f32 %v1296_v9 }
 0xeec   :  { %3168 = vrcp.f32 %v3859_v54  ;;  %v1321_v41 = vand.u32 2147483647, %v1296_v9 }
 0xeed   :  { %v3861_v12 = vpop.eup %3164  ;;  %v1624_v14 = vmul.f32 1.442695, %v1621_v4  ;;  %v1324_v48 = vor.u32 1.1754944e-38, %v1323_v35 }
 0xeee   :  { %v1626_v13 = vsel %vm234_vm11, %v3861_v12, 0.0  ;;  %vm1322_vm6 = vcmp.eq.f32.partialorder %v1321_v41, 8.507059e+37 }
 0xeef   :  { %3170 = vpow2.f32 %v1624_v14  ;;  %1627 = vadd.xlane.f32.xlu1 %v1626_v13 }
 0xef1   :  { %v3167_v0 = vpop.eup %3166 }
 0xef2   :  { %v1313_v16 = vmul.f32 %v3167_v0, %v1296_v9  ;;  %v3866_v17 = vpop.xlane.xlu1 %1476  ;;  %v3169_v2 = vpop.eup %3168  ;;  %vm1318_vm4 = vweird.f32 %v3167_v0 }
 0xef3   :  { %3172 = vrcp.f32 %v3866_v17  ;;  %v1479_v23 = vmul.f32 %v3169_v2, %v3859_v54  ;;  %vm1484_vm7 = vweird.f32 %v3169_v2  ;;  %v1504_v63 = vand.u32 2147483648, %v3866_v17 }
 0xef4   :  { %v1314_v39 = vsub.f32 1.0, %v1313_v16  ;;  %vm1485_vm9 = vmor %vm1483_vm8, %vm1484_vm7  ;;  %vm1498_vm3 = vweird.f32 %v3866_v17  ;;  %v1502_v54 = vand.u32 2147483647, %v3866_v17 }
 0xef5   :  { %v3868_v19 = vpop.eup %3170  ;;  %v1480_v27 = vsub.f32 1.0, %v1479_v23  ;;  %v1505_v3 = vor.u32 1.1754944e-38, %v1504_v63 }
 0xef6   :  { %v1629_v10 = vsel %vm238_vm12, %v3868_v19, 0.0  ;;  %v1315_v25 = vmul.f32 %v3167_v0, %v1314_v39  ;;  %vm1319_vm12 = vmor %vm1317_vm5, %vm1318_vm4  ;;  %vm1503_vm5 = vcmp.eq.f32.partialorder %v1502_v54, 8.507059e+37 }
 0xef7   :  { %1630 = vadd.xlane.f32.xlu1 %v1629_v10  ;;  %v1481_v44 = vmul.f32 %v3169_v2, %v1480_v27 }
 0xef8   :  { %v1316_v30 = vadd.f32 %v3167_v0, %v1315_v25  ;;  %v1663_v25 = vpop.permute.xlu2 %1662 }
 0xef9   :  { %v3173_v31 = vpop.eup %3172  ;;  %v1482_v51 = vadd.f32 %v3169_v2, %v1481_v44 }
 0xefa   :  { %v1494_v45 = vmul.f32 %v3173_v31, %v3866_v17  ;;  %v1320_v47 = vsel %vm1319_vm12, %v3167_v0, %v1316_v30  ;;  %vm1499_vm15 = vweird.f32 %v3173_v31 }
 0xefb   :  { %v1325_v49 = vsel %vm1322_vm6, %v1324_v48, %v1320_v47  ;;  %v1486_v59 = vsel %vm1485_vm9, %v3169_v2, %v1482_v51  ;;  %vm1500_vm4 = vmor %vm1498_vm3, %vm1499_vm15 }
 0xefc   :  { %v1495_v53 = vsub.f32 1.0, %v1494_v45  ;;  %v1326_v58 = vmul.f32 %v3838_v57, %v1325_v49  ;;  %v1491_v62 = vsel %vm1488_vm14, %v1490_v60, %v1486_v59 }
 0xefd   :  { %v1328_v36 = vpop.permute.xlu0 %1327  ;;  %v1492_v1 = vmul.f32 %v3833_v50, %v1491_v62  ;;  %v1116_v50 = vld [vmem:[%s4475_s1 + $0x240] sm:$0xff] }
 0xefe   :  { %1355 = vmatpush.msrb.mxu1 %v1328_v36  ;;  %v1496_v32 = vmul.f32 %v3173_v31, %v1495_v53  ;;  %1384 = vmatpush.msra.mxu2 %v1116_v50 }
 0xeff   :  { %2997 = vmatmul.msk.f32.vlgmr.msrb.gmra.mxu1 %vm234_vm11, %v1311_v40 }
 0xf00   :  { %3007 = vmatpush.msk.msra.mxu1 %vm295_vm13, %v1511_v43  ;;  %v1497_v24 = vadd.f32 %v3173_v31, %v1496_v32  ;;  %1565 = vmatpush.msrb.mxu2 %v1117_v55  ;;  %v1788_v55 = vld [vmem:[%s4475_s1 + $0x278] sm:$0xff] }
 0xf02   :  { %v1501_v57 = vsel %vm1500_vm4, %v3173_v31, %v1497_v24 }
 0xf03   :  { %v1506_v5 = vsel %vm1503_vm5, %v1505_v3, %v1501_v57 }
 0xf04   :  { %v1507_v7 = vmul.f32 %v3846_v61, %v1506_v5 }
 0xf05   :  { %v1509_v20 = vpop.permute.xlu0 %1508 }
 0xf06   :  { %1536 = vmatpush.msra.mxu1 %v1509_v20 }
 0xf07   :  { %2998 = vmatmul.msk.f32.gmra.mxu1 %vm234_vm11, %v1326_v58 }
 0xf0f   :  { %3008 = vmatmul.msk.f32.vlgmr.msra.gmra.mxu1 %vm234_vm11, %v1492_v1 }
 0xf10   :  { %1664 = vrot.lane.b32.xlu1 %v3739_v38, %s3255_s13 }
 0xf17   :  { %3009 = vmatmul.msk.f32.gmra.mxu1 %vm234_vm11, %v1507_v7 }
 0xf62   :  { %v1628_v52 = vpop.xlane.xlu1 %1627 }
 0xf63   :  { %3174 = vrcp.f32 %v1628_v52  ;;  %v1643_v16 = vand.u32 2147483648, %v1628_v52  ;;  %vm1637_vm6 = vweird.f32 %v1628_v52  ;;  %v1641_v28 = vand.u32 2147483647, %v1628_v52 }
 0xf65   :  { %v1644_v39 = vor.u32 1.1754944e-38, %v1643_v16  ;;  %vm1642_vm8 = vcmp.eq.f32.partialorder %v1641_v28, 8.507059e+37 }
 0xf69   :  { %v3175_v37 = vpop.eup %3174 }
 0xf6a   :  { %v1631_v9 = vpop.xlane.xlu1 %1630  ;;  %v1633_v38 = vmul.f32 %v3175_v37, %v1628_v52  ;;  %vm1638_vm12 = vweird.f32 %v3175_v37 }
 0xf6b   :  { %3176 = vrcp.f32 %v1631_v9  ;;  %vm1639_vm7 = vmor %vm1637_vm6, %vm1638_vm12  ;;  %v1658_v23 = vand.u32 2147483648, %v1631_v9  ;;  %vm1652_vm14 = vweird.f32 %v1631_v9  ;;  %v1656_v27 = vand.u32 2147483647, %v1631_v9 }
 0xf6c   :  { %v1634_v4 = vsub.f32 1.0, %v1633_v38  ;;  %v1787_v38 = vld [vmem:[%s4475_s1 + $0x270] sm:$0xff] }
 0xf6d   :  { %v1659_v31 = vor.u32 1.1754944e-38, %v1658_v23  ;;  %vm1657_vm3 = vcmp.eq.f32.partialorder %v1656_v27, 8.507059e+37 }
 0xf6e   :  { %v1635_v14 = vmul.f32 %v3175_v37, %v1634_v4 }
 0xf70   :  { %v1636_v15 = vadd.f32 %v3175_v37, %v1635_v14 }
 0xf71   :  { %v3177_v61 = vpop.eup %3176 }
 0xf72   :  { %v1648_v13 = vmul.f32 %v3177_v61, %v1631_v9  ;;  %v1640_v2 = vsel %vm1639_vm7, %v3175_v37, %v1636_v15  ;;  %vm1653_vm9 = vweird.f32 %v3177_v61  ;;  %v1790_v9 = vld [vmem:[%s4475_s1 + $0x288] sm:$0xff]  ;;  %v1789_v37 = vld [vmem:[%s4475_s1 + $0x280] sm:$0xff] }
 0xf73   :  { %v1645_v29 = vsel %vm1642_vm8, %v1644_v39, %v1640_v2  ;;  %vm1654_vm15 = vmor %vm1652_vm14, %vm1653_vm9 }
 0xf74   :  { %v1649_v0 = vsub.f32 1.0, %v1648_v13  ;;  %v1646_v26 = vmul.f32 %v3861_v12, %v1645_v29  ;;  %v1118_v12 = vld [vmem:[%s4475_s1 + $0x250] sm:$0xff] }
 0xf75   :  { %1719 = vmatpush.msrb.mxu1 %v1118_v12 }
 0xf76   :  { %v1650_v18 = vmul.f32 %v3177_v61, %v1649_v0 }
 0xf78   :  { %v1651_v22 = vadd.f32 %v3177_v61, %v1650_v18 }
 0xf7a   :  { %v1655_v30 = vsel %vm1654_vm15, %v3177_v61, %v1651_v22  ;;  %v3077_v22 = vld [vmem:[%s4475_s1 + $0x260] ss:$0 sm:$0xff] }
 0xf7b   :  { %v1660_v35 = vsel %vm1657_vm3, %v1659_v31, %v1655_v30 }
 0xf7c   :  { %v1357_v17 = vpop.f32.mrf.mxu1  ;;  %v1661_v40 = vmul.f32 %v3868_v19, %v1660_v35 }
 0xf7d   :  { %2999 = vmatmul.msk.f32.vlgmr.msra.gmra.mxu2 %vm202_vm10, %v1357_v17 }
 0xf7e   :  { %1811 = vmatpush.msra.mxu2 %v1790_v9  ;;  %v1904_v9 = vld [vmem:[%s4475_s1 + $0x2a8] sm:$0xff] }
 0xf80   :  { %1812 = vmatpush.msra.mxu2 %v1789_v37 }
 0xf82   :  { %v1665_v10 = vpop.permute.xlu1 %1664  ;;  %1813 = vmatpush.msra.mxu2 %v1788_v55 }
 0xf83   :  { %3016 = vmatpush.msk.msra.mxu0 %vm295_vm13, %v1665_v10 }
 0xf84   :  { %v1360_v6 = vpop.f32.mrf.mxu1  ;;  %1814 = vmatpush.msra.mxu2 %v1787_v38  ;;  %v1903_v38 = vld [vmem:[%s4475_s1 + $0x2a0] sm:$0xff] }
 0xf85   :  { %3000 = vmatmul.msk.f32.gmra.mxu2 %vm202_vm10, %v1360_v6  ;;  %1690 = vmatpush.msra.mxu0 %v1663_v25 }
 0xf86   :  { %3017 = vmatmul.msk.f32.vlgmr.msra.gmra.mxu0 %vm234_vm11, %v1646_v26  ;;  %v3078_v26 = vld [vmem:[%s4475_s1 + $0x268] ss:$0 sm:$0xff] }
 0xf8c   :  { %v1538_v36 = vpop.f32.mrf.mxu1 }
 0xf8d   :  { %3010 = vmatmul.msk.f32.vlgmr.msrb.gmra.mxu2 %vm202_vm10, %v1538_v36 }
 0xf8e   :  { %3018 = vmatmul.msk.f32.gmra.mxu0 %vm234_vm11, %v1661_v40 }
 0xf94   :  { %v1541_v41 = vpop.f32.mrf.mxu1 }
 0xf95   :  { %3011 = vmatmul.msk.f32.gmra.mxu2 %vm202_vm10, %v1541_v41 }
0x1000   :  { %v1386_v45 = vpop.f32.mrf.mxu2 }
0x1001   :  { %v1416_v48 = vadd.f32 %v3826_v34, %v1386_v45  ;;  %v1916_v45 = vld [vmem:[%s4475_s1 + $0x308] sm:$0xff] }
0x1003   :  { %v1692_v43 = vpop.f32.mrf.mxu0 }
0x1004   :  { %3019 = vmatmul.msk.f32.vlgmr.msrb.gmra.mxu1 %vm202_vm10, %v1692_v43 }
0x1008   :  { %v1389_v19 = vpop.f32.mrf.mxu2 }
0x1009   :  { %v1419_v58 = vadd.f32 %v3830_v42, %v1389_v19  ;;  %v3079_v19 = vld [vmem:[%s4475_s1 + $0x290] ss:$0 sm:$0xff] }
0x100b   :  { %v1695_v44 = vpop.f32.mrf.mxu0 }
0x100c   :  { %3020 = vmatmul.msk.f32.gmra.mxu1 %vm202_vm10, %v1695_v44  ;;  %v1917_v44 = vld [vmem:[%s4475_s1 + $0x310] sm:$0xff] }
0x100d   :  { %1918 = vmatpush.msrb.mxu3 %v1917_v44 }
0x100f   :  { %1919 = vmatpush.msrb.mxu3 %v1916_v45 }
0x1010   :  { %v1567_v47 = vpop.f32.mrf.mxu2 }
0x1011   :  { %v1573_v49 = vadd.f32 %v1567_v47, %v1416_v48  ;;  %v1915_v47 = vld [vmem:[%s4475_s1 + $0x300] sm:$0xff]  ;;  %v1914_v48 = vld [vmem:[%s4475_s1 + $0x2f8] sm:$0xff] }
0x1012   :  { %1920 = vmatpush.msrb.mxu3 %v1915_v47 }
0x1014   :  { %1921 = vmatpush.msrb.mxu3 %v1914_v48 }
0x1018   :  { %v1570_v20 = vpop.f32.mrf.mxu2 }
0x1019   :  { %v1574_v32 = vadd.f32 %v1570_v20, %v1419_v58  ;;  %v1911_v58 = vld [vmem:[%s4475_s1 + $0x2e0] sm:$0xff] }
0x1081   :  { %v1721_v51 = vpop.f32.mrf.mxu1 }
0x1082   :  { %v1727_v53 = vadd.f32 %v1721_v51, %v1573_v49 }
0x1084   :  { %v1729_v56 = vadd.f32 %v1727_v53, %v3695_v21  ;;  %v1913_v53 = vld [vmem:[%s4475_s1 + $0x2f0] sm:$0xff] }
0x1085   :  { %1922 = vmatpush.msrb.mxu3 %v1913_v53 }
0x1086   :  { %v3918_v59 = vadd.f32 %v3076_v11, %v1729_v56  ;;  %v1912_v56 = vld [vmem:[%s4475_s1 + $0x2e8] sm:$0xff] }
0x1087   :  { %1923 = vmatpush.msrb.mxu3 %v1912_v56 }
0x1088   :  { %v1737_v60 = vsel %vm98_vm1, %v3918_v59, 0.0 }
0x1089   :  { %1738 = vadd.xlane.f32.xlu0 %v1737_v60  ;;  %v1724_v34 = vpop.f32.mrf.mxu1  ;;  %1924 = vmatpush.msrb.mxu3 %v1911_v58  ;;  %v1910_v60 = vld [vmem:[%s4475_s1 + $0x2d8] sm:$0xff] }
0x108a   :  { %v1728_v62 = vadd.f32 %v1724_v34, %v1574_v32 }
0x108b   :  { %1925 = vmatpush.msrb.mxu3 %v1910_v60 }
0x108c   :  { %v1730_v24 = vadd.f32 %v1728_v62, %v3700_v33 }
0x108e   :  { %v3923_v63 = vadd.f32 %v3076_v11, %v1730_v24 }
0x1090   :  { %v1740_v1 = vsel %vm102_vm2, %v3923_v63, 0.0 }
0x1091   :  { %1741 = vadd.xlane.f32.xlu2 %v1740_v1  ;;  %v1909_v1 = vld [vmem:[%s4475_s1 + $0x2d0] sm:$0xff] }
0x1092   :  { %1926 = vmatpush.msrb.mxu3 %v1909_v1 }
0x10fc   :  { %v1739_v21 = vpop.xlane.xlu0 %1738 }
0x10fd   :  { %v1743_v42 = vmul.f32 %v1739_v21, %v3372_v46  ;;  %v1908_v21 = vld [vmem:[%s4475_s1 + $0x2c8] sm:$0xff] }
0x10fe   :  { %1927 = vmatpush.msrb.mxu3 %v1908_v21 }
0x10ff   :  { %v1745_v54 = vsub.f32 %v3918_v59, %v1743_v42 }
0x1101   :  { %v1747_v57 = vmul.f32 %v1745_v54, %v1745_v54 }
0x1103   :  { %v1749_v3 = vsel %vm98_vm1, %v1747_v57, 0.0 }
0x1104   :  { %1750 = vadd.xlane.f32.xlu1 %v1749_v3  ;;  %v1742_v5 = vpop.xlane.xlu2 %1741  ;;  %v1906_v3 = vld [vmem:[%s4475_s1 + $0x2b8] sm:$0xff] }
0x1105   :  { %v1744_v7 = vmul.f32 %v1742_v5, %v3372_v46 }
0x1107   :  { %v1746_v33 = vsub.f32 %v3923_v63, %v1744_v7 }
0x1109   :  { %v1748_v50 = vmul.f32 %v1746_v33, %v1746_v33 }
0x110b   :  { %v1752_v52 = vsel %vm102_vm2, %v1748_v50, 0.0 }
0x110c   :  { %1753 = vadd.xlane.f32.xlu0 %v1752_v52 }
0x1177   :  { %v1751_v4 = vpop.xlane.xlu1 %1750 }
0x1178   :  { %v1755_v61 = vmul.f32 %v1751_v4, %v3372_v46 }
0x117a   :  { %v1757_v14 = vadd.f32 1e-06, %v1755_v61 }
0x117c   :  { %3178 = vrsqrt.f32 %v1757_v14  ;;  %vm1765_vm4 = vweird.f32 %v1757_v14 }
0x117f   :  { %v1754_v13 = vpop.xlane.xlu0 %1753 }
0x1180   :  { %v1756_v15 = vmul.f32 %v1754_v13, %v3372_v46 }
0x1182   :  { %v3179_v0 = vpop.eup %3178  ;;  %v1758_v16 = vadd.f32 1e-06, %v1756_v15 }
0x1183   :  { %v1760_v28 = vmul.f32 %v3179_v0, %v1757_v14  ;;  %vm1766_vm10 = vweird.f32 %v3179_v0  ;;  %v1902_v14 = vld [vmem:[%s4475_s1 + $0x298] sm:$0xff] }
0x1184   :  { %3180 = vrsqrt.f32 %v1758_v16  ;;  %vm1767_vm5 = vmor %vm1765_vm4, %vm1766_vm10  ;;  %vm1775_vm6 = vweird.f32 %v1758_v16 }
0x1185   :  { %v1761_v17 = vmul.f32 %v3179_v0, %v1760_v28 }
0x1187   :  { %v1762_v2 = vmul.f32 0.5, %v1761_v17 }
0x1189   :  { %v1763_v18 = vsub.f32 1.5, %v1762_v2 }
0x118a   :  { %v3181_v39 = vpop.eup %3180 }
0x118b   :  { %v1764_v29 = vmul.f32 %v3179_v0, %v1763_v18  ;;  %v1770_v10 = vmul.f32 %v3181_v39, %v1758_v16  ;;  %vm1776_vm12 = vweird.f32 %v3181_v39 }
0x118c   :  { %vm1777_vm7 = vmor %vm1775_vm6, %vm1776_vm12 }
0x118d   :  { %v1768_v23 = vsel %vm1767_vm5, %v3179_v0, %v1764_v29  ;;  %v1771_v25 = vmul.f32 %v3181_v39, %v1770_v10 }
0x118e   :  { %v1779_v6 = vmul.f32 %v1768_v23, %v1745_v54  ;;  %v1907_v54 = vld [vmem:[%s4475_s1 + $0x2c0] sm:$0xff] }
0x118f   :  { %v1772_v27 = vmul.f32 0.5, %v1771_v25  ;;  %1928 = vmatpush.msrb.mxu3 %v1907_v54 }
0x1190   :  { %v1782_v30 = vmul.f32 %v3077_v22, %v1779_v6 }
0x1191   :  { %v1773_v31 = vsub.f32 1.5, %v1772_v27  ;;  %1929 = vmatpush.msrb.mxu3 %v1906_v3 }
0x1192   :  { %v1785_v35 = vadd.f32 %v3078_v26, %v1782_v30 }
0x1193   :  { %v1774_v36 = vmul.f32 %v3181_v39, %v1773_v31 }
0x1194   :  { %3021 = vmatmul.msk.f32.vlgmr.msra.gmra.mxu2 %vm98_vm1, %v1785_v35 }
0x1195   :  { %v1778_v40 = vsel %vm1777_vm7, %v3181_v39, %v1774_v36 }
0x1196   :  { %v1780_v41 = vmul.f32 %v1778_v40, %v1746_v33  ;;  %v1905_v33 = vld [vmem:[%s4475_s1 + $0x2b0] sm:$0xff] }
0x1197   :  { %1930 = vmatpush.msrb.mxu3 %v1905_v33 }
0x1198   :  { %v1783_v12 = vmul.f32 %v3077_v22, %v1780_v41 }
0x1199   :  { %1931 = vmatpush.msrb.mxu3 %v1904_v9 }
0x119a   :  { %v1786_v43 = vadd.f32 %v3078_v26, %v1783_v12 }
0x119b   :  { %1932 = vmatpush.msrb.mxu3 %v1903_v38 }
0x119c   :  { %3022 = vmatmul.msk.f32.gmra.mxu2 %vm98_vm1, %v1786_v43 }
0x119d   :  { %1933 = vmatpush.msrb.mxu3 %v1902_v14 }
0x1217   :  { %v1816_v49 = vpop.f32.mrf.mxu2 }
0x1218   :  { %v3970_v51 = vadd.f32 %v3079_v19, %v1816_v49 }
0x121a   :  { %v3976_v11 = vmul.f32 0.70710677, %v3970_v51 }
0x121c   :  { %v1830_v20 = vand.u32 2147483647, %v3976_v11  ;;  %vm1826_vm12 = vcmp.ge.f32.partialorder %v3976_v11, 0.0 }
0x121e   :  { %v1832_v32 = vmul.f32 0.3275911, %v1830_v20  ;;  %v1884_v17 = vsub.f32 0.0, %v1830_v20 }
0x121f   :  { %v1819_v34 = vpop.f32.mrf.mxu2 }
0x1220   :  { %v1834_v62 = vadd.f32 1.0, %v1832_v32  ;;  %v3988_v24 = vadd.f32 %v3079_v19, %v1819_v34  ;;  %v1886_v22 = vmul.f32 %v1884_v17, %v1830_v20 }
0x1222   :  { %3182 = vrcp.f32 %v1834_v62  ;;  %v3997_v42 = vmul.f32 0.70710677, %v3988_v24  ;;  %v1847_v55 = vand.u32 2147483648, %v1834_v62  ;;  %v1845_v61 = vand.u32 2147483647, %v1834_v62 }
0x1223   :  { %vm1841_vm9 = vweird.f32 %v1834_v62  ;;  %v1888_v31 = vmul.f32 1.442695, %v1886_v22 }
0x1224   :  { %v1831_v57 = vand.u32 2147483647, %v3997_v42  ;;  %v1848_v15 = vor.u32 1.1754944e-38, %v1847_v55  ;;  %vm1846_vm15 = vcmp.eq.f32.partialorder %v1845_v61, 8.507059e+37  ;;  %vm1827_vm6 = vcmp.ge.f32.partialorder %v3997_v42, 0.0 }
0x1226   :  { %v1833_v5 = vmul.f32 0.3275911, %v1831_v57  ;;  %v1885_v40 = vsub.f32 0.0, %v1831_v57 }
0x1228   :  { %v3183_v7 = vpop.eup %3182  ;;  %v1835_v52 = vadd.f32 1.0, %v1833_v5  ;;  %v1887_v19 = vmul.f32 %v1885_v40, %v1831_v57  ;;  %v1822_v57 = vmul.f32 0.5, %v3970_v51  ;;  %v3080_v51 = vld [vmem:[%s4475_s1 + $0x318] ss:$0 sm:$0xff] }
0x1229   :  { %v1837_v50 = vmul.f32 %v3183_v7, %v1834_v62  ;;  %vm1842_vm8 = vweird.f32 %v3183_v7  ;;  %v1828_v62 = vsel %vm1826_vm12, 1.0, %v3256_v8 }
0x122a   :  { %3184 = vrcp.f32 %v1835_v52  ;;  %vm1843_vm14 = vmor %vm1841_vm9, %vm1842_vm8  ;;  %v1862_v10 = vand.u32 2147483648, %v1835_v52  ;;  %v1860_v25 = vand.u32 2147483647, %v1835_v52  ;;  %vm1856_vm10 = vweird.f32 %v1835_v52 }
0x122b   :  { %v1838_v37 = vsub.f32 1.0, %v1837_v50  ;;  %3186 = vpow2.f32 %v1888_v31  ;;  %v1890_v56 = vmul.f32 1.442695, %v1887_v19 }
0x122c   :  { %v1863_v30 = vor.u32 1.1754944e-38, %v1862_v10  ;;  %vm1861_vm5 = vcmp.eq.f32.partialorder %v1860_v25, 8.507059e+37 }
0x122d   :  { %v1839_v4 = vmul.f32 %v3183_v7, %v1838_v37  ;;  %3188 = vpow2.f32 %v1890_v56  ;;  %v1823_v37 = vmul.f32 0.5, %v3988_v24 }
0x122f   :  { %v1840_v13 = vadd.f32 %v3183_v7, %v1839_v4 }
0x1230   :  { %v3185_v0 = vpop.eup %3184 }
0x1231   :  { %v1844_v16 = vsel %vm1843_vm14, %v3183_v7, %v1840_v13  ;;  %v1852_v2 = vmul.f32 %v3185_v0, %v1835_v52  ;;  %vm1857_vm3 = vweird.f32 %v3185_v0  ;;  %v3187_v20 = vpop.eup %3186  ;;  %v1829_v52 = vsel %vm1827_vm6, 1.0, %v3256_v8 }
0x1232   :  { %v1849_v28 = vsel %vm1846_vm15, %v1848_v15, %v1844_v16  ;;  %vm1858_vm4 = vmor %vm1856_vm10, %vm1857_vm3 }
0x1233   :  { %v1866_v18 = vmul.f32 1.0614054, %v1849_v28  ;;  %v1853_v39 = vsub.f32 1.0, %v1852_v2  ;;  %v3189_v7 = vpop.eup %3188 }
0x1235   :  { %v1868_v29 = vadd.f32 -1.4531521, %v1866_v18  ;;  %v1854_v23 = vmul.f32 %v3185_v0, %v1853_v39 }
0x1237   :  { %v1870_v6 = vmul.f32 %v1868_v29, %v1849_v28  ;;  %v1855_v26 = vadd.f32 %v3185_v0, %v1854_v23 }
0x1239   :  { %v1872_v27 = vadd.f32 1.4214138, %v1870_v6  ;;  %v1859_v35 = vsel %vm1858_vm4, %v3185_v0, %v1855_v26 }
0x123a   :  { %v1864_v41 = vsel %vm1861_vm5, %v1863_v30, %v1859_v35 }
0x123b   :  { %v1874_v36 = vmul.f32 %v1872_v27, %v1849_v28  ;;  %v1867_v12 = vmul.f32 1.0614054, %v1864_v41 }
0x123d   :  { %v1876_v43 = vadd.f32 -0.28449672, %v1874_v36  ;;  %v1869_v44 = vadd.f32 -1.4531521, %v1867_v12 }
0x123f   :  { %v1878_v45 = vmul.f32 %v1876_v43, %v1849_v28  ;;  %v1871_v47 = vmul.f32 %v1869_v44, %v1864_v41  ;;  %v3081_v44 = vld [vmem:[%s4475_s1 + $0x320] ss:$0 sm:$0xff] }
0x1241   :  { %v1880_v48 = vadd.f32 0.2548296, %v1878_v45  ;;  %v1873_v49 = vadd.f32 1.4214138, %v1871_v47 }
0x1243   :  { %v1882_v53 = vmul.f32 %v1880_v48, %v1849_v28  ;;  %v1875_v58 = vmul.f32 %v1873_v49, %v1864_v41  ;;  %v3082_v48 = vld [vmem:[%s4475_s1 + $0x328] ss:$0 sm:$0xff] }
0x1245   :  { %v1892_v32 = vmul.f32 %v3187_v20, %v1882_v53  ;;  %v1877_v60 = vadd.f32 -0.28449672, %v1875_v58 }
0x1247   :  { %v1894_v34 = vsub.f32 1.0, %v1892_v32  ;;  %v1879_v1 = vmul.f32 %v1877_v60, %v1864_v41 }
0x1249   :  { %v1896_v21 = vmul.f32 %v1894_v34, %v1828_v62  ;;  %v1881_v54 = vadd.f32 0.2548296, %v1879_v1 }
0x124b   :  { %v1898_v3 = vadd.f32 1.0, %v1896_v21  ;;  %v1883_v5 = vmul.f32 %v1881_v54, %v1864_v41 }
0x124d   :  { %v1900_v33 = vmul.f32 %v1898_v3, %v1822_v57  ;;  %v1893_v50 = vmul.f32 %v3189_v7, %v1883_v5 }
0x124f   :  { %1934 = vmatmul.f32.vlgmr.msrb.gmra.mxu3 %v1900_v33  ;;  %v1895_v11 = vsub.f32 1.0, %v1893_v50 }
0x1251   :  { %v1897_v9 = vmul.f32 %v1895_v11, %v1829_v52 }
0x1253   :  { %v1899_v55 = vadd.f32 1.0, %v1897_v9 }
0x1255   :  { %v1901_v38 = vmul.f32 %v1899_v55, %v1823_v37  ;;  %v2004_v37 = vld [vmem:[%s4475_s1 + $0x390] sm:$0xff]  ;;  %v2003_v55 = vld [vmem:[%s4475_s1 + $0x388] sm:$0xff] }
0x1256   :  { %2112 = vmatpush.msrb.mxu0 %v2004_v37  ;;  %2518 = vmatpush.msra.mxu3 %v2004_v37 }
0x1257   :  { %1937 = vmatmul.f32.gmra.mxu3 %v1901_v38  ;;  %v2002_v38 = vld [vmem:[%s4475_s1 + $0x380] sm:$0xff] }
0x1258   :  { %2113 = vmatpush.msrb.mxu0 %v2003_v55  ;;  %2519 = vmatpush.msra.mxu3 %v2003_v55  ;;  %v4175_v55 = vld [vmem:[%s4475_s1 + $0x3f8] sm:$0xff] }
0x125a   :  { %2114 = vmatpush.msrb.mxu0 %v2002_v38  ;;  %2520 = vmatpush.msra.mxu3 %v2002_v38  ;;  %v4181_v38 = vld [vmem:[%s4475_s1 + $0x3f0] sm:$0xff] }
0x12d2   :  { %v1935_v4 = vpop.f32.mrf.mxu3 }
0x12d3   :  { %v1941_v61 = vadd.f32 %v1935_v4, %v3918_v59 }
0x12d5   :  { %v1945_v14 = vadd.f32 %v3080_v51, %v1941_v61 }
0x12d7   :  { %v1949_v42 = vsel %vm98_vm1, %v1945_v14, 0.0 }
0x12d8   :  { %1950 = vadd.xlane.f32.xlu2 %v1949_v42  ;;  %v4073_v42 = vld [vmem:[%s4475_s1 + $0x3b8] sm:$0xff] }
0x12d9   :  { %2141 = vmatpush.msra.mxu1 %v4073_v42 }
0x12da   :  { %v1938_v13 = vpop.f32.mrf.mxu3 }
0x12db   :  { %v1942_v15 = vadd.f32 %v1938_v13, %v3923_v63  ;;  %v4078_v13 = vld [vmem:[%s4475_s1 + $0x3b0] sm:$0xff] }
0x12dc   :  { %2142 = vmatpush.msra.mxu1 %v4078_v13 }
0x12dd   :  { %v1946_v0 = vadd.f32 %v3080_v51, %v1942_v15  ;;  %v2001_v51 = vld [vmem:[%s4475_s1 + $0x378] sm:$0xff] }
0x12de   :  { %2115 = vmatpush.msrb.mxu0 %v2001_v51  ;;  %2521 = vmatpush.msra.mxu3 %v2001_v51  ;;  %v4187_v51 = vld [vmem:[%s4475_s1 + $0x3e8] sm:$0xff] }
0x12df   :  { %v1952_v24 = vsel %vm102_vm2, %v1946_v0, 0.0 }
0x12e0   :  { %1953 = vadd.xlane.f32.xlu0 %v1952_v24  ;;  %2238 = vmatpush.msra.mxu0 %v4175_v55 }
0x12e2   :  { %2239 = vmatpush.msra.mxu0 %v4181_v38 }
0x12e4   :  { %2240 = vmatpush.msra.mxu0 %v4187_v51 }
0x134b   :  { %v1951_v16 = vpop.xlane.xlu2 %1950 }
0x134c   :  { %v1955_v28 = vmul.f32 %v1951_v16, %v3372_v46 }
0x134e   :  { %v1957_v17 = vsub.f32 %v1945_v14, %v1955_v28 }
0x1350   :  { %v1959_v2 = vmul.f32 %v1957_v17, %v1957_v17 }
0x1352   :  { %v1961_v18 = vsel %vm98_vm1, %v1959_v2, 0.0 }
0x1353   :  { %1962 = vadd.xlane.f32.xlu2 %v1961_v18  ;;  %v1954_v59 = vpop.xlane.xlu0 %1953 }
0x1354   :  { %v1956_v39 = vmul.f32 %v1954_v59, %v3372_v46 }
0x1356   :  { %v1958_v29 = vsub.f32 %v1946_v0, %v1956_v39 }
0x1358   :  { %v1960_v10 = vmul.f32 %v1958_v29, %v1958_v29 }
0x135a   :  { %v1964_v22 = vsel %vm102_vm2, %v1960_v10, 0.0 }
0x135b   :  { %1965 = vadd.xlane.f32.xlu0 %v1964_v22 }
0x13c6   :  { %v1963_v63 = vpop.xlane.xlu2 %1962 }
0x13c7   :  { %v1967_v23 = vmul.f32 %v1963_v63, %v3372_v46 }
0x13c9   :  { %v1969_v25 = vadd.f32 1e-06, %v1967_v23 }
0x13cb   :  { %3190 = vrsqrt.f32 %v1969_v25  ;;  %vm1977_vm8 = vweird.f32 %v1969_v25 }
0x13ce   :  { %v1966_v6 = vpop.xlane.xlu0 %1965 }
0x13cf   :  { %v1968_v26 = vmul.f32 %v1966_v6, %v3372_v46 }
0x13d1   :  { %v3191_v27 = vpop.eup %3190  ;;  %v1970_v31 = vadd.f32 1e-06, %v1968_v26 }
0x13d2   :  { %v1972_v30 = vmul.f32 %v3191_v27, %v1969_v25  ;;  %vm1978_vm7 = vweird.f32 %v3191_v27  ;;  %v4091_v25 = vld [vmem:[%s4475_s1 + $0x370] ss:$0 sm:$0xff] }
0x13d3   :  { %3192 = vrsqrt.f32 %v1970_v31  ;;  %vm1979_vm9 = vmor %vm1977_vm8, %vm1978_vm7  ;;  %vm1987_vm15 = vweird.f32 %v1970_v31  ;;  %vm2155_vm8 = vcmask 517120  }
0x13d4   :  { %v1973_v35 = vmul.f32 %v3191_v27, %v1972_v30 }
0x13d6   :  { %v1974_v36 = vmul.f32 0.5, %v1973_v35 }
0x13d8   :  { %v1975_v40 = vsub.f32 1.5, %v1974_v36 }
0x13d9   :  { %v3193_v41 = vpop.eup %3192 }
0x13da   :  { %v1976_v12 = vmul.f32 %v3191_v27, %v1975_v40  ;;  %v1982_v43 = vmul.f32 %v3193_v41, %v1970_v31  ;;  %vm1988_vm14 = vweird.f32 %v3193_v41 }
0x13db   :  { %vm1989_vm3 = vmor %vm1987_vm15, %vm1988_vm14 }
0x13dc   :  { %v1980_v45 = vsel %vm1979_vm9, %v3191_v27, %v1976_v12  ;;  %v1983_v19 = vmul.f32 %v3193_v41, %v1982_v43  ;;  %v4102_v12 = vld [vmem:[%s4475_s1 + $0x3a8] sm:$0xff]  ;;  %v4107_v43 = vld [vmem:[%s4475_s1 + $0x3a0] sm:$0xff] }
0x13dd   :  { %v1991_v47 = vmul.f32 %v1980_v45, %v1957_v17  ;;  %2143 = vmatpush.msra.mxu1 %v4102_v12 }
0x13de   :  { %v1984_v49 = vmul.f32 0.5, %v1983_v19 }
0x13df   :  { %v1994_v53 = vmul.f32 %v3081_v44, %v1991_v47  ;;  %2144 = vmatpush.msra.mxu1 %v4107_v43 }
0x13e0   :  { %v1985_v56 = vsub.f32 1.5, %v1984_v49  ;;  %v4123_v49 = vld [vmem:[%s4475_s1 + $0x438] sm:$0xff] }
0x13e1   :  { %v4043_v20 = vadd.f32 %v3082_v48, %v1994_v53  ;;  %v4128_v53 = vld [vmem:[%s4475_s1 + $0x430] sm:$0xff]  ;;  %2179 = vmatpush.msrb.mxu2 %v4123_v49 }
0x13e2   :  { %v1986_v58 = vmul.f32 %v3193_v41, %v1985_v56 }
0x13e3   :  { %v2043_v32 = vsel %vm98_vm1, %v4043_v20, 0.0  ;;  %2180 = vmatpush.msrb.mxu2 %v4128_v53 }
0x13e4   :  { %2044 = vadd.xlane.f32.xlu2 %v2043_v32  ;;  %v1990_v60 = vsel %vm1989_vm3, %v3193_v41, %v1986_v58 }
0x13e5   :  { %v1992_v34 = vmul.f32 %v1990_v60, %v1958_v29  ;;  %v4086_v29 = vld [vmem:[%s4475_s1 + $0x368] ss:$0 sm:$0xff] }
0x13e7   :  { %v1995_v62 = vmul.f32 %v3081_v44, %v1992_v34  ;;  %v4114_v44 = vld [vmem:[%s4475_s1 + $0x398] ss:$0 sm:$0xff]  ;;  %v4137_v34 = vld [vmem:[%s4475_s1 + $0x428] sm:$0xff] }
0x13e8   :  { %2181 = vmatpush.msrb.mxu2 %v4137_v34 }
0x13e9   :  { %v4047_v1 = vadd.f32 %v3082_v48, %v1995_v62  ;;  %v4143_v62 = vld [vmem:[%s4475_s1 + $0x420] sm:$0xff] }
0x13ea   :  { %2182 = vmatpush.msrb.mxu2 %v4143_v62 }
0x13eb   :  { %v2046_v21 = vsel %vm102_vm2, %v4047_v1, 0.0 }
0x13ec   :  { %2047 = vadd.xlane.f32.xlu1 %v2046_v21  ;;  %v4149_v21 = vld [vmem:[%s4475_s1 + $0x418] sm:$0xff] }
0x13ed   :  { %2183 = vmatpush.msrb.mxu2 %v4149_v21 }
0x1457   :  { %v2045_v54 = vpop.xlane.xlu2 %2044 }
0x1458   :  { %v2049_v57 = vmul.f32 %v2045_v54, %v3372_v46  ;;  %v4154_v54 = vld [vmem:[%s4475_s1 + $0x410] sm:$0xff] }
0x1459   :  { %2184 = vmatpush.msrb.mxu2 %v4154_v54 }
0x145a   :  { %v2051_v3 = vsub.f32 %v4043_v20, %v2049_v57  ;;  %v4161_v57 = vld [vmem:[%s4475_s1 + $0x408] sm:$0xff] }
0x145b   :  { %2185 = vmatpush.msrb.mxu2 %v4161_v57 }
0x145c   :  { %v2053_v5 = vmul.f32 %v2051_v3, %v2051_v3 }
0x145e   :  { %v2055_v7 = vsel %vm98_vm1, %v2053_v5, 0.0 }
0x145f   :  { %2056 = vadd.xlane.f32.xlu0 %v2055_v7  ;;  %v2048_v33 = vpop.xlane.xlu1 %2047 }
0x1460   :  { %v2050_v50 = vmul.f32 %v2048_v33, %v3372_v46 }
0x1462   :  { %v2052_v11 = vsub.f32 %v4047_v1, %v2050_v50 }
0x1464   :  { %v2054_v52 = vmul.f32 %v2052_v11, %v2052_v11 }
0x1466   :  { %v2058_v9 = vsel %vm102_vm2, %v2054_v52, 0.0 }
0x1467   :  { %2059 = vadd.xlane.f32.xlu2 %v2058_v9 }
0x14d2   :  { %v2057_v4 = vpop.xlane.xlu0 %2056 }
0x14d3   :  { %v2061_v61 = vmul.f32 %v2057_v4, %v3372_v46  ;;  %v4193_v4 = vld [vmem:[%s4475_s1 + $0x3e0] sm:$0xff] }
0x14d4   :  { %2241 = vmatpush.msra.mxu0 %v4193_v4 }
0x14d5   :  { %v2063_v14 = vadd.f32 1e-06, %v2061_v61  ;;  %v4199_v61 = vld [vmem:[%s4475_s1 + $0x3d8] sm:$0xff] }
0x14d6   :  { %2242 = vmatpush.msra.mxu0 %v4199_v61 }
0x14d7   :  { %3194 = vrsqrt.f32 %v2063_v14  ;;  %vm2071_vm4 = vweird.f32 %v2063_v14 }
0x14da   :  { %v2060_v15 = vpop.xlane.xlu2 %2059 }
0x14db   :  { %v2062_v0 = vmul.f32 %v2060_v15, %v3372_v46  ;;  %v4211_v15 = vld [vmem:[%s4475_s1 + $0x3c8] sm:$0xff] }
0x14dd   :  { %v3195_v24 = vpop.eup %3194  ;;  %v2064_v28 = vadd.f32 1e-06, %v2062_v0  ;;  %v4217_v0 = vld [vmem:[%s4475_s1 + $0x3c0] sm:$0xff] }
0x14de   :  { %v2066_v16 = vmul.f32 %v3195_v24, %v2063_v14  ;;  %vm2072_vm10 = vweird.f32 %v3195_v24  ;;  %v4205_v14 = vld [vmem:[%s4475_s1 + $0x3d0] sm:$0xff] }
0x14df   :  { %3196 = vrsqrt.f32 %v2064_v28  ;;  %vm2073_vm5 = vmor %vm2071_vm4, %vm2072_vm10  ;;  %vm2081_vm6 = vweird.f32 %v2064_v28  ;;  %2243 = vmatpush.msra.mxu0 %v4205_v14 }
0x14e0   :  { %v2067_v17 = vmul.f32 %v3195_v24, %v2066_v16 }
0x14e1   :  { %2244 = vmatpush.msra.mxu0 %v4211_v15 }
0x14e2   :  { %v2068_v2 = vmul.f32 0.5, %v2067_v17 }
0x14e3   :  { %2245 = vmatpush.msra.mxu0 %v4217_v0 }
0x14e4   :  { %v2069_v18 = vsub.f32 1.5, %v2068_v2 }
0x14e5   :  { %v3197_v59 = vpop.eup %3196 }
0x14e6   :  { %v2070_v39 = vmul.f32 %v3195_v24, %v2069_v18  ;;  %v2076_v10 = vmul.f32 %v3197_v59, %v2064_v28  ;;  %vm2082_vm12 = vweird.f32 %v3197_v59 }
0x14e7   :  { %vm2083_vm7 = vmor %vm2081_vm6, %vm2082_vm12 }
0x14e8   :  { %v2074_v22 = vsel %vm2073_vm5, %v3195_v24, %v2070_v39  ;;  %v2077_v23 = vmul.f32 %v3197_v59, %v2076_v10 }
0x14e9   :  { %v2085_v63 = vmul.f32 %v2074_v22, %v2051_v3  ;;  %v4167_v3 = vld [vmem:[%s4475_s1 + $0x400] sm:$0xff] }
0x14ea   :  { %v2078_v26 = vmul.f32 0.5, %v2077_v23  ;;  %2186 = vmatpush.msrb.mxu2 %v4167_v3 }
0x14eb   :  { %v2088_v6 = vmul.f32 %v4086_v29, %v2085_v63 }
0x14ec   :  { %v2079_v27 = vsub.f32 1.5, %v2078_v26 }
0x14ed   :  { %v2091_v30 = vadd.f32 %v4091_v25, %v2088_v6 }
0x14ee   :  { %v2080_v31 = vmul.f32 %v3197_v59, %v2079_v27 }
0x14ef   :  { %3023 = vmatmul.msk.f32.vlgmr.msrb.gmra.mxu0 %vm98_vm1, %v2091_v30 }
0x14f0   :  { %v2084_v35 = vsel %vm2083_vm7, %v3197_v59, %v2080_v31  ;;  %2547 = vmatpush.msrb.mxu0 %v4073_v42 }
0x14f1   :  { %v2086_v36 = vmul.f32 %v2084_v35, %v2052_v11 }
0x14f2   :  { %2548 = vmatpush.msrb.mxu0 %v4078_v13 }
0x14f3   :  { %v2089_v40 = vmul.f32 %v4086_v29, %v2086_v36 }
0x14f4   :  { %2549 = vmatpush.msrb.mxu0 %v4102_v12 }
0x14f5   :  { %v2092_v41 = vadd.f32 %v4091_v25, %v2089_v40 }
0x14f6   :  { %2550 = vmatpush.msrb.mxu0 %v4107_v43  ;;  %v4229_v43 = vld [vmem:[%s4475_s1 + $0x440] ss:$0 sm:$0xff] }
0x14f7   :  { %3024 = vmatmul.msk.f32.gmra.mxu0 %vm98_vm1, %v2092_v41 }
0x156c   :  { %v2117_v45 = vpop.f32.mrf.mxu0 }
0x156d   :  { %v2118_v19 = vadd.f32 %v4114_v44, %v2117_v45 }
0x156f   :  { %3025 = vmatmul.msk.f32.vlgmr.msra.gmra.mxu1 %vm98_vm1, %v2118_v19 }
0x1574   :  { %v2120_v47 = vpop.f32.mrf.mxu0 }
0x1575   :  { %v2121_v48 = vadd.f32 %v4114_v44, %v2120_v47 }
0x1577   :  { %3026 = vmatmul.msk.f32.gmra.mxu1 %vm98_vm1, %v2121_v48 }
0x15ec   :  { %v2146_v56 = vpop.f32.mrf.mxu1 }
0x15ed   :  { %v2152_v58 = vsel %vm41_vm0, %v2146_v56, -inf }
0x15ee   :  { %2153 = vmax.xlane.f32.xlu1 %v2152_v58 }
0x15f4   :  { %v2149_v32 = vpop.f32.mrf.mxu1 }
0x15f5   :  { %v2156_v60 = vsel %vm2155_vm8, %v2149_v32, -inf }
0x15f6   :  { %2157 = vmax.xlane.f32.xlu0 %v2156_v60 }
0x1661   :  { %v2154_v5 = vpop.xlane.xlu1 %2153 }
0x1662   :  { %v2159_v7 = vsub.f32 %v2146_v56, %v2154_v5 }
0x1664   :  { %v2161_v33 = vmul.f32 1.442695, %v2159_v7 }
0x1666   :  { %3198 = vpow2.f32 %v2161_v33 }
0x1669   :  { %v2158_v50 = vpop.xlane.xlu0 %2157 }
0x166a   :  { %v2160_v11 = vsub.f32 %v2149_v32, %v2158_v50 }
0x166c   :  { %v3199_v52 = vpop.eup %3198  ;;  %v2163_v9 = vmul.f32 1.442695, %v2160_v11 }
0x166d   :  { %3027 = vmatmul.msk.f32.vlgmr.msrb.gmra.mxu2 %vm41_vm0, %v3199_v52 }
0x166e   :  { %3200 = vpow2.f32 %v2163_v9 }
0x1674   :  { %v3201_v37 = vpop.eup %3200 }
0x1675   :  { %3028 = vmatmul.msk.f32.gmra.mxu2 %vm41_vm0, %v3201_v37 }
0x16f0   :  { %v2188_v24 = vpop.f32.mrf.mxu2 }
0x16f1   :  { %3202 = vrcp.f32 %v2188_v24  ;;  %v2205_v18 = vand.u32 2147483648, %v2188_v24  ;;  %v2203_v39 = vand.u32 2147483647, %v2188_v24  ;;  %vm2199_vm14 = vweird.f32 %v2188_v24 }
0x16f3   :  { %v2206_v42 = vor.u32 1.1754944e-38, %v2205_v18  ;;  %vm2204_vm3 = vcmp.eq.f32.partialorder %v2203_v39, 8.507059e+37 }
0x16f7   :  { %v3203_v16 = vpop.eup %3202 }
0x16f8   :  { %v2195_v28 = vmul.f32 %v3203_v16, %v2188_v24  ;;  %v2191_v17 = vpop.f32.mrf.mxu2  ;;  %vm2200_vm9 = vweird.f32 %v3203_v16  ;;  %v2032_v24 = vld [vmem:[%s4475_s1 + $0x470] sm:$0xff] }
0x16f9   :  { %3204 = vrcp.f32 %v2191_v17  ;;  %vm2201_vm15 = vmor %vm2199_vm14, %vm2200_vm9  ;;  %v2220_v27 = vand.u32 2147483648, %v2191_v17  ;;  %v2218_v31 = vand.u32 2147483647, %v2191_v17  ;;  %vm2214_vm4 = vweird.f32 %v2191_v17  ;;  %2327 = vmatpush.msrb.mxu1 %v2032_v24  ;;  %2728 = vmatpush.msrb.mxu3 %v2032_v24 }
0x16fa   :  { %v2196_v2 = vsub.f32 1.0, %v2195_v28  ;;  %v2030_v28 = vld [vmem:[%s4475_s1 + $0x460] sm:$0xff] }
0x16fb   :  { %v2221_v36 = vor.u32 1.1754944e-38, %v2220_v27  ;;  %vm2219_vm12 = vcmp.eq.f32.partialorder %v2218_v31, 8.507059e+37 }
0x16fc   :  { %v2197_v59 = vmul.f32 %v3203_v16, %v2196_v2 }
0x16fe   :  { %v2198_v10 = vadd.f32 %v3203_v16, %v2197_v59 }
0x16ff   :  { %v3205_v13 = vpop.eup %3204 }
0x1700   :  { %v2202_v22 = vsel %vm2201_vm15, %v3203_v16, %v2198_v10  ;;  %v2210_v23 = vmul.f32 %v3205_v13, %v2191_v17  ;;  %vm2215_vm10 = vweird.f32 %v3205_v13  ;;  %v2031_v16 = vld [vmem:[%s4475_s1 + $0x468] sm:$0xff]  ;;  %v2029_v17 = vld [vmem:[%s4475_s1 + $0x458] sm:$0xff] }
0x1701   :  { %v2207_v63 = vsel %vm2204_vm3, %v2206_v42, %v2202_v22  ;;  %vm2216_vm5 = vmor %vm2214_vm4, %vm2215_vm10  ;;  %2328 = vmatpush.msrb.mxu1 %v2031_v16  ;;  %2729 = vmatpush.msrb.mxu3 %v2031_v16 }
0x1702   :  { %v2208_v6 = vmul.f32 %v3199_v52, %v2207_v63  ;;  %v2211_v26 = vsub.f32 1.0, %v2210_v23 }
0x1703   :  { %2329 = vmatpush.msrb.mxu1 %v2030_v28  ;;  %2730 = vmatpush.msrb.mxu3 %v2030_v28 }
0x1704   :  { %3029 = vmatmul.msk.f32.vlgmr.msra.gmra.mxu0 %vm41_vm0, %v2208_v6  ;;  %v2212_v30 = vmul.f32 %v3205_v13, %v2211_v26 }
0x1705   :  { %2330 = vmatpush.msrb.mxu1 %v2029_v17  ;;  %2731 = vmatpush.msrb.mxu3 %v2029_v17  ;;  %v2037_v17 = vld [vmem:[%s4475_s1 + $0x498] sm:$0xff] }
0x1706   :  { %v2213_v35 = vadd.f32 %v3205_v13, %v2212_v30 }
0x1707   :  { %2584 = vmatpush.msra.mxu1 %v4123_v49 }
0x1708   :  { %v2217_v40 = vsel %vm2216_vm5, %v3205_v13, %v2213_v35 }
0x1709   :  { %v2222_v41 = vsel %vm2219_vm12, %v2221_v36, %v2217_v40  ;;  %2585 = vmatpush.msra.mxu1 %v4128_v53 }
0x170a   :  { %v2223_v12 = vmul.f32 %v3201_v37, %v2222_v41 }
0x170b   :  { %2586 = vmatpush.msra.mxu1 %v4137_v34 }
0x170c   :  { %3030 = vmatmul.msk.f32.gmra.mxu0 %vm41_vm0, %v2223_v12 }
0x170d   :  { %2587 = vmatpush.msra.mxu1 %v4143_v62 }
0x170f   :  { %2588 = vmatpush.msra.mxu1 %v4149_v21  ;;  %v4274_v21 = vld [vmem:[%s4475_s1 + $0x448] ss:$0 sm:$0xff] }
0x1711   :  { %2589 = vmatpush.msra.mxu1 %v4154_v54 }
0x1713   :  { %2590 = vmatpush.msra.mxu1 %v4161_v57 }
0x1715   :  { %2591 = vmatpush.msra.mxu1 %v4167_v3  ;;  %v4279_v3 = vld [vmem:[%s4475_s1 + $0x450] ss:$0 sm:$0xff] }
0x1781   :  { %v2247_v45 = vpop.f32.mrf.mxu0 }
0x1782   :  { %v2253_v19 = vadd.f32 %v2247_v45, %v4043_v20  ;;  %v4290_v45 = vld [vmem:[%s4475_s1 + $0x478] ss:$0 sm:$0xff] }
0x1784   :  { %v4233_v47 = vadd.f32 %v4229_v43, %v2253_v19 }
0x1786   :  { %v2258_v48 = vsel %vm98_vm1, %v4233_v47, 0.0 }
0x1787   :  { %2259 = vadd.xlane.f32.xlu2 %v2258_v48 }
0x1789   :  { %v2250_v56 = vpop.f32.mrf.mxu0 }
0x178a   :  { %v2254_v58 = vadd.f32 %v2250_v56, %v4047_v1 }
0x178c   :  { %v4239_v32 = vadd.f32 %v4229_v43, %v2254_v58 }
0x178e   :  { %v2261_v60 = vsel %vm102_vm2, %v4239_v32, 0.0 }
0x178f   :  { %2262 = vadd.xlane.f32.xlu1 %v2261_v60 }
0x17fa   :  { %v2260_v5 = vpop.xlane.xlu2 %2259 }
0x17fb   :  { %v2264_v20 = vmul.f32 %v2260_v5, %v3372_v46 }
0x17fd   :  { %v2266_v7 = vsub.f32 %v4233_v47, %v2264_v20 }
0x17ff   :  { %v2268_v33 = vmul.f32 %v2266_v7, %v2266_v7 }
0x1801   :  { %v2270_v50 = vsel %vm98_vm1, %v2268_v33, 0.0  ;;  %v2041_v33 = vld [vmem:[%s4475_s1 + $0x4b8] sm:$0xff] }
0x1802   :  { %2271 = vadd.xlane.f32.xlu0 %v2270_v50  ;;  %v2263_v11 = vpop.xlane.xlu1 %2262  ;;  %2432 = vmatpush.msra.mxu2 %v2041_v33 }
0x1803   :  { %v2265_v52 = vmul.f32 %v2263_v11, %v3372_v46  ;;  %2833 = vmatpush.msra.mxu0 %v2041_v33  ;;  %v2040_v11 = vld [vmem:[%s4475_s1 + $0x4b0] sm:$0xff] }
0x1804   :  { %2433 = vmatpush.msra.mxu2 %v2040_v11 }
0x1805   :  { %v2267_v1 = vsub.f32 %v4239_v32, %v2265_v52  ;;  %2834 = vmatpush.msra.mxu0 %v2040_v11 }
0x1807   :  { %v2269_v9 = vmul.f32 %v2267_v1, %v2267_v1 }
0x1809   :  { %v2273_v37 = vsel %vm102_vm2, %v2269_v9, 0.0 }
0x180a   :  { %2274 = vadd.xlane.f32.xlu2 %v2273_v37  ;;  %v2038_v37 = vld [vmem:[%s4475_s1 + $0x4a0] sm:$0xff] }
0x1875   :  { %v2272_v2 = vpop.xlane.xlu0 %2271 }
0x1876   :  { %v2276_v18 = vmul.f32 %v2272_v2, %v3372_v46 }
0x1878   :  { %v2278_v59 = vadd.f32 1e-06, %v2276_v18  ;;  %v2036_v18 = vld [vmem:[%s4475_s1 + $0x490] sm:$0xff] }
0x187a   :  { %3206 = vrsqrt.f32 %v2278_v59  ;;  %vm2286_vm7 = vweird.f32 %v2278_v59 }
0x187d   :  { %v2275_v39 = vpop.xlane.xlu2 %2274 }
0x187e   :  { %v2277_v10 = vmul.f32 %v2275_v39, %v3372_v46 }
0x1880   :  { %v3207_v42 = vpop.eup %3206  ;;  %v2279_v13 = vadd.f32 1e-06, %v2277_v10 }
0x1881   :  { %v2281_v49 = vmul.f32 %v3207_v42, %v2278_v59  ;;  %vm2287_vm6 = vweird.f32 %v3207_v42 }
0x1882   :  { %3208 = vrsqrt.f32 %v2279_v13  ;;  %vm2288_vm9 = vmor %vm2286_vm7, %vm2287_vm6  ;;  %vm2296_vm15 = vweird.f32 %v2279_v13 }
0x1883   :  { %v2282_v53 = vmul.f32 %v3207_v42, %v2281_v49  ;;  %v2034_v49 = vld [vmem:[%s4475_s1 + $0x480] sm:$0xff] }
0x1885   :  { %v2283_v34 = vmul.f32 0.5, %v2282_v53 }
0x1887   :  { %v2284_v22 = vsub.f32 1.5, %v2283_v34 }
0x1888   :  { %v3209_v62 = vpop.eup %3208 }
0x1889   :  { %v2285_v63 = vmul.f32 %v3207_v42, %v2284_v22  ;;  %v2291_v54 = vmul.f32 %v3209_v62, %v2279_v13  ;;  %vm2297_vm14 = vweird.f32 %v3209_v62 }
0x188a   :  { %vm2298_vm3 = vmor %vm2296_vm15, %vm2297_vm14 }
0x188b   :  { %v2289_v57 = vsel %vm2288_vm9, %v3207_v42, %v2285_v63  ;;  %v2292_v6 = vmul.f32 %v3209_v62, %v2291_v54  ;;  %v2035_v42 = vld [vmem:[%s4475_s1 + $0x488] sm:$0xff] }
0x188c   :  { %v2300_v23 = vmul.f32 %v2289_v57, %v2266_v7 }
0x188d   :  { %v2293_v27 = vmul.f32 0.5, %v2292_v6 }
0x188e   :  { %v2303_v26 = vmul.f32 %v4274_v21, %v2300_v23 }
0x188f   :  { %v2294_v30 = vsub.f32 1.5, %v2293_v27 }
0x1890   :  { %v2306_v31 = vadd.f32 %v4279_v3, %v2303_v26 }
0x1891   :  { %v2295_v35 = vmul.f32 %v3209_v62, %v2294_v30 }
0x1892   :  { %3031 = vmatmul.msk.f32.vlgmr.msrb.gmra.mxu1 %vm98_vm1, %v2306_v31 }
0x1893   :  { %v2299_v36 = vsel %vm2298_vm3, %v3209_v62, %v2295_v35 }
0x1894   :  { %v2301_v40 = vmul.f32 %v2299_v36, %v2267_v1  ;;  %v2039_v1 = vld [vmem:[%s4475_s1 + $0x4a8] sm:$0xff] }
0x1895   :  { %2434 = vmatpush.msra.mxu2 %v2039_v1  ;;  %2835 = vmatpush.msra.mxu0 %v2039_v1 }
0x1896   :  { %v2304_v41 = vmul.f32 %v4274_v21, %v2301_v40 }
0x1897   :  { %2435 = vmatpush.msra.mxu2 %v2038_v37  ;;  %2836 = vmatpush.msra.mxu0 %v2038_v37 }
0x1898   :  { %v2307_v12 = vadd.f32 %v4279_v3, %v2304_v41 }
0x1899   :  { %2436 = vmatpush.msra.mxu2 %v2037_v17  ;;  %2837 = vmatpush.msra.mxu0 %v2037_v17 }
0x189a   :  { %3032 = vmatmul.msk.f32.gmra.mxu1 %vm98_vm1, %v2307_v12 }
0x189b   :  { %2437 = vmatpush.msra.mxu2 %v2036_v18  ;;  %2838 = vmatpush.msra.mxu0 %v2036_v18 }
0x189d   :  { %2438 = vmatpush.msra.mxu2 %v2035_v42  ;;  %2839 = vmatpush.msra.mxu0 %v2035_v42 }
0x189f   :  { %2439 = vmatpush.msra.mxu2 %v2034_v49  ;;  %2840 = vmatpush.msra.mxu0 %v2034_v49 }
0x18a1   :  { %2643 = vmatpush.msrb.mxu2 %v4175_v55 }
0x18a3   :  { %2644 = vmatpush.msrb.mxu2 %v4181_v38 }
0x18a5   :  { %2645 = vmatpush.msrb.mxu2 %v4187_v51 }
0x18a7   :  { %2646 = vmatpush.msrb.mxu2 %v4193_v4 }
0x18a9   :  { %2647 = vmatpush.msrb.mxu2 %v4199_v61 }
0x18ab   :  { %2648 = vmatpush.msrb.mxu2 %v4205_v14 }
0x18ad   :  { %2649 = vmatpush.msrb.mxu2 %v4211_v15 }
0x18af   :  { %2650 = vmatpush.msrb.mxu2 %v4217_v0 }
0x190f   :  { %v2332_v19 = vpop.f32.mrf.mxu1 }
0x1910   :  { %v4293_v48 = vadd.f32 %v4290_v45, %v2332_v19 }
0x1912   :  { %v4296_v56 = vmul.f32 0.70710677, %v4293_v48  ;;  %v2338_v0 = vmul.f32 0.5, %v4293_v48  ;;  %v4354_v48 = vld [vmem:[%s4475_s1 + $0x4c0] ss:$0 sm:$0xff] }
0x1914   :  { %v2346_v58 = vand.u32 2147483647, %v4296_v56  ;;  %vm2342_vm15 = vcmp.ge.f32.partialorder %v4296_v56, 0.0 }
0x1915   :  { %v2344_v15 = vsel %vm2342_vm15, 1.0, %v3256_v8 }
0x1916   :  { %v2348_v60 = vmul.f32 0.3275911, %v2346_v58  ;;  %v2400_v63 = vsub.f32 0.0, %v2346_v58 }
0x1917   :  { %v2335_v20 = vpop.f32.mrf.mxu1 }
0x1918   :  { %v2350_v5 = vadd.f32 1.0, %v2348_v60  ;;  %v4300_v7 = vadd.f32 %v4290_v45, %v2335_v20  ;;  %v2402_v27 = vmul.f32 %v2400_v63, %v2346_v58 }
0x191a   :  { %3210 = vrcp.f32 %v2350_v5  ;;  %v4306_v50 = vmul.f32 0.70710677, %v4300_v7  ;;  %v2363_v59 = vand.u32 2147483648, %v2350_v5  ;;  %v2361_v10 = vand.u32 2147483647, %v2350_v5 }
0x191b   :  { %vm2357_vm4 = vweird.f32 %v2350_v5  ;;  %v2404_v38 = vmul.f32 1.442695, %v2402_v27 }
0x191c   :  { %v4312_v52 = vand.u32 2147483647, %v4306_v50  ;;  %v2364_v53 = vor.u32 1.1754944e-38, %v2363_v59  ;;  %vm2362_vm12 = vcmp.eq.f32.partialorder %v2361_v10, 8.507059e+37  ;;  %vm2343_vm3 = vcmp.ge.f32.partialorder %v4306_v50, 0.0 }
0x191d   :  { %v2345_v49 = vsel %vm2343_vm3, 1.0, %v3256_v8 }
0x191e   :  { %v2349_v9 = vmul.f32 0.3275911, %v4312_v52  ;;  %v2401_v51 = vsub.f32 0.0, %v4312_v52 }
0x1920   :  { %v3211_v24 = vpop.eup %3210  ;;  %v2351_v28 = vadd.f32 1.0, %v2349_v9  ;;  %v2403_v20 = vmul.f32 %v2401_v51, %v4312_v52 }
0x1921   :  { %v2353_v16 = vmul.f32 %v3211_v24, %v2350_v5  ;;  %vm2358_vm10 = vweird.f32 %v3211_v24 }
0x1922   :  { %3212 = vrcp.f32 %v2351_v28  ;;  %vm2359_vm5 = vmor %vm2357_vm4, %vm2358_vm10  ;;  %v2378_v26 = vand.u32 2147483648, %v2351_v28  ;;  %v2376_v31 = vand.u32 2147483647, %v2351_v28  ;;  %vm2372_vm7 = vweird.f32 %v2351_v28 }
0x1923   :  { %v2354_v2 = vsub.f32 1.0, %v2353_v16  ;;  %3214 = vpow2.f32 %v2404_v38  ;;  %v2406_v9 = vmul.f32 1.442695, %v2403_v20 }
0x1924   :  { %v2379_v40 = vor.u32 1.1754944e-38, %v2378_v26  ;;  %vm2377_vm14 = vcmp.eq.f32.partialorder %v2376_v31, 8.507059e+37 }
0x1925   :  { %v2355_v39 = vmul.f32 %v3211_v24, %v2354_v2  ;;  %3216 = vpow2.f32 %v2406_v9 }
0x1927   :  { %v2356_v13 = vadd.f32 %v3211_v24, %v2355_v39 }
0x1928   :  { %v3213_v34 = vpop.eup %3212 }
0x1929   :  { %v2360_v22 = vsel %vm2359_vm5, %v3211_v24, %v2356_v13  ;;  %v2368_v54 = vmul.f32 %v3213_v34, %v2351_v28  ;;  %vm2373_vm6 = vweird.f32 %v3213_v34  ;;  %v3215_v37 = vpop.eup %3214 }
0x192a   :  { %v2365_v62 = vsel %vm2362_vm12, %v2364_v53, %v2360_v22  ;;  %vm2374_vm9 = vmor %vm2372_vm7, %vm2373_vm6  ;;  %v2339_v53 = vmul.f32 0.5, %v4300_v7 }
0x192b   :  { %v2382_v57 = vmul.f32 1.0614054, %v2365_v62  ;;  %v2369_v23 = vsub.f32 1.0, %v2368_v54  ;;  %v3217_v39 = vpop.eup %3216 }
0x192d   :  { %v2384_v6 = vadd.f32 -1.4531521, %v2382_v57  ;;  %v2370_v30 = vmul.f32 %v3213_v34, %v2369_v23 }
0x192f   :  { %v2386_v35 = vmul.f32 %v2384_v6, %v2365_v62  ;;  %v2371_v55 = vadd.f32 %v3213_v34, %v2370_v30 }
0x1931   :  { %v2388_v36 = vadd.f32 1.4214138, %v2386_v35  ;;  %v2375_v41 = vsel %vm2374_vm9, %v3213_v34, %v2371_v55 }
0x1932   :  { %v2380_v19 = vsel %vm2377_vm14, %v2379_v40, %v2375_v41 }
0x1933   :  { %v2390_v12 = vmul.f32 %v2388_v36, %v2365_v62  ;;  %v2383_v58 = vmul.f32 1.0614054, %v2380_v19 }
0x1935   :  { %v2392_v60 = vadd.f32 -0.28449672, %v2390_v12  ;;  %v2385_v4 = vadd.f32 -1.4531521, %v2383_v58 }
0x1937   :  { %v2394_v5 = vmul.f32 %v2392_v60, %v2365_v62  ;;  %v2387_v61 = vmul.f32 %v2385_v4, %v2380_v19 }
0x1939   :  { %v2396_v33 = vadd.f32 0.2548296, %v2394_v5  ;;  %v2389_v11 = vadd.f32 1.4214138, %v2387_v61 }
0x193b   :  { %v2398_v1 = vmul.f32 %v2396_v33, %v2365_v62  ;;  %v2391_v24 = vmul.f32 %v2389_v11, %v2380_v19 }
0x193d   :  { %v2408_v14 = vmul.f32 %v3215_v37, %v2398_v1  ;;  %v2393_v16 = vadd.f32 -0.28449672, %v2391_v24 }
0x193f   :  { %v2410_v28 = vsub.f32 1.0, %v2408_v14  ;;  %v2395_v17 = vmul.f32 %v2393_v16, %v2380_v19 }
0x1941   :  { %v2412_v2 = vmul.f32 %v2410_v28, %v2344_v15  ;;  %v2397_v52 = vadd.f32 0.2548296, %v2395_v17 }
0x1943   :  { %v2414_v18 = vadd.f32 1.0, %v2412_v2  ;;  %v2399_v59 = vmul.f32 %v2397_v52, %v2380_v19 }
0x1945   :  { %v2416_v10 = vmul.f32 %v2414_v18, %v2338_v0  ;;  %v2409_v42 = vmul.f32 %v3217_v39, %v2399_v59 }
0x1947   :  { %3033 = vmatmul.msk.f32.vlgmr.msra.gmra.mxu2 %vm41_vm0, %v2416_v10  ;;  %v2411_v56 = vsub.f32 1.0, %v2409_v42 }
0x1949   :  { %v2413_v13 = vmul.f32 %v2411_v56, %v2345_v49 }
0x194b   :  { %v2415_v34 = vadd.f32 1.0, %v2413_v13 }
0x194d   :  { %v2417_v22 = vmul.f32 %v2415_v34, %v2339_v53 }
0x194f   :  { %3034 = vmatmul.msk.f32.gmra.mxu2 %vm41_vm0, %v2417_v22 }
0x19ca   :  { %v2441_v62 = vpop.f32.mrf.mxu2 }
0x19cb   :  { %v2447_v50 = vadd.f32 %v2441_v62, %v4233_v47 }
0x19cd   :  { %v4358_v63 = vadd.f32 %v4354_v48, %v2447_v50 }
0x19cf   :  { %v2452_v54 = vsel %vm98_vm1, %v4358_v63, 0.0 }
0x19d0   :  { %2453 = vadd.xlane.f32.xlu1 %v2452_v54 }
0x19d2   :  { %v2444_v7 = vpop.f32.mrf.mxu2 }
0x19d3   :  { %v2448_v57 = vadd.f32 %v2444_v7, %v4239_v32 }
0x19d5   :  { %v4364_v23 = vadd.f32 %v4354_v48, %v2448_v57 }
0x19d7   :  { %v2455_v6 = vsel %vm102_vm2, %v4364_v23, 0.0 }
0x19d8   :  { %2456 = vadd.xlane.f32.xlu0 %v2455_v6 }
0x1a43   :  { %v2454_v26 = vpop.xlane.xlu1 %2453 }
0x1a44   :  { %v2458_v47 = vmul.f32 %v2454_v26, %v3372_v46 }
0x1a46   :  { %v2460_v27 = vsub.f32 %v4358_v63, %v2458_v47 }
0x1a48   :  { %v2462_v30 = vmul.f32 %v2460_v27, %v2460_v27 }
0x1a4a   :  { %v2464_v31 = vsel %vm98_vm1, %v2462_v30, 0.0 }
0x1a4b   :  { %2465 = vadd.xlane.f32.xlu2 %v2464_v31  ;;  %v2457_v35 = vpop.xlane.xlu0 %2456 }
0x1a4c   :  { %v2459_v55 = vmul.f32 %v2457_v35, %v3372_v46 }
0x1a4e   :  { %v2461_v32 = vsub.f32 %v4364_v23, %v2459_v55 }
0x1a50   :  { %v2463_v36 = vmul.f32 %v2461_v32, %v2461_v32 }
0x1a52   :  { %v2467_v40 = vsel %vm102_vm2, %v2463_v36, 0.0 }
0x1a53   :  { %2468 = vadd.xlane.f32.xlu1 %v2467_v40 }
0x1abe   :  { %v2466_v38 = vpop.xlane.xlu2 %2465 }
0x1abf   :  { %v2470_v41 = vmul.f32 %v2466_v38, %v3372_v46 }
0x1ac1   :  { %v2472_v12 = vadd.f32 1e-06, %v2470_v41 }
0x1ac3   :  { %3218 = vrsqrt.f32 %v2472_v12  ;;  %vm2480_vm4 = vweird.f32 %v2472_v12 }
0x1ac6   :  { %v2469_v51 = vpop.xlane.xlu1 %2468 }
0x1ac7   :  { %v2471_v19 = vmul.f32 %v2469_v51, %v3372_v46 }
0x1ac9   :  { %v3219_v58 = vpop.eup %3218  ;;  %v2473_v4 = vadd.f32 1e-06, %v2471_v19 }
0x1aca   :  { %v2475_v60 = vmul.f32 %v3219_v58, %v2472_v12  ;;  %vm2481_vm10 = vweird.f32 %v3219_v58 }
0x1acb   :  { %3220 = vrsqrt.f32 %v2473_v4  ;;  %vm2482_vm5 = vmor %vm2480_vm4, %vm2481_vm10  ;;  %vm2490_vm6 = vweird.f32 %v2473_v4 }
0x1acc   :  { %v2476_v5 = vmul.f32 %v3219_v58, %v2475_v60 }
0x1ace   :  { %v2477_v20 = vmul.f32 0.5, %v2476_v5 }
0x1ad0   :  { %v2478_v61 = vsub.f32 1.5, %v2477_v20 }
0x1ad1   :  { %v3221_v33 = vpop.eup %3220 }
0x1ad2   :  { %v2479_v11 = vmul.f32 %v3219_v58, %v2478_v61  ;;  %v2485_v1 = vmul.f32 %v3221_v33, %v2473_v4  ;;  %vm2491_vm12 = vweird.f32 %v3221_v33 }
0x1ad3   :  { %vm2492_vm7 = vmor %vm2490_vm6, %vm2491_vm12 }
0x1ad4   :  { %v2483_v9 = vsel %vm2482_vm5, %v3219_v58, %v2479_v11  ;;  %v2486_v24 = vmul.f32 %v3221_v33, %v2485_v1 }
0x1ad5   :  { %v2494_v37 = vmul.f32 %v2483_v9, %v2460_v27 }
0x1ad6   :  { %v2487_v16 = vmul.f32 0.5, %v2486_v24 }
0x1ad7   :  { %v2496_v14 = vmul.f32 %v4086_v29, %v2494_v37 }
0x1ad8   :  { %v2488_v28 = vsub.f32 1.5, %v2487_v16 }
0x1ad9   :  { %v2498_v15 = vadd.f32 %v4091_v25, %v2496_v14 }
0x1ada   :  { %v2489_v17 = vmul.f32 %v3221_v33, %v2488_v28 }
0x1adb   :  { %3035 = vmatmul.msk.f32.vlgmr.msra.gmra.mxu3 %vm98_vm1, %v2498_v15 }
0x1adc   :  { %v2493_v2 = vsel %vm2492_vm7, %v3221_v33, %v2489_v17 }
0x1add   :  { %v2495_v52 = vmul.f32 %v2493_v2, %v2461_v32 }
0x1adf   :  { %v2497_v0 = vmul.f32 %v4086_v29, %v2495_v52 }
0x1ae1   :  { %v2499_v18 = vadd.f32 %v4091_v25, %v2497_v0 }
0x1ae3   :  { %3036 = vmatmul.msk.f32.gmra.mxu3 %vm98_vm1, %v2499_v18 }
0x1b5e   :  { %v2523_v59 = vpop.f32.mrf.mxu3 }
0x1b5f   :  { %v2524_v39 = vadd.f32 %v4114_v44, %v2523_v59 }
0x1b61   :  { %3037 = vmatmul.msk.f32.vlgmr.msrb.gmra.mxu0 %vm98_vm1, %v2524_v39 }
0x1b66   :  { %v2526_v10 = vpop.f32.mrf.mxu3 }
0x1b67   :  { %v2527_v42 = vadd.f32 %v4114_v44, %v2526_v10 }
0x1b69   :  { %3038 = vmatmul.msk.f32.gmra.mxu0 %vm98_vm1, %v2527_v42 }
0x1bde   :  { %v2552_v56 = vpop.f32.mrf.mxu0 }
0x1bdf   :  { %v2558_v49 = vsel %vm41_vm0, %v2552_v56, -inf }
0x1be0   :  { %2559 = vmax.xlane.f32.xlu0 %v2558_v49 }
0x1be6   :  { %v2555_v13 = vpop.f32.mrf.mxu0 }
0x1be7   :  { %v2561_v29 = vsel %vm2155_vm8, %v2555_v13, -inf }
0x1be8   :  { %2562 = vmax.xlane.f32.xlu2 %v2561_v29 }
0x1c53   :  { %v2560_v25 = vpop.xlane.xlu0 %2559 }
0x1c54   :  { %v2564_v53 = vsub.f32 %v2552_v56, %v2560_v25 }
0x1c56   :  { %v2566_v34 = vmul.f32 1.442695, %v2564_v53 }
0x1c58   :  { %3222 = vpow2.f32 %v2566_v34 }
0x1c5b   :  { %v2563_v22 = vpop.xlane.xlu2 %2562 }
0x1c5c   :  { %v2565_v62 = vsub.f32 %v2555_v13, %v2563_v22 }
0x1c5e   :  { %v3223_v50 = vpop.eup %3222  ;;  %v2568_v54 = vmul.f32 1.442695, %v2565_v62 }
0x1c5f   :  { %3039 = vmatmul.msk.f32.vlgmr.msra.gmra.mxu1 %vm41_vm0, %v3223_v50 }
0x1c60   :  { %3224 = vpow2.f32 %v2568_v54 }
0x1c66   :  { %v3225_v44 = vpop.eup %3224 }
0x1c67   :  { %3040 = vmatmul.msk.f32.gmra.mxu1 %vm41_vm0, %v3225_v44 }
0x1cdc   :  { %v2593_v7 = vpop.f32.mrf.mxu1 }
0x1cdd   :  { %3226 = vrcp.f32 %v2593_v7  ;;  %v2610_v27 = vand.u32 2147483648, %v2593_v7  ;;  %v2608_v31 = vand.u32 2147483647, %v2593_v7  ;;  %vm2604_vm9 = vweird.f32 %v2593_v7 }
0x1cdf   :  { %v2611_v55 = vor.u32 1.1754944e-38, %v2610_v27  ;;  %vm2609_vm15 = vcmp.eq.f32.partialorder %v2608_v31, 8.507059e+37 }
0x1ce3   :  { %v3227_v57 = vpop.eup %3226 }
0x1ce4   :  { %v2600_v6 = vmul.f32 %v3227_v57, %v2593_v7  ;;  %v2596_v26 = vpop.f32.mrf.mxu1  ;;  %vm2605_vm8 = vweird.f32 %v3227_v57 }
0x1ce5   :  { %3228 = vrcp.f32 %v2596_v26  ;;  %vm2606_vm14 = vmor %vm2604_vm9, %vm2605_vm8  ;;  %v2625_v51 = vand.u32 2147483648, %v2596_v26  ;;  %v2623_v58 = vand.u32 2147483647, %v2596_v26  ;;  %vm2619_vm10 = vweird.f32 %v2596_v26 }
0x1ce6   :  { %v2601_v47 = vsub.f32 1.0, %v2600_v6 }
0x1ce7   :  { %v2626_v4 = vor.u32 1.1754944e-38, %v2625_v51  ;;  %vm2624_vm5 = vcmp.eq.f32.partialorder %v2623_v58, 8.507059e+37 }
0x1ce8   :  { %v2602_v30 = vmul.f32 %v3227_v57, %v2601_v47 }
0x1cea   :  { %v2603_v35 = vadd.f32 %v3227_v57, %v2602_v30 }
0x1ceb   :  { %v3229_v32 = vpop.eup %3228 }
0x1cec   :  { %v2607_v36 = vsel %vm2606_vm14, %v3227_v57, %v2603_v35  ;;  %v2615_v38 = vmul.f32 %v3229_v32, %v2596_v26  ;;  %vm2620_vm3 = vweird.f32 %v3229_v32 }
0x1ced   :  { %v2612_v40 = vsel %vm2609_vm15, %v2611_v55, %v2607_v36  ;;  %vm2621_vm4 = vmor %vm2619_vm10, %vm2620_vm3 }
0x1cee   :  { %v2613_v41 = vmul.f32 %v3223_v50, %v2612_v40  ;;  %v2616_v12 = vsub.f32 1.0, %v2615_v38 }
0x1cf0   :  { %3041 = vmatmul.msk.f32.vlgmr.msrb.gmra.mxu2 %vm41_vm0, %v2613_v41  ;;  %v2617_v19 = vmul.f32 %v3229_v32, %v2616_v12 }
0x1cf2   :  { %v2618_v60 = vadd.f32 %v3229_v32, %v2617_v19 }
0x1cf4   :  { %v2622_v5 = vsel %vm2621_vm4, %v3229_v32, %v2618_v60 }
0x1cf5   :  { %v2627_v20 = vsel %vm2624_vm5, %v2626_v4, %v2622_v5 }
0x1cf6   :  { %v2628_v61 = vmul.f32 %v3225_v44, %v2627_v20 }
0x1cf8   :  { %3042 = vmatmul.msk.f32.gmra.mxu2 %vm41_vm0, %v2628_v61 }
0x1d73   :  { %v2652_v33 = vpop.f32.mrf.mxu2 }
0x1d74   :  { %v2658_v11 = vadd.f32 %v2652_v33, %v4358_v63 }
0x1d76   :  { %v4394_v1 = vadd.f32 %v4229_v43, %v2658_v11 }
0x1d78   :  { %v2662_v9 = vsel %vm98_vm1, %v4394_v1, 0.0 }
0x1d79   :  { %2663 = vadd.xlane.f32.xlu1 %v2662_v9 }
0x1d7b   :  { %v2655_v37 = vpop.f32.mrf.mxu2 }
0x1d7c   :  { %v2659_v24 = vadd.f32 %v2655_v37, %v4364_v23 }
0x1d7e   :  { %v4400_v14 = vadd.f32 %v4229_v43, %v2659_v24 }
0x1d80   :  { %v2665_v16 = vsel %vm102_vm2, %v4400_v14, 0.0 }
0x1d81   :  { %2666 = vadd.xlane.f32.xlu0 %v2665_v16 }
0x1dec   :  { %v2664_v28 = vpop.xlane.xlu1 %2663 }
0x1ded   :  { %v2668_v15 = vmul.f32 %v2664_v28, %v3372_v46 }
0x1def   :  { %v2670_v17 = vsub.f32 %v4394_v1, %v2668_v15 }
0x1df1   :  { %v2672_v2 = vmul.f32 %v2670_v17, %v2670_v17 }
0x1df3   :  { %v2674_v52 = vsel %vm98_vm1, %v2672_v2, 0.0 }
0x1df4   :  { %2675 = vadd.xlane.f32.xlu2 %v2674_v52  ;;  %v2667_v0 = vpop.xlane.xlu0 %2666 }
0x1df5   :  { %v2669_v18 = vmul.f32 %v2667_v0, %v3372_v46 }
0x1df7   :  { %v2671_v59 = vsub.f32 %v4400_v14, %v2669_v18 }
0x1df9   :  { %v2673_v43 = vmul.f32 %v2671_v59, %v2671_v59 }
0x1dfb   :  { %v2677_v39 = vsel %vm102_vm2, %v2673_v43, 0.0 }
0x1dfc   :  { %2678 = vadd.xlane.f32.xlu1 %v2677_v39 }
0x1e67   :  { %v2676_v10 = vpop.xlane.xlu2 %2675 }
0x1e68   :  { %v2680_v42 = vmul.f32 %v2676_v10, %v3372_v46 }
0x1e6a   :  { %v2682_v56 = vadd.f32 1e-06, %v2680_v42 }
0x1e6c   :  { %3230 = vrsqrt.f32 %v2682_v56  ;;  %vm2690_vm2 = vweird.f32 %v2682_v56 }
0x1e6f   :  { %v2679_v49 = vpop.xlane.xlu1 %2678 }
0x1e70   :  { %v2681_v13 = vmul.f32 %v2679_v49, %v3372_v46 }
0x1e72   :  { %v3231_v29 = vpop.eup %3230  ;;  %v2683_v53 = vadd.f32 1e-06, %v2681_v13 }
0x1e73   :  { %v2685_v25 = vmul.f32 %v3231_v29, %v2682_v56  ;;  %vm2691_vm12 = vweird.f32 %v3231_v29 }
0x1e74   :  { %3232 = vrsqrt.f32 %v2683_v53  ;;  %vm2692_vm6 = vmor %vm2690_vm2, %vm2691_vm12  ;;  %vm2700_vm8 = vweird.f32 %v2683_v53 }
0x1e75   :  { %v2686_v34 = vmul.f32 %v3231_v29, %v2685_v25 }
0x1e77   :  { %v2687_v22 = vmul.f32 0.5, %v2686_v34 }
0x1e79   :  { %v2688_v62 = vsub.f32 1.5, %v2687_v22 }
0x1e7a   :  { %v3233_v50 = vpop.eup %3232 }
0x1e7b   :  { %v2689_v54 = vmul.f32 %v3231_v29, %v2688_v62  ;;  %v2695_v44 = vmul.f32 %v3233_v50, %v2683_v53  ;;  %vm2701_vm7 = vweird.f32 %v3233_v50 }
0x1e7c   :  { %vm2702_vm9 = vmor %vm2700_vm8, %vm2701_vm7 }
0x1e7d   :  { %v2693_v7 = vsel %vm2692_vm6, %v3231_v29, %v2689_v54  ;;  %v2696_v6 = vmul.f32 %v3233_v50, %v2695_v44 }
0x1e7e   :  { %v2704_v57 = vmul.f32 %v2693_v7, %v2670_v17 }
0x1e7f   :  { %v2697_v47 = vmul.f32 0.5, %v2696_v6 }
0x1e80   :  { %v2706_v26 = vmul.f32 %v4274_v21, %v2704_v57 }
0x1e81   :  { %v2698_v46 = vsub.f32 1.5, %v2697_v47 }
0x1e82   :  { %v2708_v27 = vadd.f32 %v4279_v3, %v2706_v26 }
0x1e83   :  { %v2699_v30 = vmul.f32 %v3233_v50, %v2698_v46 }
0x1e84   :  { %3043 = vmatmul.msk.f32.vlgmr.msrb.gmra.mxu3 %vm98_vm1, %v2708_v27 }
0x1e85   :  { %v2703_v31 = vsel %vm2702_vm9, %v3233_v50, %v2699_v30 }
0x1e86   :  { %v2705_v35 = vmul.f32 %v2703_v31, %v2671_v59 }
0x1e88   :  { %v2707_v55 = vmul.f32 %v4274_v21, %v2705_v35 }
0x1e8a   :  { %v2709_v32 = vadd.f32 %v4279_v3, %v2707_v55 }
0x1e8c   :  { %3044 = vmatmul.msk.f32.gmra.mxu3 %vm98_vm1, %v2709_v32 }
0x1f07   :  { %v2733_v36 = vpop.f32.mrf.mxu3 }
0x1f08   :  { %v4419_v40 = vadd.f32 %v4290_v45, %v2733_v36 }
0x1f0a   :  { %v4422_v38 = vmul.f32 0.70710677, %v4419_v40 }
0x1f0c   :  { %v2747_v41 = vand.u32 2147483647, %v4422_v38  ;;  %vm2743_vm6 = vcmp.ge.f32.partialorder %v4422_v38, 0.0 }
0x1f0d   :  { %v2745_v55 = vsel %vm2743_vm6, 1.0, %v3256_v8 }
0x1f0e   :  { %v2749_v12 = vmul.f32 0.3275911, %v2747_v41  ;;  %v2801_v15 = vsub.f32 0.0, %v2747_v41 }
0x1f0f   :  { %v2736_v19 = vpop.f32.mrf.mxu3 }
0x1f10   :  { %v2751_v51 = vadd.f32 1.0, %v2749_v12  ;;  %v4426_v58 = vadd.f32 %v4290_v45, %v2736_v19  ;;  %v2803_v59 = vmul.f32 %v2801_v15, %v2747_v41  ;;  %v2739_v12 = vmul.f32 0.5, %v4419_v40  ;;  %v3091_v15 = vld [vmem:[%s4475_s1 + $0x350] ss:$0 sm:$0xff] }
0x1f12   :  { %3234 = vrcp.f32 %v2751_v51  ;;  %v4429_v21 = vmul.f32 0.70710677, %v4426_v58  ;;  %v2764_v33 = vand.u32 2147483648, %v2751_v51  ;;  %v2762_v9 = vand.u32 2147483647, %v2751_v51 }
0x1f13   :  { %vm2758_vm15 = vweird.f32 %v2751_v51  ;;  %v2805_v13 = vmul.f32 1.442695, %v2803_v59 }
0x1f14   :  { %v2748_v3 = vand.u32 2147483647, %v4429_v21  ;;  %v2765_v45 = vor.u32 1.1754944e-38, %v2764_v33  ;;  %vm2763_vm10 = vcmp.eq.f32.partialorder %v2762_v9, 8.507059e+37  ;;  %vm2744_vm7 = vcmp.ge.f32.partialorder %v4429_v21, 0.0 }
0x1f16   :  { %v2750_v60 = vmul.f32 0.3275911, %v2748_v3  ;;  %v2802_v53 = vsub.f32 0.0, %v2748_v3 }
0x1f18   :  { %v3235_v4 = vpop.eup %3234  ;;  %v2752_v20 = vadd.f32 1.0, %v2750_v60  ;;  %v2804_v44 = vmul.f32 %v2802_v53, %v2748_v3 }
0x1f19   :  { %v2754_v5 = vmul.f32 %v3235_v4, %v2751_v51  ;;  %vm2759_vm14 = vweird.f32 %v3235_v4 }
0x1f1a   :  { %3236 = vrcp.f32 %v2752_v20  ;;  %vm2760_vm3 = vmor %vm2758_vm15, %vm2759_vm14  ;;  %v2779_v18 = vand.u32 2147483648, %v2752_v20  ;;  %v2777_v39 = vand.u32 2147483647, %v2752_v20  ;;  %vm2773_vm5 = vweird.f32 %v2752_v20 }
0x1f1b   :  { %v2755_v61 = vsub.f32 1.0, %v2754_v5  ;;  %3238 = vpow2.f32 %v2805_v13  ;;  %v2807_v47 = vmul.f32 1.442695, %v2804_v44  ;;  %v2746_v5 = vsel %vm2744_vm7, 1.0, %v3256_v8  ;;  %v2853_v8 = vld [vmem:[%s4475_s1 + $0x360] sm:$0xf] }
0x1f1c   :  { %v2780_v49 = vor.u32 1.1754944e-38, %v2779_v18  ;;  %vm2778_vm2 = vcmp.eq.f32.partialorder %v2777_v39, 8.507059e+37 }
0x1f1d   :  { %v2756_v11 = vmul.f32 %v3235_v4, %v2755_v61  ;;  %3240 = vpow2.f32 %v2807_v47  ;;  %v2740_v61 = vmul.f32 0.5, %v4426_v58 }
0x1f1f   :  { %v2757_v37 = vadd.f32 %v3235_v4, %v2756_v11 }
0x1f20   :  { %v3237_v24 = vpop.eup %3236 }
0x1f21   :  { %v2761_v16 = vsel %vm2760_vm3, %v3235_v4, %v2757_v37  ;;  %v2769_v17 = vmul.f32 %v3237_v24, %v2752_v20  ;;  %vm2774_vm4 = vweird.f32 %v3237_v24  ;;  %v3239_v46 = vpop.eup %3238 }
0x1f22   :  { %v2766_v28 = vsel %vm2763_vm10, %v2765_v45, %v2761_v16  ;;  %vm2775_vm12 = vmor %vm2773_vm5, %vm2774_vm4 }
0x1f23   :  { %v2783_v2 = vmul.f32 1.0614054, %v2766_v28  ;;  %v2770_v52 = vsub.f32 1.0, %v2769_v17  ;;  %v3241_v3 = vpop.eup %3240 }
0x1f25   :  { %v2785_v0 = vadd.f32 -1.4531521, %v2783_v2  ;;  %v2771_v43 = vmul.f32 %v3237_v24, %v2770_v52 }
0x1f27   :  { %v2787_v10 = vmul.f32 %v2785_v0, %v2766_v28  ;;  %v2772_v42 = vadd.f32 %v3237_v24, %v2771_v43 }
0x1f29   :  { %v2789_v56 = vadd.f32 1.4214138, %v2787_v10  ;;  %v2776_v29 = vsel %vm2775_vm12, %v3237_v24, %v2772_v42 }
0x1f2a   :  { %v2781_v34 = vsel %vm2778_vm2, %v2780_v49, %v2776_v29 }
0x1f2b   :  { %v2791_v25 = vmul.f32 %v2789_v56, %v2766_v28  ;;  %v2784_v22 = vmul.f32 1.0614054, %v2781_v34 }
0x1f2d   :  { %v2793_v62 = vadd.f32 -0.28449672, %v2791_v25  ;;  %v2786_v50 = vadd.f32 -1.4531521, %v2784_v22 }
0x1f2f   :  { %v2795_v54 = vmul.f32 %v2793_v62, %v2766_v28  ;;  %v2788_v7 = vmul.f32 %v2786_v50, %v2781_v34 }
0x1f31   :  { %v2797_v57 = vadd.f32 0.2548296, %v2795_v54  ;;  %v2790_v6 = vadd.f32 1.4214138, %v2788_v7 }
0x1f33   :  { %v2799_v26 = vmul.f32 %v2797_v57, %v2766_v28  ;;  %v2792_v27 = vmul.f32 %v2790_v6, %v2781_v34 }
0x1f35   :  { %v2809_v30 = vmul.f32 %v3239_v46, %v2799_v26  ;;  %v2794_v31 = vadd.f32 -0.28449672, %v2792_v27 }
0x1f37   :  { %v2811_v35 = vsub.f32 1.0, %v2809_v30  ;;  %v2796_v32 = vmul.f32 %v2794_v31, %v2781_v34 }
0x1f39   :  { %v2813_v36 = vmul.f32 %v2811_v35, %v2745_v55  ;;  %v2798_v41 = vadd.f32 0.2548296, %v2796_v32 }
0x1f3b   :  { %v2815_v51 = vadd.f32 1.0, %v2813_v36  ;;  %v2800_v19 = vmul.f32 %v2798_v41, %v2781_v34 }
0x1f3d   :  { %v2817_v60 = vmul.f32 %v2815_v51, %v2739_v12  ;;  %v2810_v4 = vmul.f32 %v3241_v3, %v2800_v19 }
0x1f3f   :  { %3045 = vmatmul.msk.f32.vlgmr.msra.gmra.mxu0 %vm41_vm0, %v2817_v60  ;;  %v2812_v38 = vsub.f32 1.0, %v2810_v4 }
0x1f41   :  { %v2814_v20 = vmul.f32 %v2812_v38, %v2746_v5 }
0x1f43   :  { %v2816_v33 = vadd.f32 1.0, %v2814_v20 }
0x1f45   :  { %v2818_v11 = vmul.f32 %v2816_v33, %v2740_v61 }
0x1f47   :  { %3046 = vmatmul.msk.f32.gmra.mxu0 %vm41_vm0, %v2818_v11  ;;  %vm2935_vm0 = vcmask 125952  }
0x1fbc   :  { %v2842_v40 = vpop.f32.mrf.mxu0 }
0x1fbd   :  { %v2848_v37 = vadd.f32 %v2842_v40, %v4394_v1  ;;  %v2852_v1 = vld [vmem:[%s4475_s1 + $0x358] sm:$0xf] }
0x1fbf   :  { %v2850_v24 = vadd.f32 %v4354_v48, %v2848_v37 }
0x1fc4   :  { %v2845_v9 = vpop.f32.mrf.mxu0 }
0x1fc5   :  { %v2849_v45 = vadd.f32 %v2845_v9, %v4400_v14  ;;  %v2908_v14 = vld [vmem:[%s4475_s1 + $0x340] sm:$0xff] }
0x1fc7   :  { %v2851_v21 = vadd.f32 %v4354_v48, %v2849_v45  ;;  %v2909_v48 = vld [vmem:[%s4475_s1 + $0x348] sm:$0xff] }
0x1fc8   :  { %2927 = vmatpush.msra.mxu2 %v2909_v48 }
0x1fc9   :  { %3047 = vmatpush.msk.msrb.mxu1 %vm295_vm13, %v2851_v21 }
0x1fca   :  { %2928 = vmatpush.msra.mxu2 %v2908_v14 }
0x1fcb   :  { %2875 = vmatpush.msrb.mxu1 %v2850_v24 }
0x1fcc   :  { %3048 = vmatmul.msk.f32.vlgmr.msrb.gmra.mxu1 %vm234_vm11, %v2853_v8 }
0x1fcd   :  { %3049 = vmatpush.msk.msra.mxu1 %vm295_vm13, %v4364_v23  ;;  %v2906_v23 = vld [vmem:[%s4475_s1 + $0x330] sm:$0xff] }
0x1fcf   :  { %2901 = vmatpush.msra.mxu1 %v4358_v63  ;;  %v2907_v63 = vld [vmem:[%s4475_s1 + $0x338] sm:$0xff] }
0x1fd0   :  { %2929 = vmatpush.msra.mxu2 %v2907_v63 }
0x1fd2   :  { %2930 = vmatpush.msra.mxu2 %v2906_v23 }
0x1fd4   :  { %3050 = vmatmul.msk.f32.vlgmr.msra.gmra.mxu1 %vm234_vm11, %v2852_v1 }
0x2049   :  { %v2877_v58 = vpop.f32.mrf.mxu1 }
0x2051   :  { %v2903_v16 = vpop.f32.mrf.mxu1 }
0x2052   :  { %v2904_v28 = vadd.f32 %v2903_v16, %v2877_v58 }
0x2054   :  { %3051 = vmatmul.msk.f32.vlgmr.msra.gmra.mxu2 %vm98_vm1, %v2904_v28 }
0x20d7   :  { %v2932_v17 = vpop.f32.mrf.mxu2 }
0x20d8   :  { %v2933_v2 = vadd.f32 %v3091_v15, %v2932_v17 }
0x20da   :  { %2936 = vst.msk [vmem:[%s4477_s2] sm:$0xf] %vm2935_vm0, %v2933_v2 }

</bundles_post_ra>
